<compile_context>
chip_gen: v6e
topology: v6e:2x2x1
jax: 0.10.0
libtpu: 0.0.40
codegen_flags: <defaults>
</compile_context>

<pallas_src>
import jax
import jax.numpy as jnp
from jax.experimental import pallas as pl
from jax.experimental.pallas import tpu as pltpu

# ----- problem sizes (small but large enough to exercise the 2x2 tile grid) -----
N        = 256   # number of nodes
IN_DIM   = 16    # node feature dim
OUT_DIM  = 128   # GAT output dim (lane-dense output stores)
D_REL    = 8     # all_dims['efeat_relation']
D_SCORE  = 4     # all_dims['efeat_score']
D_TS     = 4     # all_dims['efeat_timestamp']
D_E      = D_REL + D_SCORE + D_TS

TILE_DST = 128   # multiples of 128: fits v5e's 4x128 MXU and the (8,128) rule
TILE_SRC = 128   # bf16 efeat tile (16,128,128) ~= 512 KiB -> safe on v7x 64 MiB VMEM

_VMEM = pl.BlockSpec(memory_space=pltpu.MemorySpace.VMEM)


# ---------------------------------------------------------------------------
# Prologue: node projection + node-side attention scores (computed once)
# ---------------------------------------------------------------------------
def proj_kernel(h_ref, wn_ref, a2_ref, z_ref, sdst_ref, ssrc_ref):
    # z = fc_nfeat(h): bf16 operands, f32 accumulation on the MXU.
    z = jnp.dot(h_ref[...], wn_ref[...], preferred_element_type=jnp.float32)
    z_ref[...] = z.astype(jnp.bfloat16)          # bf16 copy for the aggregation matmul

    # a2 is lane-major [2, D]: row 0 = a_dst, row 1 = a_src.  Two tiny MXU
    # pushes, done once for the whole graph (not per (dst, src) tile).
    sdst_ref[...] = jax.lax.dot_general(          # [N, 1] : z_i . a_dst
        z, a2_ref[0:1, :], dimension_numbers=(((1,), (1,)), ((), ())),
        preferred_element_type=jnp.float32)
    ssrc_ref[...] = jax.lax.dot_general(          # [1, N] : z_j . a_src
        a2_ref[1:2, :], z, dimension_numbers=(((1,), (1,)), ((), ())),
        preferred_element_type=jnp.float32)


# ---------------------------------------------------------------------------
# Main fused kernel: edge logits + masked online softmax + aggregation
# grid = (dst_tiles, src_tiles);  dst "parallel", src "arbitrary"
# ---------------------------------------------------------------------------
def gat_attn_kernel(w_ref, sdst_ref, ssrc_ref, efeat_ref, adj_ref, z_ref,
                    out_ref, m_scr, l_scr, acc_scr):
    s = pl.program_id(1)

    @pl.when(s == 0)
    def _():
        m_scr[...] = jnp.full_like(m_scr, -jnp.inf)
        l_scr[...] = jnp.zeros_like(l_scr)
        acc_scr[...] = jnp.zeros_like(acc_scr)

    # Edge-feature attention term: channel-major VPU weighted accumulation
    # sum_c w_e[c] * efeat[c]  (folded weight lives in SMEM, D_e static -> unrolled).
    e_mat = w_ref[0] * efeat_ref[0].astype(jnp.float32)
    for c in range(1, efeat_ref.shape[0]):
        e_mat = e_mat + w_ref[c] * efeat_ref[c].astype(jnp.float32)

    # logit[i, j] = attn_fc([z_j, z_i, efeat_ij]) for edge src=j -> dst=i
    raw = sdst_ref[...] + ssrc_ref[...] + e_mat                  # [td, ts] f32
    raw = jnp.where(raw > 0, raw, 0.01 * raw)                    # leaky_relu(0.01)
    adj = adj_ref[...].astype(jnp.float32)                       # bf16 mask -> f32 (v5e VPU)
    logits = jnp.where(adj > 0.5, raw, -1e30)                    # in-kernel mask, no bias tensor

    # Online (flash-style) softmax over incoming edges.
    m_prev = m_scr[...]
    m_new = jnp.maximum(m_prev, jnp.max(logits, axis=-1, keepdims=True))
    corr = jnp.exp(m_prev - m_new)
    p = jnp.exp(logits - m_new)
    l_scr[...] = corr * l_scr[...] + jnp.sum(p, axis=-1, keepdims=True)
    acc_scr[...] = corr * acc_scr[...] + jnp.dot(
        p.astype(jnp.bfloat16), z_ref[...], preferred_element_type=jnp.float32)
    m_scr[...] = m_new

    @pl.when(s == pl.num_programs(1) - 1)
    def _():
        out_ref[...] = acc_scr[...] * pl.reciprocal(l_scr[...], approx=True)


# ---------------------------------------------------------------------------
# Wrapper
# ---------------------------------------------------------------------------
@jax.jit
def gat_layer_forward(h, adj, efeat_cm, Wn, Wrel, Wsc, Wts, attn_w):
    """h:[N,in]  adj:[N,N] f32  efeat_cm:[D_e,N,N] bf16 (stored channel-major once)."""
    n, _ = h.shape
    d = Wn.shape[1]
    d_e = efeat_cm.shape[0]

    # ----- tiny weight-side preprocessing (all on [*, D] weights) -----
    a_src = attn_w[0 * d:1 * d]
    a_dst = attn_w[1 * d:2 * d]
    a_rel = attn_w[2 * d:3 * d]
    a_sc  = attn_w[3 * d:4 * d]
    a_ts  = attn_w[4 * d:5 * d]
    # (X @ W) @ a == X @ (W @ a): fold the three edge-feature linears + their
    # attn_fc chunks into a single [D_e] weight (consumed on the VPU in SMEM).
    w_e = jnp.concatenate([Wrel @ a_rel, Wsc @ a_sc, Wts @ a_ts], axis=0)   # [D_e] f32
    a2 = jnp.stack([a_dst, a_src], axis=0)                                  # [2, D] lane-major f32

    hb = h.astype(jnp.bfloat16)
    wnb = Wn.astype(jnp.bfloat16)
    adjb = adj.astype(jnp.bfloat16)   # TODO(synk): store the mask as int8/bf16 at the source

    # ----- prologue: z + node-side attention scores, once -----
    z_bf, s_dst, s_src = pl.pallas_call(
        proj_kernel,
        out_shape=(jax.ShapeDtypeStruct((n, d), jnp.bfloat16),
                   jax.ShapeDtypeStruct((n, 1), jnp.float32),
                   jax.ShapeDtypeStruct((1, n), jnp.float32)),
        in_specs=[_VMEM, _VMEM, _VMEM],
        out_specs=(_VMEM, _VMEM, _VMEM),
    )(hb, wnb, a2)

    # ----- main fused attention -----
    grid = (n // TILE_DST, n // TILE_SRC)
    flops = 2 * n * n * (d_e + d) + 8 * n * n
    bytes_accessed = (efeat_cm.size * 2 + adjb.size * 2 + z_bf.size * 2
                      + s_dst.size * 4 + s_src.size * 4 + n * d * 4)

    out = pl.pallas_call(
        gat_attn_kernel,
        out_shape=jax.ShapeDtypeStruct((n, d), jnp.float32),
        grid_spec=pltpu.PrefetchScalarGridSpec(
            num_scalar_prefetch=0,
            grid=grid,
            in_specs=[
                pl.BlockSpec(memory_space=pltpu.MemorySpace.SMEM),                # w_e [D_e]
                pl.BlockSpec((TILE_DST, 1), lambda i, j: (i, 0)),                 # s_dst
                pl.BlockSpec((1, TILE_SRC), lambda i, j: (0, j)),                 # s_src
                pl.BlockSpec((d_e, TILE_DST, TILE_SRC), lambda i, j: (0, i, j)),  # efeat
                pl.BlockSpec((TILE_DST, TILE_SRC), lambda i, j: (i, j)),          # adj mask
                pl.BlockSpec((TILE_SRC, d), lambda i, j: (j, 0)),                 # z (src values)
            ],
            out_specs=pl.BlockSpec((TILE_DST, d), lambda i, j: (i, 0)),
            scratch_shapes=[pltpu.VMEM((TILE_DST, 1), jnp.float32),   # m
                            pltpu.VMEM((TILE_DST, 1), jnp.float32),   # l
                            pltpu.VMEM((TILE_DST, d), jnp.float32)],  # acc
        ),
        compiler_params=pltpu.CompilerParams(
            dimension_semantics=("parallel", "arbitrary"),
            vmem_limit_bytes=32 * 1024 * 1024),
        cost_estimate=pl.CostEstimate(flops=int(flops),
                                      transcendentals=int(n * n),
                                      bytes_accessed=int(bytes_accessed)),
    )(w_e, s_dst, s_src, efeat_cm, adjb, z_bf)
    return out


# ---------------------------------------------------------------------------
# Pure-JAX reference (mirrors the PyTorch/DGL semantics), f32 throughout.
# ---------------------------------------------------------------------------
@jax.jit
def reference_forward(h, adj, erel3, esc3, ets3, Wn, Wrel, Wsc, Wts, attn_w):
    n = h.shape[0]
    z = h @ Wn
    efa = jnp.concatenate(
        [erel3.reshape(n * n, -1) @ Wrel,
         esc3.reshape(n * n, -1) @ Wsc,
         ets3.reshape(n * n, -1) @ Wts], axis=-1)          # e_feat_all [E, 3*D]
    z_src = jnp.tile(z, (n, 1))                            # edge k = i*n + j -> src j
    z_dst = jnp.repeat(z, n, axis=0)                       # -> dst i
    z2 = jnp.concatenate([z_src, z_dst, efa], axis=-1)     # [E, 5*D]
    a = z2 @ attn_w.reshape(-1, 1)
    e = jnp.where(a > 0, a, 0.01 * a).reshape(n, n)        # leaky_relu, [dst, src]
    masked = jnp.where(adj > 0.5, e, -jnp.inf)
    alpha = jax.nn.softmax(masked, axis=-1)
    return alpha @ z


if __name__ == "__main__":
    key = jax.random.PRNGKey(0)
    keys = jax.random.split(key, 10)

    # deterministic inputs
    h = jax.random.normal(keys[0], (N, IN_DIM), dtype=jnp.float32)
    # adjacency: random edges + self loops (guarantees in-degree >= 1 everywhere)
    adj = ((jax.random.uniform(keys[1], (N, N)) < 0.1) | jnp.eye(N, dtype=bool)
           ).astype(jnp.float32)
    erel3 = jax.random.normal(keys[2], (N, N, D_REL), dtype=jnp.float32)
    esc3  = jax.random.normal(keys[3], (N, N, D_SCORE), dtype=jnp.float32)
    ets3  = jax.random.normal(keys[4], (N, N, D_TS), dtype=jnp.float32)

    # deterministic parameters (Linear weights stored as [in, out] == PyTorch W.T)
    Wn    = 0.1 * jax.random.normal(keys[5], (IN_DIM, OUT_DIM), dtype=jnp.float32)
    Wrel  = 0.1 * jax.random.normal(keys[6], (D_REL, OUT_DIM), dtype=jnp.float32)
    Wsc   = 0.1 * jax.random.normal(keys[7], (D_SCORE, OUT_DIM), dtype=jnp.float32)
    Wts   = 0.1 * jax.random.normal(keys[8], (D_TS, OUT_DIM), dtype=jnp.float32)
    attn_w = 0.1 * jax.random.normal(keys[9], (5 * OUT_DIM,), dtype=jnp.float32)

    # Edge features stored once, channel-major bf16 (relation | score | timestamp).
    efeat_cm = jnp.transpose(
        jnp.concatenate([erel3, esc3, ets3], axis=-1), (2, 0, 1)).astype(jnp.bfloat16)

    out = gat_layer_forward(h, adj, efeat_cm, Wn, Wrel, Wsc, Wts, attn_w)
    out = jax.block_until_ready(out)

    ref = reference_forward(h, adj, erel3, esc3, ets3, Wn, Wrel, Wsc, Wts, attn_w)
    assert out.shape == (N, OUT_DIM)
    # Tolerance absorbs bf16 MXU operands / bf16 edge-feature storage and the
    # EUP approximate reciprocal; structural/indexing errors would be >> this.
    assert jnp.allclose(out, ref, atol=3e-2, rtol=3e-2), "mismatch vs reference"

    print("KERNEL_OK")
</pallas_src>

<mosaic_0001>
module attributes {stable_mosaic.version = 11 : i64} {
  func.func @proj_kernel(%arg0: memref<256x16xbf16, #tpu.memory_space<vmem>>, %arg1: memref<16x128xbf16, #tpu.memory_space<vmem>>, %arg2: memref<2x128xf32, #tpu.memory_space<vmem>>, %arg3: memref<256x128xbf16, #tpu.memory_space<vmem>>, %arg4: memref<256x1xf32, #tpu.memory_space<vmem>>, %arg5: memref<1x256xf32, #tpu.memory_space<vmem>>) attributes {dimension_semantics = [], scalar_prefetch = 0 : i64, scratch_operands = 0 : i64, tpu.core_type = #tpu.core_type<tc>} {
    %c0 = arith.constant 0 : index
    %c0_0 = arith.constant 0 : index
    %0 = vector.load %arg0[%c0, %c0_0] : memref<256x16xbf16, #tpu.memory_space<vmem>>, vector<256x16xbf16>
    %c0_1 = arith.constant 0 : index
    %c0_2 = arith.constant 0 : index
    %1 = vector.load %arg1[%c0_1, %c0_2] : memref<16x128xbf16, #tpu.memory_space<vmem>>, vector<16x128xbf16>
    %cst = arith.constant dense<0.000000e+00> : vector<256x128xf32>
    %2 = tpu.matmul %0, %1, %cst {dimension_numbers = #tpu.dot_dimension_numbers<[1], [0], [0], [1], [0, 0, 1, 1], [], []>} : vector<256x16xbf16>, vector<16x128xbf16>, vector<256x128xf32> -> vector<256x128xf32>
    %3 = arith.truncf %2 : vector<256x128xf32> to vector<256x128xbf16>
    %c0_3 = arith.constant 0 : index
    %c0_4 = arith.constant 0 : index
    %4 = vector.load %arg3[%c0_3, %c0_4] : memref<256x128xbf16, #tpu.memory_space<vmem>>, vector<256x128xbf16>
    tpu.vector_store %arg3[%c0_3, %c0_4], %3 {strides = array<i32>} : memref<256x128xbf16, #tpu.memory_space<vmem>>, vector<256x128xbf16>,
    %c0_5 = arith.constant 0 : index
    %c0_6 = arith.constant 0 : index
    %5 = vector.load %arg2[%c0_5, %c0_6] : memref<2x128xf32, #tpu.memory_space<vmem>>, vector<1x128xf32>
    %cst_7 = arith.constant dense<0.000000e+00> : vector<256x1xf32>
    %6 = tpu.matmul %2, %5, %cst_7 {dimension_numbers = #tpu.dot_dimension_numbers<[1], [1], [0], [0], [0, 0, 1, 0], [], []>} : vector<256x128xf32>, vector<1x128xf32>, vector<256x1xf32> -> vector<256x1xf32>
    %c0_8 = arith.constant 0 : index
    %c0_9 = arith.constant 0 : index
    %7 = vector.load %arg4[%c0_8, %c0_9] : memref<256x1xf32, #tpu.memory_space<vmem>>, vector<256x1xf32>
    tpu.vector_store %arg4[%c0_8, %c0_9], %6 {strides = array<i32>} : memref<256x1xf32, #tpu.memory_space<vmem>>, vector<256x1xf32>,
    %c1 = arith.constant 1 : index
    %c0_10 = arith.constant 0 : index
    %8 = vector.load %arg2[%c1, %c0_10] : memref<2x128xf32, #tpu.memory_space<vmem>>, vector<1x128xf32>
    %cst_11 = arith.constant dense<0.000000e+00> : vector<1x256xf32>
    %9 = tpu.matmul %8, %2, %cst_11 {dimension_numbers = #tpu.dot_dimension_numbers<[1], [1], [0], [0], [0, 0, 1, 0], [], []>} : vector<1x128xf32>, vector<256x128xf32>, vector<1x256xf32> -> vector<1x256xf32>
    %c0_12 = arith.constant 0 : index
    %c0_13 = arith.constant 0 : index
    %10 = vector.load %arg5[%c0_12, %c0_13] : memref<1x256xf32, #tpu.memory_space<vmem>>, vector<1x256xf32>
    tpu.vector_store %arg5[%c0_12, %c0_13], %9 {strides = array<i32>} : memref<1x256xf32, #tpu.memory_space<vmem>>, vector<1x256xf32>,
    return
  }
}

module attributes {stable_mosaic.version = 11 : i64} {
  func.func @gat_attn_kernel(%arg0: i32, %arg1: i32, %arg2: memref<16xf32, #tpu.memory_space<smem>>, %arg3: memref<128x1xf32, #tpu.memory_space<vmem>>, %arg4: memref<1x128xf32, #tpu.memory_space<vmem>>, %arg5: memref<16x128x128xbf16, #tpu.memory_space<vmem>>, %arg6: memref<128x128xbf16, #tpu.memory_space<vmem>>, %arg7: memref<128x128xbf16, #tpu.memory_space<vmem>>, %arg8: memref<128x128xf32, #tpu.memory_space<vmem>>, %arg9: memref<128x1xf32, #tpu.memory_space<vmem>>, %arg10: memref<128x1xf32, #tpu.memory_space<vmem>>, %arg11: memref<128x128xf32, #tpu.memory_space<vmem>>) attributes {dimension_semantics = [#tpu.dimension_semantics<parallel>, #tpu.dimension_semantics<arbitrary>], iteration_bounds = array<i64: 2, 2>, scalar_prefetch = 0 : i64, scratch_operands = 3 : i64, tpu.core_type = #tpu.core_type<tc>, window_params = [{transform_indices = @transform_0, window_bounds = array<i64: 16>}, {transform_indices = @transform_1, window_bounds = array<i64: 128, 1>}, {transform_indices = @transform_2, window_bounds = array<i64: 1, 128>}, {transform_indices = @transform_3, window_bounds = array<i64: 16, 128, 128>}, {transform_indices = @transform_4, window_bounds = array<i64: 128, 128>}, {transform_indices = @transform_5, window_bounds = array<i64: 128, 128>}, {transform_indices = @transform_6, window_bounds = array<i64: 128, 128>}]} {
    %c0_i32 = arith.constant 0 : i32
    %0 = arith.cmpi eq, %arg1, %c0_i32 : i32
    %1 = arith.extui %0 : i1 to i32
    %c0_i32_0 = arith.constant 0 : i32
    %2 = arith.cmpi ne, %1, %c0_i32_0 : i32
    scf.if %2 {
      %cst_76 = arith.constant 0xFF800000 : f32
      %158 = vector.broadcast %cst_76 : f32 to vector<128x1xf32>
      %c0_77 = arith.constant 0 : index
      %c0_78 = arith.constant 0 : index
      %159 = vector.load %arg9[%c0_77, %c0_78] : memref<128x1xf32, #tpu.memory_space<vmem>>, vector<128x1xf32>
      tpu.vector_store %arg9[%c0_77, %c0_78], %158 {strides = array<i32>} : memref<128x1xf32, #tpu.memory_space<vmem>>, vector<128x1xf32>,
      %cst_79 = arith.constant 0.000000e+00 : f32
      %160 = vector.broadcast %cst_79 : f32 to vector<128x1xf32>
      %c0_80 = arith.constant 0 : index
      %c0_81 = arith.constant 0 : index
      %161 = vector.load %arg10[%c0_80, %c0_81] : memref<128x1xf32, #tpu.memory_space<vmem>>, vector<128x1xf32>
      tpu.vector_store %arg10[%c0_80, %c0_81], %160 {strides = array<i32>} : memref<128x1xf32, #tpu.memory_space<vmem>>, vector<128x1xf32>,
      %cst_82 = arith.constant 0.000000e+00 : f32
      %162 = vector.broadcast %cst_82 : f32 to vector<128x128xf32>
      %c0_83 = arith.constant 0 : index
      %c0_84 = arith.constant 0 : index
      %163 = vector.load %arg11[%c0_83, %c0_84] : memref<128x128xf32, #tpu.memory_space<vmem>>, vector<128x128xf32>
      tpu.vector_store %arg11[%c0_83, %c0_84], %162 {strides = array<i32>} : memref<128x128xf32, #tpu.memory_space<vmem>>, vector<128x128xf32>,
    } else {
    }
    %c0 = arith.constant 0 : index
    %3 = memref.load %arg2[%c0] : memref<16xf32, #tpu.memory_space<smem>>
    %c0_1 = arith.constant 0 : index
    %c0_2 = arith.constant 0 : index
    %c0_3 = arith.constant 0 : index
    %4 = vector.load %arg5[%c0_1, %c0_2, %c0_3] : memref<16x128x128xbf16, #tpu.memory_space<vmem>>, vector<1x128x128xbf16>
    %5 = vector.shape_cast %4 : vector<1x128x128xbf16> to vector<128x128xbf16>
    %6 = arith.extf %5 : vector<128x128xbf16> to vector<128x128xf32>
    %7 = vector.broadcast %3 : f32 to vector<128x128xf32>
    %8 = arith.mulf %7, %6 : vector<128x128xf32>
    %c1 = arith.constant 1 : index
    %9 = memref.load %arg2[%c1] : memref<16xf32, #tpu.memory_space<smem>>
    %c1_4 = arith.constant 1 : index
    %c0_5 = arith.constant 0 : index
    %c0_6 = arith.constant 0 : index
    %10 = vector.load %arg5[%c1_4, %c0_5, %c0_6] : memref<16x128x128xbf16, #tpu.memory_space<vmem>>, vector<1x128x128xbf16>
    %11 = vector.shape_cast %10 : vector<1x128x128xbf16> to vector<128x128xbf16>
    %12 = arith.extf %11 : vector<128x128xbf16> to vector<128x128xf32>
    %13 = vector.broadcast %9 : f32 to vector<128x128xf32>
    %14 = arith.mulf %13, %12 : vector<128x128xf32>
    %15 = arith.addf %8, %14 : vector<128x128xf32>
    %c2 = arith.constant 2 : index
    %16 = memref.load %arg2[%c2] : memref<16xf32, #tpu.memory_space<smem>>
    %c2_7 = arith.constant 2 : index
    %c0_8 = arith.constant 0 : index
    %c0_9 = arith.constant 0 : index
    %17 = vector.load %arg5[%c2_7, %c0_8, %c0_9] : memref<16x128x128xbf16, #tpu.memory_space<vmem>>, vector<1x128x128xbf16>
    %18 = vector.shape_cast %17 : vector<1x128x128xbf16> to vector<128x128xbf16>
    %19 = arith.extf %18 : vector<128x128xbf16> to vector<128x128xf32>
    %20 = vector.broadcast %16 : f32 to vector<128x128xf32>
    %21 = arith.mulf %20, %19 : vector<128x128xf32>
    %22 = arith.addf %15, %21 : vector<128x128xf32>
    %c3 = arith.constant 3 : index
    %23 = memref.load %arg2[%c3] : memref<16xf32, #tpu.memory_space<smem>>
    %c3_10 = arith.constant 3 : index
    %c0_11 = arith.constant 0 : index
    %c0_12 = arith.constant 0 : index
    %24 = vector.load %arg5[%c3_10, %c0_11, %c0_12] : memref<16x128x128xbf16, #tpu.memory_space<vmem>>, vector<1x128x128xbf16>
    %25 = vector.shape_cast %24 : vector<1x128x128xbf16> to vector<128x128xbf16>
    %26 = arith.extf %25 : vector<128x128xbf16> to vector<128x128xf32>
    %27 = vector.broadcast %23 : f32 to vector<128x128xf32>
    %28 = arith.mulf %27, %26 : vector<128x128xf32>
    %29 = arith.addf %22, %28 : vector<128x128xf32>
    %c4 = arith.constant 4 : index
    %30 = memref.load %arg2[%c4] : memref<16xf32, #tpu.memory_space<smem>>
    %c4_13 = arith.constant 4 : index
    %c0_14 = arith.constant 0 : index
    %c0_15 = arith.constant 0 : index
    %31 = vector.load %arg5[%c4_13, %c0_14, %c0_15] : memref<16x128x128xbf16, #tpu.memory_space<vmem>>, vector<1x128x128xbf16>
    %32 = vector.shape_cast %31 : vector<1x128x128xbf16> to vector<128x128xbf16>
    %33 = arith.extf %32 : vector<128x128xbf16> to vector<128x128xf32>
    %34 = vector.broadcast %30 : f32 to vector<128x128xf32>
    %35 = arith.mulf %34, %33 : vector<128x128xf32>
    %36 = arith.addf %29, %35 : vector<128x128xf32>
    %c5 = arith.constant 5 : index
    %37 = memref.load %arg2[%c5] : memref<16xf32, #tpu.memory_space<smem>>
    %c5_16 = arith.constant 5 : index
    %c0_17 = arith.constant 0 : index
    %c0_18 = arith.constant 0 : index
    %38 = vector.load %arg5[%c5_16, %c0_17, %c0_18] : memref<16x128x128xbf16, #tpu.memory_space<vmem>>, vector<1x128x128xbf16>
    %39 = vector.shape_cast %38 : vector<1x128x128xbf16> to vector<128x128xbf16>
    %40 = arith.extf %39 : vector<128x128xbf16> to vector<128x128xf32>
    %41 = vector.broadcast %37 : f32 to vector<128x128xf32>
    %42 = arith.mulf %41, %40 : vector<128x128xf32>
    %43 = arith.addf %36, %42 : vector<128x128xf32>
    %c6 = arith.constant 6 : index
    %44 = memref.load %arg2[%c6] : memref<16xf32, #tpu.memory_space<smem>>
    %c6_19 = arith.constant 6 : index
    %c0_20 = arith.constant 0 : index
    %c0_21 = arith.constant 0 : index
    %45 = vector.load %arg5[%c6_19, %c0_20, %c0_21] : memref<16x128x128xbf16, #tpu.memory_space<vmem>>, vector<1x128x128xbf16>
    %46 = vector.shape_cast %45 : vector<1x128x128xbf16> to vector<128x128xbf16>
    %47 = arith.extf %46 : vector<128x128xbf16> to vector<128x128xf32>
    %48 = vector.broadcast %44 : f32 to vector<128x128xf32>
    %49 = arith.mulf %48, %47 : vector<128x128xf32>
    %50 = arith.addf %43, %49 : vector<128x128xf32>
    %c7 = arith.constant 7 : index
    %51 = memref.load %arg2[%c7] : memref<16xf32, #tpu.memory_space<smem>>
    %c7_22 = arith.constant 7 : index
    %c0_23 = arith.constant 0 : index
    %c0_24 = arith.constant 0 : index
    %52 = vector.load %arg5[%c7_22, %c0_23, %c0_24] : memref<16x128x128xbf16, #tpu.memory_space<vmem>>, vector<1x128x128xbf16>
    %53 = vector.shape_cast %52 : vector<1x128x128xbf16> to vector<128x128xbf16>
    %54 = arith.extf %53 : vector<128x128xbf16> to vector<128x128xf32>
    %55 = vector.broadcast %51 : f32 to vector<128x128xf32>
    %56 = arith.mulf %55, %54 : vector<128x128xf32>
    %57 = arith.addf %50, %56 : vector<128x128xf32>
    %c8 = arith.constant 8 : index
    %58 = memref.load %arg2[%c8] : memref<16xf32, #tpu.memory_space<smem>>
    %c8_25 = arith.constant 8 : index
    %c0_26 = arith.constant 0 : index
    %c0_27 = arith.constant 0 : index
    %59 = vector.load %arg5[%c8_25, %c0_26, %c0_27] : memref<16x128x128xbf16, #tpu.memory_space<vmem>>, vector<1x128x128xbf16>
    %60 = vector.shape_cast %59 : vector<1x128x128xbf16> to vector<128x128xbf16>
    %61 = arith.extf %60 : vector<128x128xbf16> to vector<128x128xf32>
    %62 = vector.broadcast %58 : f32 to vector<128x128xf32>
    %63 = arith.mulf %62, %61 : vector<128x128xf32>
    %64 = arith.addf %57, %63 : vector<128x128xf32>
    %c9 = arith.constant 9 : index
    %65 = memref.load %arg2[%c9] : memref<16xf32, #tpu.memory_space<smem>>
    %c9_28 = arith.constant 9 : index
    %c0_29 = arith.constant 0 : index
    %c0_30 = arith.constant 0 : index
    %66 = vector.load %arg5[%c9_28, %c0_29, %c0_30] : memref<16x128x128xbf16, #tpu.memory_space<vmem>>, vector<1x128x128xbf16>
    %67 = vector.shape_cast %66 : vector<1x128x128xbf16> to vector<128x128xbf16>
    %68 = arith.extf %67 : vector<128x128xbf16> to vector<128x128xf32>
    %69 = vector.broadcast %65 : f32 to vector<128x128xf32>
    %70 = arith.mulf %69, %68 : vector<128x128xf32>
    %71 = arith.addf %64, %70 : vector<128x128xf32>
    %c10 = arith.constant 10 : index
    %72 = memref.load %arg2[%c10] : memref<16xf32, #tpu.memory_space<smem>>
    %c10_31 = arith.constant 10 : index
    %c0_32 = arith.constant 0 : index
    %c0_33 = arith.constant 0 : index
    %73 = vector.load %arg5[%c10_31, %c0_32, %c0_33] : memref<16x128x128xbf16, #tpu.memory_space<vmem>>, vector<1x128x128xbf16>
    %74 = vector.shape_cast %73 : vector<1x128x128xbf16> to vector<128x128xbf16>
    %75 = arith.extf %74 : vector<128x128xbf16> to vector<128x128xf32>
    %76 = vector.broadcast %72 : f32 to vector<128x128xf32>
    %77 = arith.mulf %76, %75 : vector<128x128xf32>
    %78 = arith.addf %71, %77 : vector<128x128xf32>
    %c11 = arith.constant 11 : index
    %79 = memref.load %arg2[%c11] : memref<16xf32, #tpu.memory_space<smem>>
    %c11_34 = arith.constant 11 : index
    %c0_35 = arith.constant 0 : index
    %c0_36 = arith.constant 0 : index
    %80 = vector.load %arg5[%c11_34, %c0_35, %c0_36] : memref<16x128x128xbf16, #tpu.memory_space<vmem>>, vector<1x128x128xbf16>
    %81 = vector.shape_cast %80 : vector<1x128x128xbf16> to vector<128x128xbf16>
    %82 = arith.extf %81 : vector<128x128xbf16> to vector<128x128xf32>
    %83 = vector.broadcast %79 : f32 to vector<128x128xf32>
    %84 = arith.mulf %83, %82 : vector<128x128xf32>
    %85 = arith.addf %78, %84 : vector<128x128xf32>
    %c12 = arith.constant 12 : index
    %86 = memref.load %arg2[%c12] : memref<16xf32, #tpu.memory_space<smem>>
    %c12_37 = arith.constant 12 : index
    %c0_38 = arith.constant 0 : index
    %c0_39 = arith.constant 0 : index
    %87 = vector.load %arg5[%c12_37, %c0_38, %c0_39] : memref<16x128x128xbf16, #tpu.memory_space<vmem>>, vector<1x128x128xbf16>
    %88 = vector.shape_cast %87 : vector<1x128x128xbf16> to vector<128x128xbf16>
    %89 = arith.extf %88 : vector<128x128xbf16> to vector<128x128xf32>
    %90 = vector.broadcast %86 : f32 to vector<128x128xf32>
    %91 = arith.mulf %90, %89 : vector<128x128xf32>
    %92 = arith.addf %85, %91 : vector<128x128xf32>
    %c13 = arith.constant 13 : index
    %93 = memref.load %arg2[%c13] : memref<16xf32, #tpu.memory_space<smem>>
    %c13_40 = arith.constant 13 : index
    %c0_41 = arith.constant 0 : index
    %c0_42 = arith.constant 0 : index
    %94 = vector.load %arg5[%c13_40, %c0_41, %c0_42] : memref<16x128x128xbf16, #tpu.memory_space<vmem>>, vector<1x128x128xbf16>
    %95 = vector.shape_cast %94 : vector<1x128x128xbf16> to vector<128x128xbf16>
    %96 = arith.extf %95 : vector<128x128xbf16> to vector<128x128xf32>
    %97 = vector.broadcast %93 : f32 to vector<128x128xf32>
    %98 = arith.mulf %97, %96 : vector<128x128xf32>
    %99 = arith.addf %92, %98 : vector<128x128xf32>
    %c14 = arith.constant 14 : index
    %100 = memref.load %arg2[%c14] : memref<16xf32, #tpu.memory_space<smem>>
    %c14_43 = arith.constant 14 : index
    %c0_44 = arith.constant 0 : index
    %c0_45 = arith.constant 0 : index
    %101 = vector.load %arg5[%c14_43, %c0_44, %c0_45] : memref<16x128x128xbf16, #tpu.memory_space<vmem>>, vector<1x128x128xbf16>
    %102 = vector.shape_cast %101 : vector<1x128x128xbf16> to vector<128x128xbf16>
    %103 = arith.extf %102 : vector<128x128xbf16> to vector<128x128xf32>
    %104 = vector.broadcast %100 : f32 to vector<128x128xf32>
    %105 = arith.mulf %104, %103 : vector<128x128xf32>
    %106 = arith.addf %99, %105 : vector<128x128xf32>
    %c15 = arith.constant 15 : index
    %107 = memref.load %arg2[%c15] : memref<16xf32, #tpu.memory_space<smem>>
    %c15_46 = arith.constant 15 : index
    %c0_47 = arith.constant 0 : index
    %c0_48 = arith.constant 0 : index
    %108 = vector.load %arg5[%c15_46, %c0_47, %c0_48] : memref<16x128x128xbf16, #tpu.memory_space<vmem>>, vector<1x128x128xbf16>
    %109 = vector.shape_cast %108 : vector<1x128x128xbf16> to vector<128x128xbf16>
    %110 = arith.extf %109 : vector<128x128xbf16> to vector<128x128xf32>
    %111 = vector.broadcast %107 : f32 to vector<128x128xf32>
    %112 = arith.mulf %111, %110 : vector<128x128xf32>
    %113 = arith.addf %106, %112 : vector<128x128xf32>
    %c0_49 = arith.constant 0 : index
    %c0_50 = arith.constant 0 : index
    %114 = vector.load %arg3[%c0_49, %c0_50] : memref<128x1xf32, #tpu.memory_space<vmem>>, vector<128x1xf32>
    %c0_51 = arith.constant 0 : index
    %c0_52 = arith.constant 0 : index
    %115 = vector.load %arg4[%c0_51, %c0_52] : memref<1x128xf32, #tpu.memory_space<vmem>>, vector<1x128xf32>
    %116 = vector.broadcast %114 : vector<128x1xf32> to vector<128x128xf32>
    %117 = vector.broadcast %115 : vector<1x128xf32> to vector<128x128xf32>
    %118 = arith.addf %116, %117 : vector<128x128xf32>
    %119 = arith.addf %118, %113 : vector<128x128xf32>
    %cst = arith.constant 0.000000e+00 : f32
    %120 = vector.broadcast %cst : f32 to vector<128x128xf32>
    %121 = arith.cmpf ogt, %119, %120 : vector<128x128xf32>
    %cst_53 = arith.constant 0.00999999977 : f32
    %122 = vector.broadcast %cst_53 : f32 to vector<128x128xf32>
    %123 = arith.mulf %122, %119 : vector<128x128xf32>
    %124 = arith.select %121, %119, %123 : vector<128x128xi1>, vector<128x128xf32>
    %c0_54 = arith.constant 0 : index
    %c0_55 = arith.constant 0 : index
    %125 = vector.load %arg6[%c0_54, %c0_55] : memref<128x128xbf16, #tpu.memory_space<vmem>>, vector<128x128xbf16>
    %126 = arith.extf %125 : vector<128x128xbf16> to vector<128x128xf32>
    %cst_56 = arith.constant 5.000000e-01 : f32
    %127 = vector.broadcast %cst_56 : f32 to vector<128x128xf32>
    %128 = arith.cmpf ogt, %126, %127 : vector<128x128xf32>
    %cst_57 = arith.constant -1.000000e+30 : f32
    %129 = vector.broadcast %cst_57 : f32 to vector<128x128xf32>
    %130 = arith.select %128, %124, %129 : vector<128x128xi1>, vector<128x128xf32>
    %c0_58 = arith.constant 0 : index
    %c0_59 = arith.constant 0 : index
    %131 = vector.load %arg9[%c0_58, %c0_59] : memref<128x1xf32, #tpu.memory_space<vmem>>, vector<128x1xf32>
    %cst_60 = arith.constant dense<0xFF800000> : vector<128xf32>
    %132 = vector.multi_reduction <maximumf>, %130, %cst_60 [1] : vector<128x128xf32> to vector<128xf32>
    %133 = vector.shape_cast %132 : vector<128xf32> to vector<128x1xf32>
    %134 = arith.maximumf %131, %133 : vector<128x1xf32>
    %135 = arith.subf %131, %134 : vector<128x1xf32>
    %136 = math.exp %135 : vector<128x1xf32>
    %137 = vector.broadcast %134 : vector<128x1xf32> to vector<128x128xf32>
    %138 = arith.subf %130, %137 : vector<128x128xf32>
    %139 = math.exp %138 : vector<128x128xf32>
    %c0_61 = arith.constant 0 : index
    %c0_62 = arith.constant 0 : index
    %140 = vector.load %arg10[%c0_61, %c0_62] : memref<128x1xf32, #tpu.memory_space<vmem>>, vector<128x1xf32>
    %141 = arith.mulf %136, %140 : vector<128x1xf32>
    %cst_63 = arith.constant dense<0.000000e+00> : vector<128xf32>
    %142 = vector.multi_reduction <add>, %139, %cst_63 [1] : vector<128x128xf32> to vector<128xf32>
    %143 = vector.shape_cast %142 : vector<128xf32> to vector<128x1xf32>
    %144 = arith.addf %141, %143 : vector<128x1xf32>
    %c0_64 = arith.constant 0 : index
    %c0_65 = arith.constant 0 : index
    %145 = vector.load %arg10[%c0_64, %c0_65] : memref<128x1xf32, #tpu.memory_space<vmem>>, vector<128x1xf32>
    tpu.vector_store %arg10[%c0_64, %c0_65], %144 {strides = array<i32>} : memref<128x1xf32, #tpu.memory_space<vmem>>, vector<128x1xf32>,
    %c0_66 = arith.constant 0 : index
    %c0_67 = arith.constant 0 : index
    %146 = vector.load %arg11[%c0_66, %c0_67] : memref<128x128xf32, #tpu.memory_space<vmem>>, vector<128x128xf32>
    %147 = vector.broadcast %136 : vector<128x1xf32> to vector<128x128xf32>
    %148 = arith.mulf %147, %146 : vector<128x128xf32>
    %149 = arith.truncf %139 : vector<128x128xf32> to vector<128x128xbf16>
    %c0_68 = arith.constant 0 : index
    %c0_69 = arith.constant 0 : index
    %150 = vector.load %arg7[%c0_68, %c0_69] : memref<128x128xbf16, #tpu.memory_space<vmem>>, vector<128x128xbf16>
    %cst_70 = arith.constant dense<0.000000e+00> : vector<128x128xf32>
    %151 = tpu.matmul %149, %150, %cst_70 {dimension_numbers = #tpu.dot_dimension_numbers<[1], [0], [0], [1], [0, 0, 1, 1], [], []>} : vector<128x128xbf16>, vector<128x128xbf16>, vector<128x128xf32> -> vector<128x128xf32>
    %152 = arith.addf %148, %151 : vector<128x128xf32>
    %c0_71 = arith.constant 0 : index
    %c0_72 = arith.constant 0 : index
    %153 = vector.load %arg11[%c0_71, %c0_72] : memref<128x128xf32, #tpu.memory_space<vmem>>, vector<128x128xf32>
    tpu.vector_store %arg11[%c0_71, %c0_72], %152 {strides = array<i32>} : memref<128x128xf32, #tpu.memory_space<vmem>>, vector<128x128xf32>,
    %c0_73 = arith.constant 0 : index
    %c0_74 = arith.constant 0 : index
    %154 = vector.load %arg9[%c0_73, %c0_74] : memref<128x1xf32, #tpu.memory_space<vmem>>, vector<128x1xf32>
    tpu.vector_store %arg9[%c0_73, %c0_74], %134 {strides = array<i32>} : memref<128x1xf32, #tpu.memory_space<vmem>>, vector<128x1xf32>,
    %c1_i32 = arith.constant 1 : i32
    %155 = arith.cmpi eq, %arg1, %c1_i32 : i32
    %156 = arith.extui %155 : i1 to i32
    %c0_i32_75 = arith.constant 0 : i32
    %157 = arith.cmpi ne, %156, %c0_i32_75 : i32
    scf.if %157 {
      %c0_76 = arith.constant 0 : index
      %c0_77 = arith.constant 0 : index
      %158 = vector.load %arg11[%c0_76, %c0_77] : memref<128x128xf32, #tpu.memory_space<vmem>>, vector<128x128xf32>
      %c0_78 = arith.constant 0 : index
      %c0_79 = arith.constant 0 : index
      %159 = vector.load %arg10[%c0_78, %c0_79] : memref<128x1xf32, #tpu.memory_space<vmem>>, vector<128x1xf32>
      %160 = tpu.reciprocal %159 {approx = true} : vector<128x1xf32> -> vector<128x1xf32>
      %161 = vector.broadcast %160 : vector<128x1xf32> to vector<128x128xf32>
      %162 = arith.mulf %158, %161 : vector<128x128xf32>
      %c0_80 = arith.constant 0 : index
      %c0_81 = arith.constant 0 : index
      %163 = vector.load %arg8[%c0_80, %c0_81] : memref<128x128xf32, #tpu.memory_space<vmem>>, vector<128x128xf32>
      tpu.vector_store %arg8[%c0_80, %c0_81], %162 {strides = array<i32>} : memref<128x128xf32, #tpu.memory_space<vmem>>, vector<128x128xf32>,
    } else {
    }
    return
  }
  func.func @transform_0(%arg0: i32, %arg1: i32) -> i32 {
    %c0_i32 = arith.constant 0 : i32
    %c0_i32_0 = arith.constant 0 : i32
    return %c0_i32 : i32
  }
  func.func @transform_1(%arg0: i32, %arg1: i32) -> (i32, i32) {
    %c0_i32 = arith.constant 0 : i32
    %c0_i32_0 = arith.constant 0 : i32
    return %arg0, %c0_i32 : i32, i32
  }
  func.func @transform_2(%arg0: i32, %arg1: i32) -> (i32, i32) {
    %c0_i32 = arith.constant 0 : i32
    %c0_i32_0 = arith.constant 0 : i32
    return %c0_i32, %arg1 : i32, i32
  }
  func.func @transform_3(%arg0: i32, %arg1: i32) -> (i32, i32, i32) {
    %c0_i32 = arith.constant 0 : i32
    %c0_i32_0 = arith.constant 0 : i32
    return %c0_i32, %arg0, %arg1 : i32, i32, i32
  }
  func.func @transform_4(%arg0: i32, %arg1: i32) -> (i32, i32) {
    %c0_i32 = arith.constant 0 : i32
    return %arg0, %arg1 : i32, i32
  }
  func.func @transform_5(%arg0: i32, %arg1: i32) -> (i32, i32) {
    %c0_i32 = arith.constant 0 : i32
    %c0_i32_0 = arith.constant 0 : i32
    return %arg1, %c0_i32 : i32, i32
  }
  func.func @transform_6(%arg0: i32, %arg1: i32) -> (i32, i32) {
    %c0_i32 = arith.constant 0 : i32
    %c0_i32_0 = arith.constant 0 : i32
    return %arg0, %c0_i32 : i32, i32
  }
}

</mosaic_0001>

<bundles_post_ra>
// kernel: gat_layer_forward.2
= control target key start
LH: loop header
LB: loop body
LE: loop exit
PB: predicated region body
PF: predicated region fallthrough
CT: control target
= control target key end

     0   :  { %vm138_vm0 = vcmask 130048   ;;  %vm609_vm1 = vcmask 7168   ;;  %s1476_s1 = inlined_call_operand.vmem [shape: bf16[16,128], index: 1, kind: input, shape index: {}]   ;;  %s1477_s0 = inlined_call_operand.vmem [shape: bf16[256,16], index: 0, kind: input, shape index: {}]   ;;  %s1478_s2 = inlined_call_operand.vmem [shape: f32[2,128], index: 2, kind: input, shape index: {}]   ;;  %s1479_s3 = inlined_call_operand.vmem [shape: bf16[256,128], index: 3, kind: output, shape index: {0}]   ;;  %s1480_s4 = inlined_call_operand.vmem [shape: f32[256,1], index: 4, kind: output, shape index: {1}]   ;;  %s1481_s5 = inlined_call_operand.vmem [shape: f32[1,256], index: 5, kind: output, shape index: {2}]  }
   0x1   :  { %v1028_v0 = vld [vmem:[%s1476_s1] sm:$0xff]   ;;  %v1030_v2 = vld [vmem:[%s1477_s0 + $0x8] sm:$0xff]   ;;  %v1031_v3 = vld [vmem:[%s1477_s0 + $0x10] sm:$0xff]  }
   0x2   :  { %v1029_v1 = vld [vmem:[%s1477_s0] sm:$0xff]   ;;  %993 = vmatprep.subr.bf16.mxu0 %v1028_v0  ;;  %v1032_v4 = vld [vmem:[%s1477_s0 + $0x18] sm:$0xff]   ;;  %v1034_v6 = vld [vmem:[%s1477_s0 + $0x28] sm:$0xff]  }
   0x3   :  { %994 = vmatpush3.bf16.msra.mxu0 %v1028_v0  ;;  %995 = vmatprep.mubr.msk.bf16.mxu0 %vm138_vm0, %v1029_v1  ;;  %v1033_v5 = vld [vmem:[%s1477_s0 + $0x20] sm:$0xff]   ;;  %v1035_v7 = vld [vmem:[%s1477_s0 + $0x30] sm:$0xff]   ;;  %v1036_v8 = vld [vmem:[%s1477_s0 + $0x38] sm:$0xff]  }
   0x4   :  { %v1037_v9 = vld [vmem:[%s1477_s0 + $0x40] sm:$0xff]   ;;  %v1038_v10 = vld [vmem:[%s1477_s0 + $0x48] sm:$0xff]   ;;  %v1039_v11 = vld [vmem:[%s1477_s0 + $0x50] sm:$0xff]  }
   0x5   :  { %v1040_v12 = vld [vmem:[%s1477_s0 + $0x58] sm:$0xff]   ;;  %v1041_v13 = vld [vmem:[%s1477_s0 + $0x60] sm:$0xff]   ;;  %v1042_v14 = vld [vmem:[%s1477_s0 + $0x68] sm:$0xff]  }
   0x6   :  { %996 = vmatmul.mubr.msk.bf16.vlgmr.msra.gmra.mxu0 %vm138_vm0, %v1030_v2  ;;  %v1043_v15 = vld [vmem:[%s1477_s0 + $0x70] sm:$0xff]   ;;  %v1044_v16 = vld [vmem:[%s1477_s0 + $0x78] sm:$0xff]   ;;  %v1146_v17 = vld [vmem:[%s1478_s2 + $0x1] sm:$0x1] }
   0x7   :  { %999 = vmatprep.mubr.msk.bf16.mxu0 %vm138_vm0, %v1031_v3  ;;  %991 = vmatprep.mubr.f32.mxu1 %v1146_v17  ;;  %v1152_v18 = vld [vmem:[%s1478_s2] ss:$0 sm:$0xff] }
   0xe   :  { %1000 = vmatmul.mubr.msk.bf16.gmra.mxu0 %vm138_vm0, %v1032_v4 }
   0xf   :  { %1003 = vmatprep.mubr.msk.bf16.mxu0 %vm138_vm0, %v1033_v5 }
  0x16   :  { %1004 = vmatmul.mubr.msk.bf16.gmra.mxu0 %vm138_vm0, %v1034_v6 }
  0x17   :  { %1007 = vmatprep.mubr.msk.bf16.mxu0 %vm138_vm0, %v1035_v7 }
  0x1e   :  { %1008 = vmatmul.mubr.msk.bf16.gmra.mxu0 %vm138_vm0, %v1036_v8 }
  0x1f   :  { %1011 = vmatprep.mubr.msk.bf16.mxu0 %vm138_vm0, %v1037_v9 }
  0x26   :  { %1012 = vmatmul.mubr.msk.bf16.gmra.mxu0 %vm138_vm0, %v1038_v10 }
  0x27   :  { %1015 = vmatprep.mubr.msk.bf16.mxu0 %vm138_vm0, %v1039_v11 }
  0x2e   :  { %1016 = vmatmul.mubr.msk.bf16.gmra.mxu0 %vm138_vm0, %v1040_v12 }
  0x2f   :  { %1019 = vmatprep.mubr.msk.bf16.mxu0 %vm138_vm0, %v1041_v13 }
  0x36   :  { %1020 = vmatmul.mubr.msk.bf16.gmra.mxu0 %vm138_vm0, %v1042_v14 }
  0x37   :  { %1023 = vmatprep.mubr.msk.bf16.mxu0 %vm138_vm0, %v1043_v15 }
  0x3e   :  { %1024 = vmatmul.mubr.msk.bf16.gmra.mxu0 %vm138_vm0, %v1044_v16 }
  0xc6   :  { %v1154_v19 = vpop.f32.mrf.mxu0 }
  0xc7   :  { %v515_v20 = vmul.f32 %v1154_v19, %v1152_v18 }
  0xc8   :  { %v1158_v21 = vpop.f32.mrf.mxu0 }
  0xc9   :  { %549 = vadd.xlane.f32.xlu1 %v515_v20  ;;  %v513_v22 = vmul.f32 %v1152_v18, %v1158_v21 }
  0xca   :  { %v1162_v23 = vpop.f32.mrf.mxu0 }
  0xcb   :  { %v855_v24 = vpack.c.bf16 %v1162_v23, %v1154_v19  ;;  %545 = vadd.xlane.f32.xlu0 %v513_v22  ;;  %v516_v25 = vmul.f32 %v1162_v23, %v1152_v18 }
  0xcc   :  { %v1168_v26 = vpop.f32.mrf.mxu0 }
  0xcd   :  { %927 = vst [vmem:[%s1479_s3 + $0x8] sm:$0xff] %v855_v24   ;;  %v850_v27 = vpack.c.bf16 %v1168_v26, %v1158_v21  ;;  %551 = vadd.xlane.f32.xlu1 %v516_v25  ;;  %v514_v28 = vmul.f32 %v1152_v18, %v1168_v26 }
  0xce   :  { %v1177_v29 = vpop.f32.mrf.mxu0 }
  0xcf   :  { %851 = vst [vmem:[%s1479_s3] sm:$0xff] %v850_v27   ;;  %547 = vadd.xlane.f32.xlu0 %v514_v28  ;;  %v519_v31 = vmul.f32 %v1177_v29, %v1152_v18 }
  0xd0   :  { %v1182_v30 = vpop.f32.mrf.mxu0 }
  0xd1   :  { %v517_v37 = vmul.f32 %v1152_v18, %v1182_v30 }
  0xd2   :  { %v1186_v32 = vpop.f32.mrf.mxu0 }
  0xd3   :  { %v865_v33 = vpack.c.bf16 %v1186_v32, %v1177_v29  ;;  %557 = vadd.xlane.f32.xlu0 %v519_v31  ;;  %v520_v34 = vmul.f32 %v1186_v32, %v1152_v18 }
  0xd4   :  { %v1192_v35 = vpop.f32.mrf.mxu0 }
  0xd5   :  { %929 = vst [vmem:[%s1479_s3 + $0x18] sm:$0xff] %v865_v33   ;;  %v860_v36 = vpack.c.bf16 %v1192_v35, %v1182_v30  ;;  %559 = vadd.xlane.f32.xlu1 %v520_v34  ;;  %v518_v39 = vmul.f32 %v1152_v18, %v1192_v35 }
  0xd6   :  { %v1201_v38 = vpop.f32.mrf.mxu0 }
  0xd7   :  { %928 = vst [vmem:[%s1479_s3 + $0x10] sm:$0xff] %v860_v36   ;;  %553 = vadd.xlane.f32.xlu0 %v517_v37  ;;  %v523_v41 = vmul.f32 %v1201_v38, %v1152_v18 }
  0xd8   :  { %v1208_v40 = vpop.f32.mrf.mxu0 }
  0xd9   :  { %555 = vadd.xlane.f32.xlu1 %v518_v39  ;;  %v521_v47 = vmul.f32 %v1152_v18, %v1208_v40 }
  0xda   :  { %v1212_v42 = vpop.f32.mrf.mxu0 }
  0xdb   :  { %v875_v43 = vpack.c.bf16 %v1212_v42, %v1201_v38  ;;  %565 = vadd.xlane.f32.xlu0 %v523_v41  ;;  %v524_v44 = vmul.f32 %v1212_v42, %v1152_v18 }
  0xdc   :  { %v1218_v45 = vpop.f32.mrf.mxu0 }
  0xdd   :  { %931 = vst [vmem:[%s1479_s3 + $0x28] sm:$0xff] %v875_v43   ;;  %v870_v46 = vpack.c.bf16 %v1218_v45, %v1208_v40  ;;  %567 = vadd.xlane.f32.xlu1 %v524_v44  ;;  %v522_v49 = vmul.f32 %v1152_v18, %v1218_v45 }
  0xde   :  { %v1227_v48 = vpop.f32.mrf.mxu0 }
  0xdf   :  { %930 = vst [vmem:[%s1479_s3 + $0x20] sm:$0xff] %v870_v46   ;;  %561 = vadd.xlane.f32.xlu0 %v521_v47  ;;  %v527_v51 = vmul.f32 %v1227_v48, %v1152_v18 }
  0xe0   :  { %v1234_v50 = vpop.f32.mrf.mxu0 }
  0xe1   :  { %563 = vadd.xlane.f32.xlu1 %v522_v49  ;;  %v525_v57 = vmul.f32 %v1152_v18, %v1234_v50 }
  0xe2   :  { %v1238_v52 = vpop.f32.mrf.mxu0 }
  0xe3   :  { %v885_v53 = vpack.c.bf16 %v1238_v52, %v1227_v48  ;;  %573 = vadd.xlane.f32.xlu0 %v527_v51  ;;  %v528_v54 = vmul.f32 %v1238_v52, %v1152_v18 }
  0xe4   :  { %v1244_v55 = vpop.f32.mrf.mxu0 }
  0xe5   :  { %933 = vst [vmem:[%s1479_s3 + $0x38] sm:$0xff] %v885_v53   ;;  %v880_v56 = vpack.c.bf16 %v1244_v55, %v1234_v50  ;;  %575 = vadd.xlane.f32.xlu1 %v528_v54  ;;  %v526_v59 = vmul.f32 %v1152_v18, %v1244_v55 }
  0xe6   :  { %v1253_v58 = vpop.f32.mrf.mxu0 }
  0xe7   :  { %932 = vst [vmem:[%s1479_s3 + $0x30] sm:$0xff] %v880_v56   ;;  %569 = vadd.xlane.f32.xlu0 %v525_v57  ;;  %v531_v61 = vmul.f32 %v1253_v58, %v1152_v18 }
  0xe8   :  { %v1260_v60 = vpop.f32.mrf.mxu0 }
  0xe9   :  { %571 = vadd.xlane.f32.xlu1 %v526_v59  ;;  %v529_v3 = vmul.f32 %v1152_v18, %v1260_v60 }
  0xea   :  { %v1264_v62 = vpop.f32.mrf.mxu0 }
  0xeb   :  { %v895_v63 = vpack.c.bf16 %v1264_v62, %v1253_v58  ;;  %581 = vadd.xlane.f32.xlu0 %v531_v61  ;;  %v532_v0 = vmul.f32 %v1264_v62, %v1152_v18 }
  0xec   :  { %v1270_v1 = vpop.f32.mrf.mxu0 }
  0xed   :  { %935 = vst [vmem:[%s1479_s3 + $0x48] sm:$0xff] %v895_v63   ;;  %v890_v2 = vpack.c.bf16 %v1270_v1, %v1260_v60  ;;  %583 = vadd.xlane.f32.xlu1 %v532_v0  ;;  %v530_v5 = vmul.f32 %v1152_v18, %v1270_v1 }
  0xee   :  { %v1279_v4 = vpop.f32.mrf.mxu0 }
  0xef   :  { %934 = vst [vmem:[%s1479_s3 + $0x40] sm:$0xff] %v890_v2   ;;  %577 = vadd.xlane.f32.xlu0 %v529_v3  ;;  %v535_v7 = vmul.f32 %v1279_v4, %v1152_v18  ;;  %v1045_v3 = vmov 1966171168  }
  0xf0   :  { %v1286_v6 = vpop.f32.mrf.mxu0 }
  0xf1   :  { %579 = vadd.xlane.f32.xlu1 %v530_v5  ;;  %v533_v13 = vmul.f32 %v1152_v18, %v1286_v6  ;;  %v720_v5 = vlaneseq }
  0xf2   :  { %v1018_v8 = vpop.f32.mrf.mxu0 }
  0xf3   :  { %v905_v9 = vpack.c.bf16 %v1018_v8, %v1279_v4  ;;  %589 = vadd.xlane.f32.xlu0 %v535_v7  ;;  %v536_v10 = vmul.f32 %v1018_v8, %v1152_v18  ;;  %v721_v7 = vshrl.u32 %v720_v5, 7  ;;  %vm734_vm2 = vcmp.lt.s32.totalorder %v720_v5, 256 }
  0xf4   :  { %v304_v11 = vpop.f32.mrf.mxu0 }
  0xf5   :  { %937 = vst [vmem:[%s1479_s3 + $0x58] sm:$0xff] %v905_v9   ;;  %v900_v12 = vpack.c.bf16 %v304_v11, %v1286_v6  ;;  %591 = vadd.xlane.f32.xlu1 %v536_v10  ;;  %v534_v15 = vmul.f32 %v1152_v18, %v304_v11 }
  0xf6   :  { %v1021_v14 = vpop.f32.mrf.mxu0 }
  0xf7   :  { %936 = vst [vmem:[%s1479_s3 + $0x50] sm:$0xff] %v900_v12   ;;  %585 = vadd.xlane.f32.xlu0 %v533_v13  ;;  %v539_v20 = vmul.f32 %v1021_v14, %v1152_v18 }
  0xf8   :  { %v317_v16 = vpop.f32.mrf.mxu0 }
  0xf9   :  { %587 = vadd.xlane.f32.xlu1 %v534_v15  ;;  %v537_v31 = vmul.f32 %v1152_v18, %v317_v16 }
  0xfa   :  { %v1022_v22 = vpop.f32.mrf.mxu0 }
  0xfb   :  { %v915_v24 = vpack.c.bf16 %v1022_v22, %v1021_v14  ;;  %597 = vadd.xlane.f32.xlu0 %v539_v20  ;;  %v540_v25 = vmul.f32 %v1022_v22, %v1152_v18 }
  0xfc   :  { %v320_v27 = vpop.f32.mrf.mxu0 }
  0xfd   :  { %939 = vst [vmem:[%s1479_s3 + $0x68] sm:$0xff] %v915_v24   ;;  %v910_v28 = vpack.c.bf16 %v320_v27, %v317_v16  ;;  %599 = vadd.xlane.f32.xlu1 %v540_v25  ;;  %v538_v34 = vmul.f32 %v1152_v18, %v320_v27 }
  0xfe   :  { %v1025_v33 = vpop.f32.mrf.mxu0 }
  0xff   :  { %938 = vst [vmem:[%s1479_s3 + $0x60] sm:$0xff] %v910_v28   ;;  %593 = vadd.xlane.f32.xlu0 %v537_v31  ;;  %v543_v46 = vmul.f32 %v1025_v33, %v1152_v18 }
 0x100   :  { %v333_v36 = vpop.f32.mrf.mxu0 }
 0x101   :  { %595 = vadd.xlane.f32.xlu1 %v538_v34  ;;  %v541_v37 = vmul.f32 %v1152_v18, %v333_v36 }
 0x102   :  { %v1026_v39 = vpop.f32.mrf.mxu0 }
 0x103   :  { %v925_v41 = vpack.c.bf16 %v1026_v39, %v1025_v33  ;;  %601 = vadd.xlane.f32.xlu0 %v541_v37  ;;  %959 = vmatprep.subr.mxu1 %v1026_v39  ;;  %v544_v49 = vmul.f32 %v1026_v39, %v1152_v18 }
 0x104   :  { %v336_v43 = vpop.f32.mrf.mxu0  ;;  %960 = vmatpush3.xpose.msra.mxu1 %v1238_v52 }
 0x105   :  { %941 = vst [vmem:[%s1479_s3 + $0x78] sm:$0xff] %v925_v41   ;;  %v920_v44 = vpack.c.bf16 %v336_v43, %v333_v36  ;;  %961 = vmatprep.subr.mxu1 %v1025_v33  ;;  %v542_v47 = vmul.f32 %v1152_v18, %v336_v43 }
 0x107   :  { %940 = vst [vmem:[%s1479_s3 + $0x70] sm:$0xff] %v920_v44   ;;  %605 = vadd.xlane.f32.xlu0 %v543_v46  ;;  %603 = vadd.xlane.f32.xlu1 %v542_v47 }
 0x108   :  { %962 = vmatpush3.xpose.msra.mxu1 %v1227_v48 }
 0x109   :  { %963 = vmatprep.subr.mxu1 %v336_v43 }
 0x10b   :  { %607 = vadd.xlane.f32.xlu1 %v544_v49 }
 0x10c   :  { %964 = vmatpush3.xpose.msra.mxu1 %v1244_v55 }
 0x10d   :  { %965 = vmatprep.subr.mxu1 %v333_v36 }
 0x110   :  { %966 = vmatpush3.xpose.msra.mxu1 %v1234_v50 }
 0x111   :  { %967 = vmatprep.subr.mxu1 %v1022_v22 }
 0x114   :  { %968 = vmatpush3.xpose.msra.mxu1 %v1212_v42 }
 0x115   :  { %969 = vmatprep.subr.mxu1 %v1021_v14 }
 0x118   :  { %970 = vmatpush3.xpose.msra.mxu1 %v1201_v38 }
 0x119   :  { %971 = vmatprep.subr.mxu1 %v320_v27 }
 0x11c   :  { %972 = vmatpush3.xpose.msra.mxu1 %v1218_v45 }
 0x11d   :  { %973 = vmatprep.subr.mxu1 %v317_v16 }
 0x120   :  { %974 = vmatpush3.xpose.msra.mxu1 %v1208_v40 }
 0x121   :  { %975 = vmatprep.subr.mxu1 %v1018_v8 }
 0x124   :  { %976 = vmatpush3.xpose.msra.mxu1 %v1186_v32 }
 0x125   :  { %977 = vmatprep.subr.mxu1 %v1279_v4  ;;  %v718_v4 = vunpack.c.l.s4 %v1045_v3 }
 0x128   :  { %978 = vmatpush3.xpose.msra.mxu1 %v1177_v29 }
 0x129   :  { %979 = vmatprep.subr.mxu1 %v304_v11 }
 0x12c   :  { %980 = vmatpush3.xpose.msra.mxu1 %v1192_v35 }
 0x12d   :  { %981 = vmatprep.subr.mxu1 %v1286_v6  ;;  %v719_v6 = vunpack.c.0.s8 %v718_v4 }
 0x12f   :  { %v722_v9 = vsub.s32 %v719_v6, %v721_v7 }
 0x130   :  { %982 = vmatpush3.xpose.msra.mxu1 %v1182_v30 }
 0x131   :  { %983 = vmatprep.subr.mxu1 %v1264_v62 }
 0x134   :  { %984 = vmatpush3.xpose.msra.mxu1 %v1162_v23 }
 0x135   :  { %985 = vmatprep.subr.mxu1 %v1253_v58 }
 0x138   :  { %986 = vmatpush3.xpose.msra.mxu1 %v1154_v19 }
 0x139   :  { %987 = vmatprep.subr.mxu1 %v1270_v1 }
 0x13c   :  { %988 = vmatpush3.xpose.msra.mxu1 %v1168_v26 }
 0x13d   :  { %989 = vmatprep.subr.mxu1 %v1260_v60 }
 0x140   :  { %990 = vmatpush3.xpose.msra.mxu1 %v1158_v21 }
 0x143   :  { %992 = vmatmul.mubr.f32.vlgmr.msra.gmra.mxu1 %v1146_v17 }
 0x152   :  { %v550_v18 = vpop.xlane.xlu1 %549 }
 0x153   :  { %612 = vst.msk [vmem:[%s1480_s4 + $0x10] sm:$0xff] %vm609_vm1, %v550_v18 }
 0x154   :  { %v546_v23 = vpop.xlane.xlu0 %545 }
 0x155   :  { %610 = vst.msk [vmem:[%s1480_s4] sm:$0xff] %vm609_vm1, %v546_v23 }
 0x156   :  { %v552_v19 = vpop.xlane.xlu1 %551 }
 0x157   :  { %613 = vst.msk [vmem:[%s1480_s4 + $0x18] sm:$0xff] %vm609_vm1, %v552_v19 }
 0x158   :  { %v548_v17 = vpop.xlane.xlu0 %547 }
 0x159   :  { %611 = vst.msk [vmem:[%s1480_s4 + $0x8] sm:$0xff] %vm609_vm1, %v548_v17 }
 0x15c   :  { %v558_v21 = vpop.xlane.xlu0 %557 }
 0x15d   :  { %616 = vst.msk [vmem:[%s1480_s4 + $0x30] sm:$0xff] %vm609_vm1, %v558_v21 }
 0x15e   :  { %v560_v26 = vpop.xlane.xlu1 %559 }
 0x15f   :  { %617 = vst.msk [vmem:[%s1480_s4 + $0x38] sm:$0xff] %vm609_vm1, %v560_v26 }
 0x160   :  { %v554_v29 = vpop.xlane.xlu0 %553 }
 0x161   :  { %614 = vst.msk [vmem:[%s1480_s4 + $0x20] sm:$0xff] %vm609_vm1, %v554_v29 }
 0x162   :  { %v556_v30 = vpop.xlane.xlu1 %555 }
 0x163   :  { %615 = vst.msk [vmem:[%s1480_s4 + $0x28] sm:$0xff] %vm609_vm1, %v556_v30 }
 0x164   :  { %v566_v32 = vpop.xlane.xlu0 %565 }
 0x165   :  { %620 = vst.msk [vmem:[%s1480_s4 + $0x50] sm:$0xff] %vm609_vm1, %v566_v32 }
 0x166   :  { %v568_v35 = vpop.xlane.xlu1 %567 }
 0x167   :  { %621 = vst.msk [vmem:[%s1480_s4 + $0x58] sm:$0xff] %vm609_vm1, %v568_v35 }
 0x168   :  { %v562_v38 = vpop.xlane.xlu0 %561 }
 0x169   :  { %618 = vst.msk [vmem:[%s1480_s4 + $0x40] sm:$0xff] %vm609_vm1, %v562_v38 }
 0x16a   :  { %v564_v40 = vpop.xlane.xlu1 %563 }
 0x16b   :  { %619 = vst.msk [vmem:[%s1480_s4 + $0x48] sm:$0xff] %vm609_vm1, %v564_v40 }
 0x16c   :  { %v574_v42 = vpop.xlane.xlu0 %573 }
 0x16d   :  { %624 = vst.msk [vmem:[%s1480_s4 + $0x70] sm:$0xff] %vm609_vm1, %v574_v42 }
 0x16e   :  { %v576_v45 = vpop.xlane.xlu1 %575 }
 0x16f   :  { %625 = vst.msk [vmem:[%s1480_s4 + $0x78] sm:$0xff] %vm609_vm1, %v576_v45 }
 0x170   :  { %v570_v48 = vpop.xlane.xlu0 %569 }
 0x171   :  { %622 = vst.msk [vmem:[%s1480_s4 + $0x60] sm:$0xff] %vm609_vm1, %v570_v48 }
 0x172   :  { %v572_v50 = vpop.xlane.xlu1 %571 }
 0x173   :  { %623 = vst.msk [vmem:[%s1480_s4 + $0x68] sm:$0xff] %vm609_vm1, %v572_v50 }
 0x174   :  { %v582_v51 = vpop.xlane.xlu0 %581 }
 0x175   :  { %628 = vst.msk [vmem:[%s1480_s4 + $0x90] sm:$0xff] %vm609_vm1, %v582_v51 }
 0x176   :  { %v584_v52 = vpop.xlane.xlu1 %583 }
 0x177   :  { %629 = vst.msk [vmem:[%s1480_s4 + $0x98] sm:$0xff] %vm609_vm1, %v584_v52 }
 0x178   :  { %v578_v53 = vpop.xlane.xlu0 %577 }
 0x179   :  { %626 = vst.msk [vmem:[%s1480_s4 + $0x80] sm:$0xff] %vm609_vm1, %v578_v53 }
 0x17a   :  { %v580_v54 = vpop.xlane.xlu1 %579 }
 0x17b   :  { %627 = vst.msk [vmem:[%s1480_s4 + $0x88] sm:$0xff] %vm609_vm1, %v580_v54 }
 0x17c   :  { %v590_v55 = vpop.xlane.xlu0 %589 }
 0x17d   :  { %632 = vst.msk [vmem:[%s1480_s4 + $0xb0] sm:$0xff] %vm609_vm1, %v590_v55 }
 0x17e   :  { %v592_v56 = vpop.xlane.xlu1 %591 }
 0x17f   :  { %633 = vst.msk [vmem:[%s1480_s4 + $0xb8] sm:$0xff] %vm609_vm1, %v592_v56 }
 0x180   :  { %v586_v57 = vpop.xlane.xlu0 %585 }
 0x181   :  { %630 = vst.msk [vmem:[%s1480_s4 + $0xa0] sm:$0xff] %vm609_vm1, %v586_v57 }
 0x182   :  { %v588_v58 = vpop.xlane.xlu1 %587 }
 0x183   :  { %631 = vst.msk [vmem:[%s1480_s4 + $0xa8] sm:$0xff] %vm609_vm1, %v588_v58 }
 0x184   :  { %v598_v59 = vpop.xlane.xlu0 %597 }
 0x185   :  { %636 = vst.msk [vmem:[%s1480_s4 + $0xd0] sm:$0xff] %vm609_vm1, %v598_v59 }
 0x186   :  { %v600_v60 = vpop.xlane.xlu1 %599 }
 0x187   :  { %637 = vst.msk [vmem:[%s1480_s4 + $0xd8] sm:$0xff] %vm609_vm1, %v600_v60 }
 0x188   :  { %v594_v61 = vpop.xlane.xlu0 %593 }
 0x189   :  { %634 = vst.msk [vmem:[%s1480_s4 + $0xc0] sm:$0xff] %vm609_vm1, %v594_v61 }
 0x18a   :  { %v596_v62 = vpop.xlane.xlu1 %595 }
 0x18b   :  { %635 = vst.msk [vmem:[%s1480_s4 + $0xc8] sm:$0xff] %vm609_vm1, %v596_v62 }
 0x18c   :  { %v602_v63 = vpop.xlane.xlu0 %601 }
 0x18d   :  { %638 = vst.msk [vmem:[%s1480_s4 + $0xe0] sm:$0xff] %vm609_vm1, %v602_v63 }
 0x190   :  { %v606_v0 = vpop.xlane.xlu0 %605  ;;  %v604_v1 = vpop.xlane.xlu1 %603 }
 0x191   :  { %640 = vst.msk [vmem:[%s1480_s4 + $0xf0] sm:$0xff] %vm609_vm1, %v606_v0  ;;  %639 = vst.msk [vmem:[%s1480_s4 + $0xe8] sm:$0xff] %vm609_vm1, %v604_v1 }
 0x194   :  { %v608_v2 = vpop.xlane.xlu1 %607 }
 0x195   :  { %641 = vst.msk [vmem:[%s1480_s4 + $0xf8] sm:$0xff] %vm609_vm1, %v608_v2 }
 0x203   :  { %v709_v8 = vpop.f32.mrf.mxu1 }
 0x205   :  { %v711_v10 = vpop.f32.mrf.mxu1 }
 0x206   :  { %v716_v11 = vcombine.low %v709_v8, %v711_v10 }
 0x208   :  { %v723_v12 = vrot.slane %v716_v11, %v722_v9 }
 0x20a   :  { %v730_v13 = vrot.slane %v723_v12, %v722_v9 }
 0x20c   :  { %736 = vst.msk [vmem:[%s1481_s5] sm:$0x3] %vm734_vm2, %v730_v13 }

// kernel: gat_layer_forward.3
= control target key start
LH: loop header
LB: loop body
LE: loop exit
PB: predicated region body
PF: predicated region fallthrough
CT: control target
= control target key end

     0   :  { %s6195_s0 = inlined_call_operand.vmem [shape: f32[16], index: 0, kind: input, shape index: {}]   ;;  %s6196_s1 = inlined_call_operand.vmem [shape: f32[256,1], index: 1, kind: input, shape index: {}]   ;;  %s6197_s2 = inlined_call_operand.vmem [shape: f32[1,256], index: 2, kind: input, shape index: {}]   ;;  %s6198_s3 = inlined_call_operand.hbm [shape: bf16[16,256,256], index: 3, kind: input, shape index: {}]   ;;  %s6199_s4 = inlined_call_operand.vmem [shape: bf16[256,256], index: 4, kind: input, shape index: {}]   ;;  %s6200_s5 = inlined_call_operand.vmem [shape: bf16[256,128], index: 5, kind: input, shape index: {}]   ;;  %s6201_s6 = inlined_call_operand.hbm [shape: f32[256,128], index: 6, kind: output, shape index: {}]  }
   0x1   :  { %6227 = sst [smem:[#allocation34_spill]] %s6195_s0 }
   0x2   :  { %6228 = sst [smem:[#allocation35_spill]] %s6198_s3 }
   0x3   :  { %6229 = sst [smem:[#allocation36_spill]] %s6201_s6 }
   0x4   :  { %11 = vsyncpa [#allocation8], 0 }
   0x5   :  { %12 = vsyncpa [#allocation6], 0 }
   0x6   :  { %14 = vsyncpa [#allocation6 + $0x1], 0 }
   0x7   :  { %15 = vsyncpa [#allocation7], 0 }
   0x8   :  { %17 = vsyncpa [#allocation7 + $0x1], 0  ;;  %s4333_s21 = smov 0   ;;  %s4335_s22 = smov 0  }
   0x9   :  { %s4337_s23 = smov 0   ;;  %s4339_s24 = smov 0  }
   0xa   :  { %s4341_s25 = smov 0   ;;  %s4343_s26 = smov 0  }
   0xb   :  { %s4345_s27 = smov 0   ;;  %s4347_s28 = smov 0  }
   0xc   :  { %s4349_s29 = smov 0   ;;  %s4351_s30 = smov 0  }
   0xd   :  { %s4353_s7 = smov 0  }
   0xe LB: > { %6230 = sst [smem:[#allocation18_spill]] %s4249_s23  ;;  %s2865_s8 = sadd.s32 4294967295, %s4281_s7   ;;  %s4281_s7 = sphi %s4353_s7, %s23_s7   ;;  %s4277_s30 = sphi %s4351_s30, %s6322_s30   ;;  %s4273_s29 = sphi %s4349_s29, %s6321_s29   ;;  %s4269_s28 = sphi %s4347_s28, %s6313_s28   ;;  %s4265_s27 = sphi %s4345_s27, %s6320_s27   ;;  %s4261_s26 = sphi %s4343_s26, %s6312_s26   ;;  %s4257_s25 = sphi %s4341_s25, %s6319_s25   ;;  %s4253_s24 = sphi %s4339_s24, %s6318_s24   ;;  %s4249_s23 = sphi %s4337_s23, %s6310_s23   ;;  %s4245_s22 = sphi %s4335_s22, %s6317_s22   ;;  %s4241_s21 = sphi %s4333_s21, %s6316_s21  }
   0xf   : > { %6231 = sst [smem:[#allocation19_spill]] %s4261_s26  ;;  %s2866_s9 = sadd.s32 4294967294, %s4281_s7  }
  0x10   : > { %6232 = sst [smem:[#allocation20_spill]] %s4277_s30  ;;  %s32_s10 = sadd.s32 1, %s4273_s29 }
  0x11   : > { %s35_s11 = sadd.s32 1, %s4277_s30  ;;  %p33_p0 = scmp.ge.s32.totalorder %s32_s10, 2 }
  0x12   : > { %s117_s12 = sadd.s32 1, %s4261_s26  ;;  %p124_p1 = scmp.ne.s32.totalorder %s4261_s26, %s4257_s25 }
  0x13   : > { %p125_p2 = scmp.eq.s32.totalorder %s4281_s7, 0  ;;  %s6324_s10 = smov (%p33_p0, %s32_s10), 0 }
  0x14   : > { %6233 = sst [smem:[#allocation21_spill]] %s6324_s10  ;;  %s6326_s11 = smov (!%p33_p0, %s35_s11), %s4277_s30 }
  0x15   : > { %s113_s13 = ssub.s32 %s4273_s29, %s6324_s10  ;;  %p4399_p3 = por %p125_p2, %p124_p1 }
  0x16   : > { %p37_p4 = scmp.ge.s32.totalorder %s6326_s11, 2  ;;  %p130_p5 = scmp.ne.s32.totalorder %s4257_s25, %s4253_s24 }
  0x17   : > { %p4404_p6 = scmp.eq.s32.totalorder %s2865_s8, 0  ;;  %s197_s16 = sadd.s32 1, %s4249_s23 }
  0x18   : > { %s6328_s11 = smov (%p37_p4, %s6326_s11), 0  ;;  %p207_p8 = scmp.ne.s32.totalorder %s4249_s23, %s4245_s22 }
  0x19   : > { %6236 = sst [smem:[#allocation22_spill]] %s6328_s11  ;;  %p4413_p7 = por %p4404_p6, %p130_p5 }
  0x1a   : > { %s112_s18 = ssub.s32 %s4277_s30, %s6328_s11  ;;  %p208_p9 = scmp.eq.s32.totalorder %s2865_s8, 3 }
  0x1b   : > { %s6237_s17 = scalar_select %p4413_p7, 1, 0 }
  0x1c   : > { %s114_s19 = sor.u32 %s113_s13, %s112_s18  ;;  %p195_p10 = scmp.eq.s32.totalorder %s112_s18, 0 }
  0x1d   : > { %p115_p11 = scmp.eq.s32.totalorder %s114_s19, 0  ;;  %p4421_p12 = por %p208_p9, %p207_p8 }
  0x1e   : > { %s4426_s24 = scalar_select %p195_p10, %s4249_s23, %s197_s16  }
  0x1f   : > { %s6238_s20 = scalar_select %p4421_p12, 1, 0 }
  0x20   : > { %6239 = sst [smem:[#allocation23_spill]] %s4426_s24  ;;  %p213_p13 = scmp.ne.s32.totalorder %s4245_s22, %s4241_s21 }
  0x21   : > { %s4429_s10 = scalar_select %p115_p11, %s4261_s26, %s117_s12  }
  0x22   : > { %p214_p0 = scmp.eq.s32.totalorder %s2866_s9, 3  ;;  %p2867_p1 = scmp.ge.s32.totalorder %s4281_s7, 1 }
  0x23   : > { %6240 = sst [smem:[#allocation24_spill]] %s4429_s10  ;;  %p221_p2 = scmp.lt.s32.totalorder %s4281_s7, 5 }
  0x24   : > { %p4435_p4 = por %p214_p0, %p213_p13  ;;  %s6244_s0 = sld [smem:[#allocation34_spill]] }
  0x25   : > { %p4439_p5 = pnand %p2867_p1, %p221_p2 }
  0x26   : > { %s6241_s6 = scalar_select %p4435_p4, 1, 0 }
  0x27   : > { %p3920_p8 = pneg %p4439_p5 }
  0x28   : > { %6242 = sst [smem:[#allocation25_spill]] %s6241_s6 }
  0x29   : > { %p3921_p9 = pnand %p3920_p8, %p4404_p6 }
  0x2a   : > { %s234_s16 = sshll.u32 %s6244_s0, 4  ;;  %s235_s16 = int_to_ptr.vmem [resolvable:$true] %s234_s16 }
  0x2b   : > { %s4142_s9 = scalar_lea.vmem %s235_s16, 16  ;;  %p4144_p11 = pneg %p3921_p9 }
  0x2c   : > { %p4143_p10 = scmp.ne.s32.totalorder %s235_s16, %s4142_s9  ;;  %p4150_p4 = scmp.lt.s32.totalorder %s235_s16, %s235_s16 }
  0x2d   : > { %p4151_p1 = scmp.lt.s32.totalorder %s4142_s9, %s4142_s9 }
  0x2e   : > { %p4145_p13 = pnand %p4144_p11, %p4143_p10 }
  0x2f   : > { %p4152_p2 = por %p4151_p1, %p4150_p4 }
  0x30   : > { %p4146_p0 = pneg %p4145_p13 }
  0x32   : > { %p4153_p12 = pnand %p4152_p2, %p4146_p0 }
  0x34   : > { %4156 = shalt.err (!%p4153_p12)
}
  0x35   : > { %s4283_s12 = smov [#allocation5]   ;;  %p2869_p7 = scmp.ge.s32.totalorder %s4281_s7, 4 }
  0x36   : > { %3923 = dma.vmem_to_smem (!%p3921_p9), %s235_s16, 16, %s4283_s12, [#allocation8]  }
  0x37   : > { %241 = sbr.rel (%p2869_p7) target bundleno = 89 (0x59), region = 20 }
  0x3c   : > { %s4452_s19 = sand.u32 1, %s4261_s26   ;;  %s3160_s13 = sshll.u32 %s4277_s30, 5 }
  0x3d   : > { %s2870_s18 = sshll.u32 %s4452_s19, 10  ;;  %s4457_s9 = sadd.s32 %s4273_s29, %s3160_s13 }
  0x3e   : > { %s2873_s16 = sshll.u32 %s4457_s9, 6  ;;  %s6245_s3 = sld [smem:[#allocation35_spill]] }
  0x3f   : > { %s264_s10 = scalar_lea.vmem [#allocation9], %s2870_s18  ;;  %s4284_s6 = smov 4096  }
  0x40   : > { %s285_s24 = sshll.u32 %s264_s10, 4  ;;  %3908 = sst [smem:[#allocation13]] (%p4399_p3), %s4284_s6  ;;  %s286_s24 = int_to_ptr.vmem [resolvable:$true] %s285_s24 }
  0x41   : > { %s3907_s23 = scalar_select %p4399_p3, [#allocation0], [#allocation14] }
  0x42   : > { %s4285_s13 = smov 1024   ;;  %s4286_s30 = smov 16  }
  0x43   : > { %s277_s26 = sld [smem:[%s3907_s23]]   ;;  %s4287_s0 = smov 128  }
  0x44   : > { %s272_s11 = scalar_lea.hbm %s6245_s3, %s2873_s16  ;;  %3909 = sst [smem:[#allocation13 + $0x1]] (%p4399_p3), %s4285_s13 }
  0x45   : > { %3910 = sst [smem:[#allocation13 + $0x2]] (%p4399_p3), %s4286_s30  ;;  %s4288_s10 = smov 64  }
  0x46   : > { %3911 = sst [smem:[#allocation13 + $0x3]] (%p4399_p3), %s4287_s0  ;;  %s4289_s23 = smov 4  }
  0x47   : > { %3912 = sst [smem:[#allocation13 + $0x4]] (%p4399_p3), %s4288_s10  ;;  %s261_s6 = scalar_lea.sflag [#allocation6], %s4452_s19 }
  0x48   : > { %3913 = sst [smem:[#allocation13 + $0x5]] (%p4399_p3), %s4289_s23  ;;  %s4290_s12 = smov 131072  }
  0x49   : > { %s2874_s18 = sshll.u32 %s277_s26, 26  ;;  %307 = sbr.rel (!%p4399_p3) target bundleno = 89 (0x59), region = 36 }
  0x4a   : > { %s2875_s16 = sadd.s32 134217728, %s2874_s18  ;;  %s2876_s30 = sshll.u32 (%p4399_p3), %s4452_s19, 6 }
  0x4b   : > { %3914 = dma.general (%p4399_p3), %s272_s11, 16384, %s286_s24, %s261_s6, %s4290_s12, [#allocation13], %s2875_s16, 0  }
  0x4c   : > { %s2879_s13 = sshll.u32 (%p4399_p3), %s4457_s9, 2  ;;  %s311_s26 = scalar_lea.vmem (%p4399_p3), [#allocation10], %s2876_s30 }
  0x4d   : > { %s4487_s10 = scalar_lea.vmem (%p4399_p3), %s6199_s4, %s2879_s13 }
  0x4e   : > { %v333_v0 = vld [vmem:[%s4487_s10] sm:$0xf]  ;;  %v335_v1 = vld [vmem:[%s4487_s10 + $0x8] sm:$0xf]  ;;  %v337_v2 = vld [vmem:[%s4487_s10 + $0x10] sm:$0xf] }
  0x4f   : > { %334 = vst [vmem:[%s311_s26] sm:$0xf] %v333_v0  ;;  %336 = vst [vmem:[%s311_s26 + $0x4] sm:$0xf] %v335_v1  ;;  %v339_v3 = vld [vmem:[%s4487_s10 + $0x18] sm:$0xf] }
  0x50   : > { %338 = vst [vmem:[%s311_s26 + $0x8] sm:$0xf] %v337_v2  ;;  %v341_v4 = vld [vmem:[%s4487_s10 + $0x20] sm:$0xf]  ;;  %v343_v5 = vld [vmem:[%s4487_s10 + $0x28] sm:$0xf] }
  0x51   : > { %340 = vst [vmem:[%s311_s26 + $0xc] sm:$0xf] %v339_v3  ;;  %342 = vst [vmem:[%s311_s26 + $0x10] sm:$0xf] %v341_v4  ;;  %v345_v6 = vld [vmem:[%s4487_s10 + $0x30] sm:$0xf] }
  0x52   : > { %344 = vst [vmem:[%s311_s26 + $0x14] sm:$0xf] %v343_v5  ;;  %v347_v7 = vld [vmem:[%s4487_s10 + $0x38] sm:$0xf]  ;;  %v349_v8 = vld [vmem:[%s4487_s10 + $0x40] sm:$0xf] }
  0x53   : > { %346 = vst [vmem:[%s311_s26 + $0x18] sm:$0xf] %v345_v6  ;;  %348 = vst [vmem:[%s311_s26 + $0x1c] sm:$0xf] %v347_v7  ;;  %v351_v9 = vld [vmem:[%s4487_s10 + $0x48] sm:$0xf] }
  0x54   : > { %350 = vst [vmem:[%s311_s26 + $0x20] sm:$0xf] %v349_v8  ;;  %v353_v10 = vld [vmem:[%s4487_s10 + $0x50] sm:$0xf]  ;;  %v355_v11 = vld [vmem:[%s4487_s10 + $0x58] sm:$0xf] }
  0x55   : > { %352 = vst [vmem:[%s311_s26 + $0x24] sm:$0xf] %v351_v9  ;;  %354 = vst [vmem:[%s311_s26 + $0x28] sm:$0xf] %v353_v10  ;;  %v357_v12 = vld [vmem:[%s4487_s10 + $0x60] sm:$0xf] }
  0x56   : > { %356 = vst [vmem:[%s311_s26 + $0x2c] sm:$0xf] %v355_v11  ;;  %v359_v13 = vld [vmem:[%s4487_s10 + $0x68] sm:$0xf]  ;;  %v361_v14 = vld [vmem:[%s4487_s10 + $0x70] sm:$0xf] }
  0x57   : > { %358 = vst [vmem:[%s311_s26 + $0x30] sm:$0xf] %v357_v12  ;;  %360 = vst [vmem:[%s311_s26 + $0x34] sm:$0xf] %v359_v13  ;;  %v363_v15 = vld [vmem:[%s4487_s10 + $0x78] sm:$0xf] }
  0x58   : > { %362 = vst [vmem:[%s311_s26 + $0x38] sm:$0xf] %v361_v14  ;;  %364 = vst [vmem:[%s311_s26 + $0x3c] sm:$0xf] %v363_v15 }
  0x59 PF: > { %432 = sbr.rel (%p4439_p5) target bundleno = 1072 (0x430), region = 81 }
  0x5e   : > { %4228 = dma.done.wait (%p4404_p6), [#allocation8], 16  }
  0x5f   : > { %4230 = vsyncadd (%p4404_p6), [#allocation8], 4294967280  ;;  %s438_s3 = sand.u32 1, %s4257_s25   ;;  %p6246_p3 = scmp.ne.s32.totalorder %s6237_s17, 0 }
  0x60   : > { %s2882_s11 = sshll.u32 %s438_s3, 10  ;;  %s439_s14 = scalar_lea.sflag [#allocation6], %s438_s3 }
  0x61   : > { %s4512_s24 = scalar_lea.vmem [#allocation9], %s2882_s11 }
  0x62   : > { %4232 = dma.done.wait (%p6246_p3), %s439_s14, 16384  }
  0x63   : > { %4234 = vsyncadd (%p6246_p3), %s439_s14, 4294950912  ;;  %s2883_s8 = sshll.u32 %s438_s3, 6 }
  0x64   : > { %s4518_s19 = scalar_lea.vmem [#allocation10], %s2883_s8 }
  0x65   : > { %454 = sfence }
  0x66   : > { %s493_s15 = sand.u32 1, %s4245_s22   ;;  %s2885_s9 = sshll.u32 %s4269_s28, 4 }
  0x67   : > { %s2884_s18 = sshll.u32 %s493_s15, 7  ;;  %p497_p6 = scmp.lt.s32.totalorder %s2885_s9, 31 }
  0x68   : > { %p502_p7 = scmp.lt.s32.totalorder %s4265_s27, 1  ;;  %s2887_s16 = sshll.u32 %s4265_s27, 4 }
  0x69   : > { %s6330_s9 = smov (!%p497_p6, %s2885_s9), 31  ;;  %p508_p12 = scmp.lt.s32.totalorder %s2887_s16, 31 }
  0x6a   : > { %s503_s23 = scalar_select %p502_p7, %s4265_s27, 1 }
  0x6b   : > { %s2886_s17 = sshll.u32 %s6330_s9, 3  ;;  %s6332_s16 = smov (!%p508_p12, %s2887_s16), 31 }
  0x6c   : > { %s4530_s30 = scalar_lea.vmem %s6196_s1, %s2886_s17  ;;  %s4535_s10 = scalar_lea.vmem %s6197_s2, %s503_s23 }
  0x6d   : > { %s2888_s26 = sshll.u32 %s6332_s16, 2  ;;  %s4542_s8 = scalar_lea.vmem [#allocation11], %s2884_s18 }
  0x6e   : > { %s4540_s14 = scalar_lea.vmem %s6200_s5, %s2888_s26  ;;  %p2889_p4 = scmp.ne.s32.totalorder %s4265_s27, 0 }
  0x70   : > { %518 = sbr.rel (%p2889_p4) target bundleno = 142 (0x8e), region = 97 }
  0x75   : > { %vm519_vm0 = vcmask 7168   ;;  %v4291_v16 = vmov -inf   ;;  %v4292_v17 = vmov 0.0  }
  0x76   : > { %520 = vst.msk [vmem:[#allocation2] sm:$0xff] %vm519_vm0, %v4291_v16  ;;  %521 = vst.msk [vmem:[#allocation2 + $0x8] sm:$0xff] %vm519_vm0, %v4291_v16 }
  0x77   : > { %522 = vst.msk [vmem:[#allocation2 + $0x10] sm:$0xff] %vm519_vm0, %v4291_v16  ;;  %523 = vst.msk [vmem:[#allocation2 + $0x18] sm:$0xff] %vm519_vm0, %v4291_v16 }
  0x78   : > { %524 = vst.msk [vmem:[#allocation2 + $0x20] sm:$0xff] %vm519_vm0, %v4291_v16  ;;  %525 = vst.msk [vmem:[#allocation2 + $0x28] sm:$0xff] %vm519_vm0, %v4291_v16 }
  0x79   : > { %526 = vst.msk [vmem:[#allocation2 + $0x30] sm:$0xff] %vm519_vm0, %v4291_v16  ;;  %527 = vst.msk [vmem:[#allocation2 + $0x38] sm:$0xff] %vm519_vm0, %v4291_v16 }
  0x7a   : > { %528 = vst.msk [vmem:[#allocation2 + $0x40] sm:$0xff] %vm519_vm0, %v4291_v16  ;;  %529 = vst.msk [vmem:[#allocation2 + $0x48] sm:$0xff] %vm519_vm0, %v4291_v16 }
  0x7b   : > { %530 = vst.msk [vmem:[#allocation2 + $0x50] sm:$0xff] %vm519_vm0, %v4291_v16  ;;  %531 = vst.msk [vmem:[#allocation2 + $0x58] sm:$0xff] %vm519_vm0, %v4291_v16 }
  0x7c   : > { %532 = vst.msk [vmem:[#allocation2 + $0x60] sm:$0xff] %vm519_vm0, %v4291_v16  ;;  %533 = vst.msk [vmem:[#allocation2 + $0x68] sm:$0xff] %vm519_vm0, %v4291_v16 }
  0x7d   : > { %534 = vst.msk [vmem:[#allocation2 + $0x70] sm:$0xff] %vm519_vm0, %v4291_v16  ;;  %535 = vst.msk [vmem:[#allocation2 + $0x78] sm:$0xff] %vm519_vm0, %v4291_v16 }
  0x7e   : > { %536 = vst.msk [vmem:[#allocation3] sm:$0xff] %vm519_vm0, %v4292_v17  ;;  %537 = vst.msk [vmem:[#allocation3 + $0x8] sm:$0xff] %vm519_vm0, %v4292_v17 }
  0x7f   : > { %538 = vst.msk [vmem:[#allocation3 + $0x10] sm:$0xff] %vm519_vm0, %v4292_v17  ;;  %539 = vst.msk [vmem:[#allocation3 + $0x18] sm:$0xff] %vm519_vm0, %v4292_v17 }
  0x80   : > { %540 = vst.msk [vmem:[#allocation3 + $0x20] sm:$0xff] %vm519_vm0, %v4292_v17  ;;  %541 = vst.msk [vmem:[#allocation3 + $0x28] sm:$0xff] %vm519_vm0, %v4292_v17 }
  0x81   : > { %542 = vst.msk [vmem:[#allocation3 + $0x30] sm:$0xff] %vm519_vm0, %v4292_v17  ;;  %543 = vst.msk [vmem:[#allocation3 + $0x38] sm:$0xff] %vm519_vm0, %v4292_v17 }
  0x82   : > { %544 = vst.msk [vmem:[#allocation3 + $0x40] sm:$0xff] %vm519_vm0, %v4292_v17  ;;  %545 = vst.msk [vmem:[#allocation3 + $0x48] sm:$0xff] %vm519_vm0, %v4292_v17 }
  0x83   : > { %546 = vst.msk [vmem:[#allocation3 + $0x50] sm:$0xff] %vm519_vm0, %v4292_v17  ;;  %547 = vst.msk [vmem:[#allocation3 + $0x58] sm:$0xff] %vm519_vm0, %v4292_v17 }
  0x84   : > { %548 = vst.msk [vmem:[#allocation3 + $0x60] sm:$0xff] %vm519_vm0, %v4292_v17  ;;  %549 = vst.msk [vmem:[#allocation3 + $0x68] sm:$0xff] %vm519_vm0, %v4292_v17 }
  0x85   : > { %550 = vst.msk [vmem:[#allocation3 + $0x70] sm:$0xff] %vm519_vm0, %v4292_v17  ;;  %551 = vst.msk [vmem:[#allocation3 + $0x78] sm:$0xff] %vm519_vm0, %v4292_v17 }
  0x86   : > { %552 = vst [vmem:[#allocation4 + $0x30] sm:$0xff] %v4292_v17  ;;  %553 = vst [vmem:[#allocation4] sm:$0xff] %v4292_v17 }
  0x87   : > { %554 = vst [vmem:[#allocation4 + $0x58] sm:$0xff] %v4292_v17  ;;  %555 = vst [vmem:[#allocation4 + $0x18] sm:$0xff] %v4292_v17 }
  0x88   : > { %556 = vst [vmem:[#allocation4 + $0x50] sm:$0xff] %v4292_v17  ;;  %557 = vst [vmem:[#allocation4 + $0x68] sm:$0xff] %v4292_v17 }
  0x89   : > { %558 = vst [vmem:[#allocation4 + $0x8] sm:$0xff] %v4292_v17  ;;  %559 = vst [vmem:[#allocation4 + $0x48] sm:$0xff] %v4292_v17 }
  0x8a   : > { %560 = vst [vmem:[#allocation4 + $0x40] sm:$0xff] %v4292_v17  ;;  %561 = vst [vmem:[#allocation4 + $0x20] sm:$0xff] %v4292_v17 }
  0x8b   : > { %562 = vst [vmem:[#allocation4 + $0x10] sm:$0xff] %v4292_v17  ;;  %563 = vst [vmem:[#allocation4 + $0x38] sm:$0xff] %v4292_v17 }
  0x8c   : > { %564 = vst [vmem:[#allocation4 + $0x60] sm:$0xff] %v4292_v17  ;;  %565 = vst [vmem:[#allocation4 + $0x70] sm:$0xff] %v4292_v17 }
  0x8d   : > { %566 = vst [vmem:[#allocation4 + $0x78] sm:$0xff] %v4292_v17  ;;  %567 = vst [vmem:[#allocation4 + $0x28] sm:$0xff] %v4292_v17 }
  0x8e PF: > { %v1631_v18 = vld [vmem:[%s4530_s30 + $0x40] sm:$0xff]  ;;  %s568_s9 = sld [smem:[#allocation5]]  ;;  %v4293_v20 = vmov 0   ;;  %v1632_v21 = vld [vmem:[%s4530_s30 + $0x48] sm:$0xff]  ;;  %v1626_v23 = vld [vmem:[%s4530_s30 + $0x18] sm:$0xff]  ;;  %p3154_p5 = scmp.ne.s32.totalorder %s4265_s27, 1 }
  0x8f   : > { %v1623_v19 = vld [vmem:[%s4530_s30] sm:$0xff]  ;;  %4034 = vset.pattern.permute.xlu1 %v4293_v20  ;;  %4033 = vset.pattern.permute.xlu0 %v4293_v20  ;;  %s2890_s18 = sld [smem:[#allocation5 + $0x1]]  ;;  %v1624_v22 = vld [vmem:[%s4530_s30 + $0x8] sm:$0xff]  ;;  %v1625_v29 = vld [vmem:[%s4530_s30 + $0x10] sm:$0xff] }
  0x90   : > { %1682 = vperm.xlu1 %4034, %v1631_v18   ;;  %1642 = vperm.xlu0 %4033, %v1623_v19   ;;  %s2907_s23 = sld [smem:[#allocation5 + $0x2]]  ;;  %v4587_v24 = vld [vmem:[%s4512_s24 + $0x20] sm:$0xff]   ;;  %v1634_v43 = vld [vmem:[%s4530_s30 + $0x58] sm:$0xff]  ;;  %v1633_v47 = vld [vmem:[%s4530_s30 + $0x50] sm:$0xff] }
  0x91   : > { %s4581_s17 = sld [smem:[#allocation5 + $0x3]]  ;;  %v3181_v25 = vunpack.c.l.bf16 %v4587_v24  ;;  %v4593_v26 = vld [vmem:[%s4512_s24 + $0x60] sm:$0xff]   ;;  %v1628_v4 = vld [vmem:[%s4530_s30 + $0x28] sm:$0xff]  ;;  %v1637_v3 = vld [vmem:[%s4530_s30 + $0x70] sm:$0xff] }
  0x92   : > { %s4583_s16 = sld [smem:[#allocation5 + $0x4]]  ;;  %v4596_v27 = vld [vmem:[%s4512_s24 + $0xa0] sm:$0xff]   ;;  %v3213_v31 = vunpack.c.l.bf16 %v4593_v26 }
  0x93   : > { %s4589_s6 = sld [smem:[#allocation5 + $0x5]]  ;;  %v4599_v28 = vld [vmem:[%s4512_s24 + $0xe0] sm:$0xff]   ;;  %v3245_v32 = vunpack.c.l.bf16 %v4596_v27 }
  0x94   : > { %1687 = vperm.xlu1 %4034, %v1632_v21   ;;  %1647 = vperm.xlu0 %4033, %v1624_v22   ;;  %v4602_v30 = vstv %s568_s9  ;;  %v3277_v33 = vunpack.c.l.bf16 %v4599_v28  ;;  %v4608_v34 = vld [vmem:[%s4512_s24 + $0x120] sm:$0xff]   ;;  %s4613_s12 = sld [smem:[#allocation5 + $0x6]] }
  0x95   : > { %v4611_v35 = vld [vmem:[%s4512_s24 + $0x160] sm:$0xff]   ;;  %v610_v36 = vmul.f32 %v3181_v25, %v4602_v30  ;;  %v4616_v37 = vstv %s2890_s18  ;;  %s4620_s13 = sld [smem:[#allocation5 + $0x7]]  ;;  %v3309_v41 = vunpack.c.l.bf16 %v4608_v34 }
  0x96   : > { %v4618_v38 = vstv %s2907_s23  ;;  %v661_v39 = vmul.f32 %v3213_v31, %v4616_v37  ;;  %v4626_v42 = vld [vmem:[%s4512_s24 + $0x1a0] sm:$0xff]   ;;  %v3341_v45 = vunpack.c.l.bf16 %v4611_v35  ;;  %s4636_s0 = sld [smem:[#allocation5 + $0x8]] }
  0x97   : > { %v728_v40 = vmul.f32 %v3245_v32, %v4618_v38  ;;  %v4630_v44 = vstv %s4581_s17  ;;  %v4634_v46 = vld [vmem:[%s4512_s24 + $0x1e0] sm:$0xff]   ;;  %v3373_v53 = vunpack.c.l.bf16 %v4626_v42  ;;  %s4650_s26 = sld [smem:[#allocation5 + $0x9]]  ;;  %v1636_v32 = vld [vmem:[%s4530_s30 + $0x68] sm:$0xff] }
  0x98   : > { %1657 = vperm.xlu1 %4034, %v1626_v23   ;;  %1652 = vperm.xlu0 %4033, %v1625_v29   ;;  %v677_v48 = vadd.f32 %v661_v39, %v610_v36  ;;  %v795_v49 = vmul.f32 %v3277_v33, %v4630_v44  ;;  %v4641_v50 = vld [vmem:[%s4512_s24 + $0x220] sm:$0xff]   ;;  %v4647_v52 = vstv %s4583_s16  ;;  %v3405_v59 = vunpack.c.l.bf16 %v4634_v46  ;;  %s4663_s3 = sld [smem:[#allocation5 + $0xa]] }
  0x99   : > { %v4644_v51 = vld [vmem:[%s4512_s24 + $0x260] sm:$0xff]   ;;  %v862_v57 = vmul.f32 %v3309_v41, %v4647_v52  ;;  %v4660_v58 = vstv %s4589_s6  ;;  %v3437_v63 = vunpack.c.l.bf16 %v4641_v50  ;;  %s4687_s11 = sld [smem:[#allocation5 + $0xb]] }
  0x9a   : > { %v4653_v54 = vld [vmem:[%s4512_s24 + $0x2a0] sm:$0xff]   ;;  %v744_v56 = vadd.f32 %v728_v40, %v677_v48  ;;  %v929_v62 = vmul.f32 %v3341_v45, %v4660_v58  ;;  %v3469_v0 = vunpack.c.l.bf16 %v4644_v51  ;;  %v4684_v7 = vstv %s4613_s12  ;;  %s4697_s9 = sld [smem:[#allocation5 + $0xc]] }
  0x9b   : > { %v4656_v55 = vld [vmem:[%s4512_s24 + $0x2e0] sm:$0xff]   ;;  %v3501_v8 = vunpack.c.l.bf16 %v4653_v54  ;;  %v996_v11 = vmul.f32 %v3373_v53, %v4684_v7  ;;  %v4695_v12 = vstv %s4620_s13  ;;  %s4706_s18 = sld [smem:[#allocation5 + $0xd]] }
  0x9c   : > { %v4666_v60 = vld [vmem:[%s4512_s24] sm:$0xff]   ;;  %1697 = vperm.xlu1 %4034, %v1634_v43   ;;  %1692 = vperm.xlu0 %4033, %v1633_v47   ;;  %v811_v6 = vadd.f32 %v795_v49, %v744_v56  ;;  %v3533_v9 = vunpack.c.l.bf16 %v4656_v55  ;;  %v1063_v17 = vmul.f32 %v3405_v59, %v4695_v12  ;;  %v4716_v22 = vstv %s4636_s0  ;;  %s4719_s23 = sld [smem:[#allocation5 + $0xe]] }
  0x9d   : > { %v4669_v61 = vld [vmem:[%s4512_s24 + $0x40] sm:$0xff]   ;;  %v3165_v14 = vunpack.c.l.bf16 %v4666_v60  ;;  %v1130_v39 = vmul.f32 %v3437_v63, %v4716_v22  ;;  %v4735_v45 = vstv %s4650_s26  ;;  %s4737_s17 = sld [smem:[#allocation5 + $0xf]] }
  0x9e   : > { %v4675_v1 = vld [vmem:[%s4512_s24 + $0x320] sm:$0xff]   ;;  %v3197_v15 = vunpack.c.l.bf16 %v4669_v61  ;;  %v878_v16 = vadd.f32 %v862_v57, %v811_v6  ;;  %v1197_v57 = vmul.f32 %v3469_v0, %v4735_v45  ;;  %v4746_v59 = vstv %s4663_s3  ;;  %v1630_v0 = vld [vmem:[%s4530_s30 + $0x38] sm:$0xff] }
  0x9f   : > { %v4678_v2 = vld [vmem:[%s4512_s24 + $0x80] sm:$0xff]   ;;  %v602_v25 = vmul.f32 %v3165_v14, %v4602_v30 }
  0xa0   : > { %v1627_v5 = vld [vmem:[%s4530_s30 + $0x20] sm:$0xff]  ;;  %v3229_v20 = vunpack.c.l.bf16 %v4678_v2  ;;  %1667 = vperm.xlu1 %4034, %v1628_v4   ;;  %v653_v29 = vmul.f32 %v3197_v15, %v4616_v37  ;;  %v945_v36 = vadd.f32 %v929_v62, %v878_v16  ;;  %v1264_v4 = vmul.f32 %v3501_v8, %v4746_v59  ;;  %v1629_v15 = vld [vmem:[%s4530_s30 + $0x30] sm:$0xff] }
  0xa1   : > { %v4691_v10 = vld [vmem:[%s4512_s24 + $0x360] sm:$0xff]   ;;  %1662 = vperm.xlu0 %4033, %v1627_v5  }
  0xa2   : > { %v4700_v13 = vld [vmem:[%s4512_s24 + $0x3a0] sm:$0xff]   ;;  %v3597_v23 = vunpack.c.l.bf16 %v4691_v10  ;;  %v720_v41 = vmul.f32 %v3229_v20, %v4618_v38  ;;  %v669_v48 = vadd.f32 %v653_v29, %v602_v25  ;;  %v1012_v56 = vadd.f32 %v996_v11, %v945_v36 }
  0xa3   : > { %v4709_v19 = vld [vmem:[%s4512_s24 + $0x3e0] sm:$0xff]   ;;  %v3629_v40 = vunpack.c.l.bf16 %v4700_v13  ;;  %v4761_v20 = vstv %s4687_s11 }
  0xa4   : > { %6247 = vst [vmem:[#allocation26_spill] sm:$0xff] %v4709_v19  ;;  %v4713_v21 = vld [vmem:[%s4512_s24 + $0xc0] sm:$0xff]   ;;  %v3661_v47 = vunpack.c.l.bf16 %v4709_v19  ;;  %1707 = vperm.xlu1 %4034, %v1636_v32   ;;  %v736_v5 = vadd.f32 %v720_v41, %v669_v48  ;;  %v1079_v16 = vadd.f32 %v1063_v17, %v1012_v56  ;;  %v1331_v32 = vmul.f32 %v3533_v9, %v4761_v20 }
  0xa5   : > { %v4724_v31 = vld [vmem:[%s4512_s24 + $0x100] sm:$0xff]   ;;  %v3261_v49 = vunpack.c.l.bf16 %v4713_v21  ;;  %v4772_v48 = vstv %s4697_s9  ;;  %v4782_v9 = vstv %s4719_s23 }
  0xa6   : > { %v1635_v33 = vld [vmem:[%s4530_s30 + $0x60] sm:$0xff]  ;;  %v3293_v62 = vunpack.c.l.bf16 %v4724_v31  ;;  %v1146_v17 = vadd.f32 %v1130_v39, %v1079_v16  ;;  %v1638_v16 = vld [vmem:[%s4530_s30 + $0x78] sm:$0xff] }
  0xa7   : > { %v4732_v43 = vld [vmem:[%s4512_s24 + $0x140] sm:$0xff]   ;;  %1702 = vperm.xlu0 %4033, %v1635_v33   ;;  %v787_v6 = vmul.f32 %v3261_v49, %v4630_v44  ;;  %v4775_v49 = vstv %s4706_s18 }
  0xa8   : > { %v4742_v53 = vld [vmem:[%s4512_s24 + $0x180] sm:$0xff]   ;;  %v3325_v11 = vunpack.c.l.bf16 %v4732_v43  ;;  %v854_v25 = vmul.f32 %v3293_v62, %v4647_v52  ;;  %1677 = vperm.xlu1 %4034, %v1630_v0   ;;  %v1213_v18 = vadd.f32 %v1197_v57, %v1146_v17  ;;  %v1465_v0 = vmul.f32 %v3597_v23, %v4775_v49 }
  0xa9   : > { %6248 = vst [vmem:[#allocation27_spill] sm:$0xff] %v4742_v53  ;;  %v4750_v63 = vld [vmem:[%s4512_s24 + $0x1c0] sm:$0xff]   ;;  %v3357_v8 = vunpack.c.l.bf16 %v4742_v53  ;;  %v803_v33 = vadd.f32 %v787_v6, %v736_v5  ;;  %v4797_v53 = vstv %s4737_s17  ;;  %v6256_v17 = vunpack.c.h.bf16 %v4587_v24 }
  0xaa   : > { %6249 = vst [vmem:[#allocation28_spill] sm:$0xff] %v4750_v63  ;;  %v4756_v14 = vld [vmem:[%s4512_s24 + $0x200] sm:$0xff]   ;;  %v921_v36 = vmul.f32 %v3325_v11, %v4660_v58  ;;  %v3389_v41 = vunpack.c.l.bf16 %v4750_v63  ;;  %v1280_v19 = vadd.f32 %v1264_v4, %v1213_v18  ;;  %v4805_v57 = vmul.f32 %v3661_v47, %v4797_v53 }
  0xab   : > { %6250 = vst [vmem:[#allocation29_spill] sm:$0xff] %v4756_v14  ;;  %v4766_v29 = vld [vmem:[%s4512_s24 + $0x240] sm:$0xff]   ;;  %v3421_v56 = vunpack.c.l.bf16 %v4756_v14  ;;  %1672 = vperm.xlu0 %4033, %v1629_v15   ;;  %v870_v5 = vadd.f32 %v854_v25, %v803_v33  ;;  %v988_v6 = vmul.f32 %v3357_v8, %v4684_v7  ;;  %v6253_v14 = vunpack.c.l.bf16 %v4675_v1 }
  0xac   : > { %6251 = vst [vmem:[#allocation30_spill] sm:$0xff] %v4766_v29  ;;  %v4779_v62 = vld [vmem:[%s4512_s24 + $0x280] sm:$0xff]   ;;  %v3453_v11 = vunpack.c.l.bf16 %v4766_v29  ;;  %v1532_v15 = vmul.f32 %v3629_v40, %v4782_v9  ;;  %v1055_v8 = vmul.f32 %v3389_v41, %v4695_v12  ;;  %1717 = vperm.xlu1 %4034, %v1638_v16   ;;  %v611_v18 = vmul.f32 %v6256_v17, %v4602_v30 }
  0xad   : > { %v4787_v39 = vld [vmem:[%s4512_s24 + $0x2c0] sm:$0xff]   ;;  %v1398_v63 = vmul.f32 %v6253_v14, %v4772_v48  ;;  %v937_v25 = vadd.f32 %v921_v36, %v870_v5  ;;  %v3485_v33 = vunpack.c.l.bf16 %v4779_v62  ;;  %v1122_v14 = vmul.f32 %v3421_v56, %v4716_v22 }
  0xae   : > { %6252 = vst [vmem:[#allocation31_spill] sm:$0xff] %v4787_v39  ;;  %v4802_v29 = vld [vmem:[%s4512_s24 + $0x300] sm:$0xff]   ;;  %v3517_v23 = vunpack.c.l.bf16 %v4787_v39  ;;  %v1189_v36 = vmul.f32 %v3453_v11, %v4735_v45  ;;  %v3214_v47 = vunpack.c.h.bf16 %v4593_v26  ;;  %v1347_v4 = vadd.f32 %v1331_v32, %v1280_v19 }
  0xaf   : > { %6254 = vst [vmem:[#allocation32_spill] sm:$0xff] %v4802_v29  ;;  %1712 = vperm.xlu0 %4033, %v1637_v3   ;;  %v1004_v40 = vadd.f32 %v988_v6, %v937_v25  ;;  %v4811_v41 = vld [vmem:[%s4512_s24 + $0x340] sm:$0xff]   ;;  %v3549_v5 = vunpack.c.l.bf16 %v4802_v29  ;;  %v3246_v56 = vunpack.c.h.bf16 %v4596_v27  ;;  %v3278_v39 = vunpack.c.h.bf16 %v4599_v28 }
  0xb0   : > { %6255 = vst [vmem:[#allocation33_spill] sm:$0xff] %v4811_v41  ;;  %v1256_v3 = vmul.f32 %v3485_v33, %v4746_v59  ;;  %v4822_v6 = vld [vmem:[%s4512_s24 + $0x380] sm:$0xff]   ;;  %v662_v25 = vmul.f32 %v3214_v47, %v4616_v37  ;;  %v3310_v24 = vunpack.c.h.bf16 %v4608_v34  ;;  %v1414_v17 = vadd.f32 %v1398_v63, %v1347_v4 }
  0xb1   : > { %v1071_v16 = vadd.f32 %v1055_v8, %v1004_v40  ;;  %v4825_v11 = vld [vmem:[%s4512_s24 + $0x3c0] sm:$0xff]   ;;  %v1323_v26 = vmul.f32 %v3517_v23, %v4761_v20  ;;  %v3581_v19 = vunpack.c.l.bf16 %v4811_v41  ;;  %v729_v27 = vmul.f32 %v3246_v56, %v4618_v38 }
  0xb2   : > { %v678_v28 = vadd.f32 %v662_v25, %v611_v18  ;;  %v796_v8 = vmul.f32 %v3278_v39, %v4630_v44  ;;  %v3342_v33 = vunpack.c.h.bf16 %v4611_v35  ;;  %v1390_v40 = vmul.f32 %v3549_v5, %v4772_v48 }
  0xb3   : > { %v1138_v32 = vadd.f32 %v1122_v14, %v1071_v16  ;;  %v3613_v29 = vunpack.c.l.bf16 %v4822_v6  ;;  %v3645_v47 = vunpack.c.l.bf16 %v4825_v11  ;;  %v3374_v34 = vunpack.c.h.bf16 %v4626_v42 }
  0xb4   : > { %v1481_v63 = vadd.f32 %v1465_v0, %v1414_v17  ;;  %v745_v4 = vadd.f32 %v729_v27, %v678_v28  ;;  %v863_v41 = vmul.f32 %v3310_v24, %v4647_v52  ;;  %v1457_v14 = vmul.f32 %v3581_v19, %v4775_v49 }
  0xb5   : > { %v1205_v23 = vadd.f32 %v1189_v36, %v1138_v32  ;;  %v3406_v18 = vunpack.c.h.bf16 %v4634_v46  ;;  %v3438_v39 = vunpack.c.h.bf16 %v4641_v50  ;;  %v3470_v35 = vunpack.c.h.bf16 %v4644_v51 }
  0xb6   : > { %v812_v56 = vadd.f32 %v796_v8, %v745_v4  ;;  %v930_v16 = vmul.f32 %v3342_v33, %v4660_v58  ;;  %v3502_v25 = vunpack.c.h.bf16 %v4653_v54  ;;  %v1524_v42 = vmul.f32 %v3613_v29, %v4782_v9 }
  0xb7   : > { %v1272_v5 = vadd.f32 %v1256_v3, %v1205_v23  ;;  %v1591_v0 = vmul.f32 %v3645_v47, %v4797_v53  ;;  %v997_v36 = vmul.f32 %v3374_v34, %v4684_v7  ;;  %v3534_v24 = vunpack.c.h.bf16 %v4656_v55 }
  0xb8   : > { %v1548_v17 = vadd.f32 %v1532_v15, %v1481_v63  ;;  %v879_v19 = vadd.f32 %v863_v41, %v812_v56  ;;  %v3166_v50 = vunpack.c.h.bf16 %v4666_v60  ;;  %v1064_v51 = vmul.f32 %v3406_v18, %v4695_v12 }
  0xb9   : > { %v1339_v46 = vadd.f32 %v1323_v26, %v1272_v5  ;;  %v1131_v3 = vmul.f32 %v3438_v39, %v4716_v22  ;;  %v1198_v27 = vmul.f32 %v3470_v35, %v4735_v45  ;;  %v3198_v54 = vunpack.c.h.bf16 %v4669_v61  ;;  %v6258_v39 = vld [vmem:[#allocation27_spill] sm:$0xff] }
  0xba   : > { %v946_v32 = vadd.f32 %v930_v16, %v879_v19  ;;  %v1265_v28 = vmul.f32 %v3502_v25, %v4746_v59  ;;  %v603_v8 = vmul.f32 %v3166_v50, %v4602_v30  ;;  %v3230_v15 = vunpack.c.h.bf16 %v4678_v2  ;;  %v4879_v50 = vld [vmem:[%s4512_s24 + $0x8] sm:$0xff]  }
  0xbb   : > { %v1406_v29 = vadd.f32 %v1390_v40, %v1339_v46  ;;  %v654_v55 = vmul.f32 %v3198_v54, %v4616_v37  ;;  %v3262_v60 = vunpack.c.h.bf16 %v4713_v21  ;;  %v3294_v41 = vunpack.c.h.bf16 %v4724_v31  ;;  %v6257_v31 = vld [vmem:[#allocation26_spill] sm:$0xff] }
  0xbc   : > { %v1013_v33 = vadd.f32 %v997_v36, %v946_v32  ;;  %v3566_v47 = vunpack.c.h.bf16 %v4675_v1  ;;  %v3326_v61 = vunpack.c.h.bf16 %v4732_v43  ;;  %v1332_v40 = vmul.f32 %v3534_v24, %v4761_v20  ;;  %v6259_v36 = vld [vmem:[#allocation28_spill] sm:$0xff]  ;;  %v6260_v24 = vld [vmem:[#allocation29_spill] sm:$0xff] }
  0xbd   : > { %v1473_v26 = vadd.f32 %v1457_v14, %v1406_v29  ;;  %v670_v34 = vadd.f32 %v654_v55, %v603_v8  ;;  %v721_v63 = vmul.f32 %v3230_v15, %v4618_v38  ;;  %v788_v23 = vmul.f32 %v3262_v60, %v4630_v44  ;;  %v4894_v15 = vld [vmem:[%s4512_s24 + $0x88] sm:$0xff]  }
  0xbe   : > { %v1080_v4 = vadd.f32 %v1064_v51, %v1013_v33  ;;  %v3598_v2 = vunpack.c.h.bf16 %v4691_v10  ;;  %v3630_v21 = vunpack.c.h.bf16 %v4700_v13  ;;  %v3662_v14 = vunpack.c.h.bf16 %v6257_v31  ;;  %v4882_v51 = vld [vmem:[%s4512_s24 + $0x48] sm:$0xff]  }
  0xbf   : > { %v1540_v18 = vadd.f32 %v1524_v42, %v1473_v26  ;;  %v737_v1 = vadd.f32 %v721_v63, %v670_v34  ;;  %v855_v43 = vmul.f32 %v3294_v41, %v4647_v52  ;;  %v3358_v35 = vunpack.c.h.bf16 %v6258_v39  ;;  %v6261_v42 = vld [vmem:[#allocation30_spill] sm:$0xff]  ;;  %v6262_v41 = vld [vmem:[#allocation31_spill] sm:$0xff] }
  0xc0   : > { %v4871_v5 = vadd.f32 %v4805_v57, %v1548_v17  ;;  %v1147_v56 = vadd.f32 %v1131_v3, %v1080_v4  ;;  %v1399_v16 = vmul.f32 %v3566_v47, %v4772_v48  ;;  %v922_v10 = vmul.f32 %v3326_v61, %v4660_v58  ;;  %v4900_v47 = vld [vmem:[%s4512_s24 + $0xc8] sm:$0xff]  }
  0xc1   : > { %v804_v25 = vadd.f32 %v788_v23, %v737_v1  ;;  %v3390_v13 = vunpack.c.h.bf16 %v6259_v36  ;;  %v3422_v46 = vunpack.c.h.bf16 %v6260_v24  ;;  %v3454_v19 = vunpack.c.h.bf16 %v6261_v42  ;;  %v4903_v61 = vld [vmem:[%s4512_s24 + $0x108] sm:$0xff]   ;;  %v6264_v24 = vld [vmem:[#allocation33_spill] sm:$0xff] }
  0xc2   : > { %v1214_v57 = vadd.f32 %v1198_v27, %v1147_v56  ;;  %v1466_v17 = vmul.f32 %v3598_v2, %v4775_v49  ;;  %v1533_v3 = vmul.f32 %v3630_v21, %v4782_v9  ;;  %v4887_v54 = vmul.f32 %v3662_v14, %v4797_v53  ;;  %v6263_v14 = vld [vmem:[#allocation32_spill] sm:$0xff]  ;;  %v4918_v39 = vld [vmem:[%s4512_s24 + $0x188] sm:$0xff]  }
  0xc3   : > { %v4889_v29 = vadd.f32 %v1591_v0, %v1540_v18  ;;  %v871_v32 = vadd.f32 %v855_v43, %v804_v25  ;;  %v989_v8 = vmul.f32 %v3358_v35, %v4684_v7  ;;  %v3486_v55 = vunpack.c.h.bf16 %v4779_v62  ;;  %v4923_v25 = vld [vmem:[%s4512_s24 + $0x1c8] sm:$0xff]  }
  0xc4   : > { %v1281_v60 = vadd.f32 %v1265_v28, %v1214_v57  ;;  %v3518_v27 = vunpack.c.h.bf16 %v6262_v41  ;;  %v3170_v26 = vunpack.c.h.bf16 %v4879_v50  ;;  %v3202_v33 = vunpack.c.h.bf16 %v4882_v51  ;;  %v4909_v28 = vld [vmem:[%s4512_s24 + $0x148] sm:$0xff]  }
  0xc5   : > { %v938_v0 = vadd.f32 %v922_v10, %v871_v32  ;;  %v1056_v34 = vmul.f32 %v3390_v13, %v4695_v12  ;;  %v1123_v63 = vmul.f32 %v3422_v46, %v4716_v22  ;;  %v1190_v62 = vmul.f32 %v3454_v19, %v4735_v45  ;;  %v4938_v41 = vld [vmem:[%s4512_s24 + $0x288] sm:$0xff]  }
  0xc6   : > { %v1348_v23 = vadd.f32 %v1332_v40, %v1281_v60  ;;  %v605_v4 = vmul.f32 %v3170_v26, %v4602_v30  ;;  %v656_v2 = vmul.f32 %v3202_v33, %v4616_v37  ;;  %v3234_v21 = vunpack.c.h.bf16 %v4894_v15  ;;  %v4935_v60 = vld [vmem:[%s4512_s24 + $0x248] sm:$0xff]  }
  0xc7   : > { %v1005_v31 = vadd.f32 %v989_v8, %v938_v0  ;;  %v3550_v18 = vunpack.c.h.bf16 %v6263_v14  ;;  %v3266_v1 = vunpack.c.h.bf16 %v4900_v47  ;;  %v3298_v43 = vunpack.c.h.bf16 %v4903_v61  ;;  %v4932_v8 = vld [vmem:[%s4512_s24 + $0x208] sm:$0xff]  }
  0xc8   : > { %v1415_v35 = vadd.f32 %v1399_v16, %v1348_v23  ;;  %v672_v40 = vadd.f32 %v656_v2, %v605_v4  ;;  %v723_v56 = vmul.f32 %v3234_v21, %v4618_v38  ;;  %v3330_v10 = vunpack.c.h.bf16 %v4909_v28 }
  0xc9   : > { %v1072_v36 = vadd.f32 %v1056_v34, %v1005_v31  ;;  %v1257_v13 = vmul.f32 %v3486_v55, %v4746_v59  ;;  %v3582_v46 = vunpack.c.h.bf16 %v6264_v24  ;;  %v790_v42 = vmul.f32 %v3266_v1, %v4630_v44 }
  0xca   : > { %v3614_v19 = vunpack.c.h.bf16 %v4822_v6  ;;  %v739_v57 = vadd.f32 %v723_v56, %v672_v40  ;;  %v857_v32 = vmul.f32 %v3298_v43, %v4647_v52  ;;  %v3362_v16 = vunpack.c.h.bf16 %v4918_v39 }
  0xcb   : > { %v1482_v26 = vadd.f32 %v1466_v17, %v1415_v35  ;;  %v1139_v55 = vadd.f32 %v1123_v63, %v1072_v36  ;;  %v3646_v33 = vunpack.c.h.bf16 %v4825_v11  ;;  %v3394_v0 = vunpack.c.h.bf16 %v4923_v25  ;;  %v4949_v17 = vld [vmem:[%s4512_s24 + $0x2c8] sm:$0xff]  }
  0xcc   : > { %v1324_v6 = vmul.f32 %v3518_v27, %v4761_v20  ;;  %v1391_v34 = vmul.f32 %v3550_v18, %v4772_v48  ;;  %v806_v23 = vadd.f32 %v790_v42, %v739_v57  ;;  %v924_v4 = vmul.f32 %v3330_v10, %v4660_v58 }
  0xcd   : > { %v1206_v2 = vadd.f32 %v1190_v62, %v1139_v55  ;;  %v3426_v21 = vunpack.c.h.bf16 %v4932_v8  ;;  %v3458_v31 = vunpack.c.h.bf16 %v4935_v60  ;;  %v3490_v14 = vunpack.c.h.bf16 %v4938_v41 }
  0xce   : > { %v1458_v11 = vmul.f32 %v3582_v46, %v4775_v49  ;;  %v1525_v63 = vmul.f32 %v3614_v19, %v4782_v9  ;;  %v873_v27 = vadd.f32 %v857_v32, %v806_v23  ;;  %v991_v18 = vmul.f32 %v3362_v16, %v4684_v7  ;;  %v4963_v19 = vld [vmem:[%s4512_s24 + $0x308] sm:$0xff]  }
  0xcf   : > { %v1549_v1 = vadd.f32 %v1533_v3, %v1482_v26  ;;  %v1273_v43 = vadd.f32 %v1257_v13, %v1206_v2  ;;  %v1592_v62 = vmul.f32 %v3646_v33, %v4797_v53  ;;  %v1058_v35 = vmul.f32 %v3394_v0, %v4695_v12  ;;  %v4974_v0 = vld [vmem:[%s4512_s24 + $0x348] sm:$0xff]  }
  0xd0   : > { %v940_v40 = vadd.f32 %v924_v4, %v873_v27  ;;  %v3522_v56 = vunpack.c.h.bf16 %v4949_v17  ;;  %v3169_v10 = vunpack.c.l.bf16 %v4879_v50  ;;  %v3201_v36 = vunpack.c.l.bf16 %v4882_v51  ;;  %v4980_v23 = vld [vmem:[%s4512_s24 + $0x3c8] sm:$0xff]  }
  0xd1   : > { %v1340_v24 = vadd.f32 %v1324_v6, %v1273_v43  ;;  %v1125_v46 = vmul.f32 %v3426_v21, %v4716_v22  ;;  %v1192_v3 = vmul.f32 %v3458_v31, %v4735_v45  ;;  %v1259_v13 = vmul.f32 %v3490_v14, %v4746_v59  ;;  %v4977_v6 = vld [vmem:[%s4512_s24 + $0x388] sm:$0xff]  }
  0xd2   : > { %v1007_v42 = vadd.f32 %v991_v18, %v940_v40  ;;  %v604_v57 = vmul.f32 %v3169_v10, %v4602_v30  ;;  %v655_v32 = vmul.f32 %v3201_v36, %v4616_v37  ;;  %v3233_v50 = vunpack.c.l.bf16 %v4894_v15 }
  0xd3   : > { %v4969_v51 = vadd.f32 %v4887_v54, %v1549_v1  ;;  %v1407_v16 = vadd.f32 %v1391_v34, %v1340_v24  ;;  %v3265_v26 = vunpack.c.l.bf16 %v4900_v47  ;;  %v3297_v55 = vunpack.c.l.bf16 %v4903_v61 }
  0xd4   : > { %v1074_v33 = vadd.f32 %v1058_v35, %v1007_v42  ;;  %v671_v4 = vadd.f32 %v655_v32, %v604_v57  ;;  %v722_v2 = vmul.f32 %v3233_v50, %v4618_v38  ;;  %v3329_v15 = vunpack.c.l.bf16 %v4909_v28 }
  0xd5   : > { %v1474_v21 = vadd.f32 %v1458_v11, %v1407_v16  ;;  %v1326_v54 = vmul.f32 %v3522_v56, %v4761_v20  ;;  %v3554_v34 = vunpack.c.h.bf16 %v4963_v19  ;;  %v789_v47 = vmul.f32 %v3265_v26, %v4630_v44  ;;  %v5014_v26 = vld [vmem:[%s4512_s24 + $0xa8] sm:$0xff]  }
  0xd6   : > { %v1141_v61 = vadd.f32 %v1125_v46, %v1074_v33  ;;  %v738_v31 = vadd.f32 %v722_v2, %v671_v4  ;;  %v856_v14 = vmul.f32 %v3297_v55, %v4647_v52  ;;  %v3361_v27 = vunpack.c.l.bf16 %v4918_v39  ;;  %v4999_v46 = vld [vmem:[%s4512_s24 + $0x28] sm:$0xff]  }
  0xd7   : > { %v3586_v18 = vunpack.c.h.bf16 %v4974_v0  ;;  %v3618_v1 = vunpack.c.h.bf16 %v4977_v6  ;;  %v3650_v28 = vunpack.c.h.bf16 %v4980_v23  ;;  %v3393_v11 = vunpack.c.l.bf16 %v4923_v25  ;;  %v5017_v55 = vld [vmem:[%s4512_s24 + $0xe8] sm:$0xff]  }
  0xd8   : > { %v1541_v43 = vadd.f32 %v1525_v63, %v1474_v21  ;;  %v1208_v35 = vadd.f32 %v1192_v3, %v1141_v61  ;;  %v805_v40 = vadd.f32 %v789_v47, %v738_v31  ;;  %v923_v56 = vmul.f32 %v3329_v15, %v4660_v58 }
  0xd9   : > { %v3425_v10 = vunpack.c.l.bf16 %v4932_v8  ;;  %v3457_v36 = vunpack.c.l.bf16 %v4935_v60  ;;  %v3489_v39 = vunpack.c.l.bf16 %v4938_v41  ;;  %v3521_v24 = vunpack.c.l.bf16 %v4949_v17  ;;  %v5008_v17 = vld [vmem:[%s4512_s24 + $0x68] sm:$0xff]  }
  0xda   : > { %v1275_v42 = vadd.f32 %v1259_v13, %v1208_v35  ;;  %v1393_v25 = vmul.f32 %v3554_v34, %v4772_v48  ;;  %v872_v63 = vadd.f32 %v856_v14, %v805_v40  ;;  %v990_v3 = vmul.f32 %v3361_v27, %v4684_v7  ;;  %v5027_v34 = vld [vmem:[%s4518_s19] sm:$0xff]   ;;  %v5041_v40 = vld [vmem:[%s4512_s24 + $0x1a8] sm:$0xff]  }
  0xdb   : > { %v1460_v57 = vmul.f32 %v3586_v18, %v4775_v49  ;;  %v1527_v8 = vmul.f32 %v3618_v1, %v4782_v9  ;;  %v1594_v60 = vmul.f32 %v3650_v28, %v4797_v53  ;;  %v1057_v41 = vmul.f32 %v3393_v11, %v4695_v12  ;;  %v5036_v1 = vld [vmem:[%s4512_s24 + $0x168] sm:$0xff]  }
  0xdc   : > { %v5010_v32 = vadd.f32 %v1592_v62, %v1541_v43  ;;  %v1342_v13 = vadd.f32 %v1326_v54, %v1275_v42  ;;  %v939_v50 = vadd.f32 %v923_v56, %v872_v63  ;;  %v3186_v16 = vunpack.c.h.bf16 %v4999_v46  ;;  %v5024_v62 = vld [vmem:[%s4512_s24 + $0x128] sm:$0xff]  }
  0xdd   : > { %v1124_v33 = vmul.f32 %v3425_v10, %v4716_v22  ;;  %v1191_v4 = vmul.f32 %v3457_v36, %v4735_v45  ;;  %v1258_v2 = vmul.f32 %v3489_v39, %v4746_v59  ;;  %v1325_v15 = vmul.f32 %v3521_v24, %v4761_v20  ;;  %v5048_v36 = vld [vmem:[%s4512_s24 + $0x1e8] sm:$0xff]  }
  0xde   : > { %6265 = vst [vmem:[#allocation26_spill] sm:$0xff] %v5010_v32  ;;  %v1409_v21 = vadd.f32 %v1393_v25, %v1342_v13  ;;  %v1006_v54 = vadd.f32 %v990_v3, %v939_v50  ;;  %v613_v47 = vmul.f32 %v3186_v16, %v4602_v30  ;;  %v3218_v61 = vunpack.c.h.bf16 %v5008_v17  ;;  %v5053_v63 = vld [vmem:[%s4512_s24 + $0x228] sm:$0xff]  }
  0xdf   : > { %v3553_v31 = vunpack.c.l.bf16 %v4963_v19  ;;  %v3585_v14 = vunpack.c.l.bf16 %v4974_v0  ;;  %v3250_v27 = vunpack.c.h.bf16 %v5014_v26  ;;  %v3282_v18 = vunpack.c.h.bf16 %v5017_v55  ;;  %v5056_v3 = vld [vmem:[%s4512_s24 + $0x268] sm:$0xff]  }
  0xe0   : > { %v1476_v28 = vadd.f32 %v1460_v57, %v1409_v21  ;;  %v1073_v11 = vadd.f32 %v1057_v41, %v1006_v54  ;;  %v664_v43 = vmul.f32 %v3218_v61, %v4616_v37  ;;  %v3314_v35 = vunpack.c.h.bf16 %v5024_v62  ;;  %v5067_v54 = vld [vmem:[%s4512_s24 + $0x2e8] sm:$0xff]  }
  0xe1   : > { %v3617_v19 = vunpack.c.l.bf16 %v4977_v6  ;;  %v3649_v0 = vunpack.c.l.bf16 %v4980_v23  ;;  %v731_v10 = vmul.f32 %v3250_v27, %v4618_v38  ;;  %v798_v42 = vmul.f32 %v3282_v18, %v4630_v44  ;;  %v5059_v6 = vld [vmem:[%s4512_s24 + $0x2a8] sm:$0xff]  }
  0xe2   : > { %v1140_v39 = vadd.f32 %v1124_v33, %v1073_v11  ;;  %v680_v24 = vadd.f32 %v664_v43, %v613_v47  ;;  %v3346_v25 = vunpack.c.h.bf16 %v5036_v1  ;;  %v1543_v23 = vadd.f32 %v1527_v8, %v1476_v28 }
  0xe3   : > { %v1392_v57 = vmul.f32 %v3553_v31, %v4772_v48  ;;  %v1459_v41 = vmul.f32 %v3585_v14, %v4775_v49  ;;  %v3378_v13 = vunpack.c.h.bf16 %v5041_v40  ;;  %v865_v33 = vmul.f32 %v3314_v35, %v4647_v52 }
  0xe4   : > { %v1207_v50 = vadd.f32 %v1191_v4, %v1140_v39  ;;  %v747_v16 = vadd.f32 %v731_v10, %v680_v24  ;;  %v3410_v21 = vunpack.c.h.bf16 %v5048_v36  ;;  %v1526_v47 = vmul.f32 %v3617_v19, %v4782_v9  ;;  %v5082_v39 = vld [vmem:[%s4512_s24 + $0x328] sm:$0xff]  }
  0xe5   : > { %v3442_v61 = vunpack.c.h.bf16 %v5053_v63  ;;  %v3474_v8 = vunpack.c.h.bf16 %v5056_v3  ;;  %v3506_v31 = vunpack.c.h.bf16 %v5059_v6  ;;  %v1593_v27 = vmul.f32 %v3649_v0, %v4797_v53 }
  0xe6   : > { %v1274_v14 = vadd.f32 %v1258_v2, %v1207_v50  ;;  %v814_v4 = vadd.f32 %v798_v42, %v747_v16  ;;  %v932_v18 = vmul.f32 %v3346_v25, %v4660_v58  ;;  %v5075_v28 = vadd.f32 %v1594_v60, %v1543_v23  ;;  %v5090_v50 = vld [vmem:[%s4512_s24 + $0x368] sm:$0xff]  }
  0xe7   : > { %v999_v11 = vmul.f32 %v3378_v13, %v4684_v7  ;;  %v3538_v43 = vunpack.c.h.bf16 %v5067_v54  ;;  %v3185_v35 = vunpack.c.l.bf16 %v4999_v46  ;;  %v1066_v2 = vmul.f32 %v3410_v21, %v4695_v12  ;;  %v5093_v46 = vld [vmem:[%s4512_s24 + $0x3a8] sm:$0xff]  }
  0xe8   : > { %6266 = vst [vmem:[#allocation27_spill] sm:$0xff] %v5075_v28  ;;  %v1341_v19 = vadd.f32 %v1325_v15, %v1274_v14  ;;  %v881_v10 = vadd.f32 %v865_v33, %v814_v4  ;;  %v3217_v0 = vunpack.c.l.bf16 %v5008_v17  ;;  %v1133_v24 = vmul.f32 %v3442_v61, %v4716_v22  ;;  %v5096_v15 = vld [vmem:[%s4512_s24 + $0x3e8] sm:$0xff]  }
  0xe9   : > { %v1200_v60 = vmul.f32 %v3474_v8, %v4735_v45  ;;  %v1267_v42 = vmul.f32 %v3506_v31, %v4746_v59  ;;  %v612_v25 = vmul.f32 %v3185_v35, %v4602_v30  ;;  %v3249_v17 = vunpack.c.l.bf16 %v5014_v26 }
  0xea   : > { %v1408_v23 = vadd.f32 %v1392_v57, %v1341_v19  ;;  %v948_v13 = vadd.f32 %v932_v18, %v881_v10  ;;  %v663_v16 = vmul.f32 %v3217_v0, %v4616_v37  ;;  %v3570_v33 = vunpack.c.h.bf16 %v5082_v39 }
  0xeb   : > { %v3281_v21 = vunpack.c.l.bf16 %v5017_v55  ;;  %v3313_v61 = vunpack.c.l.bf16 %v5024_v62  ;;  %v3345_v8 = vunpack.c.l.bf16 %v5036_v1  ;;  %v730_v4 = vmul.f32 %v3249_v17, %v4618_v38 }
  0xec   : > { %v1475_v57 = vadd.f32 %v1459_v41, %v1408_v23  ;;  %v1015_v31 = vadd.f32 %v999_v11, %v948_v13  ;;  %v679_v14 = vadd.f32 %v663_v16, %v612_v25  ;;  %v3602_v18 = vunpack.c.h.bf16 %v5090_v50 }
  0xed   : > { %v3634_v35 = vunpack.c.h.bf16 %v5093_v46  ;;  %v3666_v19 = vunpack.c.h.bf16 %v5096_v15  ;;  %v797_v26 = vmul.f32 %v3281_v21, %v4630_v44  ;;  %v864_v55 = vmul.f32 %v3313_v61, %v4647_v52 }
  0xee   : > { %v1082_v10 = vadd.f32 %v1066_v2, %v1015_v31  ;;  %v746_v0 = vadd.f32 %v730_v4, %v679_v14  ;;  %v3377_v62 = vunpack.c.l.bf16 %v5041_v40  ;;  %v1542_v1 = vadd.f32 %v1526_v47, %v1475_v57  ;;  %v5138_v14 = vld [vmem:[%s4512_s24 + $0x90] sm:$0xff]  }
  0xef   : > { %v931_v41 = vmul.f32 %v3345_v8, %v4660_v58  ;;  %v3409_v11 = vunpack.c.l.bf16 %v5048_v36  ;;  %v3441_v25 = vunpack.c.l.bf16 %v5053_v63  ;;  %v3473_v16 = vunpack.c.l.bf16 %v5056_v3  ;;  %v5130_v8 = vld [vmem:[%s4512_s24 + $0x10] sm:$0xff]  }
  0xf0   : > { %v1149_v23 = vadd.f32 %v1133_v24, %v1082_v10  ;;  %v813_v13 = vadd.f32 %v797_v26, %v746_v0  ;;  %v3505_v2 = vunpack.c.l.bf16 %v5059_v6  ;;  %v1334_v17 = vmul.f32 %v3538_v43, %v4761_v20  ;;  %v5141_v4 = vld [vmem:[%s4512_s24 + $0xd0] sm:$0xff]  }
  0xf1   : > { %v1401_v21 = vmul.f32 %v3570_v33, %v4772_v48  ;;  %v1468_v40 = vmul.f32 %v3602_v18, %v4775_v49  ;;  %v3537_v47 = vunpack.c.l.bf16 %v5067_v54  ;;  %v1535_v63 = vmul.f32 %v3634_v35, %v4782_v9  ;;  %v5133_v54 = vld [vmem:[%s4512_s24 + $0x50] sm:$0xff]  }
  0xf2   : > { %v1216_v36 = vadd.f32 %v1200_v60, %v1149_v23  ;;  %v880_v24 = vadd.f32 %v864_v55, %v813_v13  ;;  %v998_v61 = vmul.f32 %v3377_v62, %v4684_v7  ;;  %v5122_v3 = vadd.f32 %v1593_v27, %v1542_v1  ;;  %v5144_v18 = vld [vmem:[%s4512_s24 + $0x110] sm:$0xff]   ;;  %v5151_v55 = vld [vmem:[%s4518_s19 + $0x20] sm:$0xff]  }
  0xf3   : > { %v5125_v6 = vmul.f32 %v3666_v19, %v4797_v53  ;;  %v1065_v43 = vmul.f32 %v3409_v11, %v4695_v12  ;;  %v1132_v33 = vmul.f32 %v3441_v25, %v4716_v22  ;;  %v1199_v31 = vmul.f32 %v3473_v16, %v4735_v45  ;;  %v5163_v25 = vld [vmem:[%s4512_s24 + $0x190] sm:$0xff]  }
  0xf4   : > { %6267 = vst [vmem:[#allocation28_spill] sm:$0xff] %v5122_v3  ;;  %v1283_v60 = vadd.f32 %v1267_v42, %v1216_v36  ;;  %v947_v57 = vadd.f32 %v931_v41, %v880_v24  ;;  %v1266_v27 = vmul.f32 %v3505_v2, %v4746_v59  ;;  %v1333_v35 = vmul.f32 %v3537_v47, %v4761_v20  ;;  %v5156_v41 = vld [vmem:[%s4512_s24 + $0x150] sm:$0xff]  }
  0xf5   : > { %v3569_v19 = vunpack.c.l.bf16 %v5082_v39  ;;  %v3601_v26 = vunpack.c.l.bf16 %v5090_v50  ;;  %v3633_v42 = vunpack.c.l.bf16 %v5093_v46  ;;  %v3174_v62 = vunpack.c.h.bf16 %v5130_v8  ;;  %v5171_v47 = vld [vmem:[%s4512_s24 + $0x210] sm:$0xff]  }
  0xf6   : > { %v1350_v10 = vadd.f32 %v1334_v17, %v1283_v60  ;;  %v1014_v0 = vadd.f32 %v998_v61, %v947_v57  ;;  %v3206_v1 = vunpack.c.h.bf16 %v5133_v54  ;;  %v3665_v11 = vunpack.c.l.bf16 %v5096_v15  ;;  %v5168_v17 = vld [vmem:[%s4512_s24 + $0x1d0] sm:$0xff]  }
  0xf7   : > { %v3238_v39 = vunpack.c.h.bf16 %v5138_v14  ;;  %v3270_v50 = vunpack.c.h.bf16 %v5141_v4  ;;  %v3302_v46 = vunpack.c.h.bf16 %v5144_v18  ;;  %v607_v16 = vmul.f32 %v3174_v62, %v4602_v30  ;;  %v5174_v15 = vld [vmem:[%s4512_s24 + $0x250] sm:$0xff]  }
  0xf8   : > { %v1417_v23 = vadd.f32 %v1401_v21, %v1350_v10  ;;  %v1081_v13 = vadd.f32 %v1065_v43, %v1014_v0  ;;  %v658_v2 = vmul.f32 %v3206_v1, %v4616_v37  ;;  %v3334_v60 = vunpack.c.h.bf16 %v5156_v41  ;;  %v5181_v21 = vld [vmem:[%s4512_s24 + $0x290] sm:$0xff]  }
  0xf9   : > { %v725_v61 = vmul.f32 %v3238_v39, %v4618_v38  ;;  %v792_v0 = vmul.f32 %v3270_v50, %v4630_v44  ;;  %v3366_v62 = vunpack.c.h.bf16 %v5163_v25  ;;  %v3398_v1 = vunpack.c.h.bf16 %v5168_v17 }
  0xfa   : > { %v1484_v43 = vadd.f32 %v1468_v40, %v1417_v23  ;;  %v1148_v57 = vadd.f32 %v1132_v33, %v1081_v13  ;;  %v674_v10 = vadd.f32 %v658_v2, %v607_v16  ;;  %v3430_v36 = vunpack.c.h.bf16 %v5171_v47 }
  0xfb   : > { %v3462_v39 = vunpack.c.h.bf16 %v5174_v15  ;;  %v859_v28 = vmul.f32 %v3302_v46, %v4647_v52  ;;  %v3494_v40 = vunpack.c.h.bf16 %v5181_v21  ;;  %v1400_v50 = vmul.f32 %v3569_v19, %v4772_v48  ;;  %v5199_v46 = vld [vmem:[%s4512_s24 + $0x310] sm:$0xff]  }
  0xfc   : > { %v1215_v24 = vadd.f32 %v1199_v31, %v1148_v57  ;;  %v741_v56 = vadd.f32 %v725_v61, %v674_v10  ;;  %v1551_v33 = vadd.f32 %v1535_v63, %v1484_v43  ;;  %v1467_v23 = vmul.f32 %v3601_v26, %v4775_v49  ;;  %v5196_v61 = vld [vmem:[%s4512_s24 + $0x2d0] sm:$0xff]  }
  0xfd   : > { %v1534_v13 = vmul.f32 %v3633_v42, %v4782_v9  ;;  %v1601_v2 = vmul.f32 %v3665_v11, %v4797_v53  ;;  %v926_v31 = vmul.f32 %v3334_v60, %v4660_v58  ;;  %v5202_v57 = vld [vmem:[%s4512_s24 + $0x350] sm:$0xff]   ;;  %v993_v63 = vmul.f32 %v3366_v62, %v4684_v7 }
  0xfe   : > { %v1282_v16 = vadd.f32 %v1266_v27, %v1215_v24  ;;  %v808_v3 = vadd.f32 %v792_v0, %v741_v56  ;;  %v1060_v19 = vmul.f32 %v3398_v1, %v4695_v12  ;;  %v1127_v26 = vmul.f32 %v3430_v36, %v4716_v22  ;;  %v5210_v11 = vld [vmem:[%s4512_s24 + $0x390] sm:$0xff]  }
  0xff   : > { %v1194_v42 = vmul.f32 %v3462_v39, %v4735_v45  ;;  %v1261_v56 = vmul.f32 %v3494_v40, %v4746_v59  ;;  %v5213_v60 = vld [vmem:[%s4512_s24 + $0x3d0] sm:$0xff]   ;;  %v3173_v43 = vunpack.c.l.bf16 %v5130_v8  ;;  %v5217_v10 = vadd.f32 %v5125_v6, %v1551_v33 }
 0x100   : > { %v1349_v27 = vadd.f32 %v1333_v35, %v1282_v16  ;;  %v875_v24 = vadd.f32 %v859_v28, %v808_v3  ;;  %v3526_v0 = vunpack.c.h.bf16 %v5196_v61  ;;  %v3558_v62 = vunpack.c.h.bf16 %v5199_v46 }
 0x101   : > { %6268 = vst [vmem:[#allocation29_spill] sm:$0xff] %v5217_v10  ;;  %v3590_v36 = vunpack.c.h.bf16 %v5202_v57  ;;  %v606_v28 = vmul.f32 %v3173_v43, %v4602_v30  ;;  %v3205_v3 = vunpack.c.l.bf16 %v5133_v54  ;;  %v3622_v39 = vunpack.c.h.bf16 %v5210_v11 }
 0x102   : > { %v1416_v1 = vadd.f32 %v1400_v50, %v1349_v27  ;;  %v942_v35 = vadd.f32 %v926_v31, %v875_v24  ;;  %v3654_v40 = vunpack.c.h.bf16 %v5213_v60  ;;  %v3237_v8 = vunpack.c.l.bf16 %v5138_v14 }
 0x103   : > { %v3269_v6 = vunpack.c.l.bf16 %v5141_v4  ;;  %v657_v10 = vmul.f32 %v3205_v3, %v4616_v37  ;;  %v3301_v32 = vunpack.c.l.bf16 %v5144_v18  ;;  %v1328_v50 = vmul.f32 %v3526_v0, %v4761_v20 }
 0x104   : > { %v1483_v33 = vadd.f32 %v1467_v23, %v1416_v1  ;;  %v1009_v16 = vadd.f32 %v993_v63, %v942_v35  ;;  %v1395_v31 = vmul.f32 %v3558_v62, %v4772_v48  ;;  %v724_v54 = vmul.f32 %v3237_v8, %v4618_v38 }
 0x105   : > { %v3333_v27 = vunpack.c.l.bf16 %v5156_v41  ;;  %v673_v43 = vadd.f32 %v657_v10, %v606_v28  ;;  %v791_v14 = vmul.f32 %v3269_v6, %v4630_v44  ;;  %v3365_v4 = vunpack.c.l.bf16 %v5163_v25 }
 0x106   : > { %v1076_v24 = vadd.f32 %v1060_v19, %v1009_v16  ;;  %v1550_v23 = vadd.f32 %v1534_v13, %v1483_v33  ;;  %v3397_v63 = vunpack.c.l.bf16 %v5168_v17  ;;  %v3429_v18 = vunpack.c.l.bf16 %v5171_v47 }
 0x107   : > { %v3461_v0 = vunpack.c.l.bf16 %v5174_v15  ;;  %v740_v62 = vadd.f32 %v724_v54, %v673_v43  ;;  %v858_v35 = vmul.f32 %v3301_v32, %v4647_v52  ;;  %v3493_v41 = vunpack.c.l.bf16 %v5181_v21  ;;  %v5281_v54 = vld [vmem:[%s4512_s24 + $0x30] sm:$0xff]  }
 0x108   : > { %v1143_v1 = vadd.f32 %v1127_v26, %v1076_v24  ;;  %v5242_v19 = vmul.f32 %v3590_v36, %v4775_v49  ;;  %v5245_v25 = vmul.f32 %v3622_v39, %v4782_v9  ;;  %v5248_v17 = vmul.f32 %v3654_v40, %v4797_v53  ;;  %v5260_v36 = vld [vmem:[%s4535_s10] ss:$0 sm:$0xff]  ;;  %v5268_v40 = vld [vmem:[%s4518_s19 + $0x8] sm:$0xff]   ;;  %v5287_v24 = vld [vmem:[%s4512_s24 + $0xb0] sm:$0xff]  }
 0x109   : > { %v3525_v47 = vunpack.c.l.bf16 %v5196_v61  ;;  %v6269_v15 = vunpack.c.l.bf16 %v5027_v34  ;;  %v807_v21 = vadd.f32 %v791_v14, %v740_v62  ;;  %v925_v26 = vmul.f32 %v3333_v27, %v4660_v58  ;;  %6272 = vst [vmem:[#allocation30_spill] sm:$0xff] %v5268_v40  ;;  %v5284_v27 = vld [vmem:[%s4512_s24 + $0x70] sm:$0xff]  }
 0x10a   : > { %v1210_v32 = vadd.f32 %v1194_v42, %v1143_v1  ;;  %v992_v10 = vmul.f32 %v3365_v4, %v4684_v7  ;;  %v5262_v28 = vadd.f32 %v1601_v2, %v1550_v23  ;;  %v1059_v61 = vmul.f32 %v3397_v63, %v4695_v12 }
 0x10b   : > { %vm5253_vm1 = vcmp.gt.f32.partialorder %v6269_v15, 0.5  ;;  %v1126_v3 = vmul.f32 %v3429_v18, %v4716_v22  ;;  %v1193_v39 = vmul.f32 %v3461_v0, %v4735_v45  ;;  %v6273_v42 = vunpack.c.l.bf16 %v5151_v55  ;;  %v1683_v43 = vpop.permute.xlu1 %1682  ;;  %v1643_v14 = vpop.permute.xlu0 %1642 }
 0x10c   : > { %v1277_v6 = vadd.f32 %v1261_v56, %v1210_v32  ;;  %v874_v33 = vadd.f32 %v858_v35, %v807_v21  ;;  %v5277_v16 = vmul.f32 %v3493_v41, %v4746_v59  ;;  %v3557_v2 = vunpack.c.l.bf16 %v5199_v46 }
 0x10d   : > { %vm5272_vm2 = vcmp.gt.f32.partialorder %v6273_v42, 0.5  ;;  %v5290_v4 = vmul.f32 %v3525_v47, %v4761_v20  ;;  %v3589_v23 = vunpack.c.l.bf16 %v5202_v57  ;;  %v1734_v18 = vadd.f32 %v5260_v36, %v1683_v43 }
 0x10e   : > { %v1726_v46 = vadd.f32 %v5260_v36, %v1643_v14  ;;  %v6276_v0 = vunpack.c.h.bf16 %v5027_v34  ;;  %v1344_v62 = vadd.f32 %v1328_v50, %v1277_v6  ;;  %v941_v35 = vadd.f32 %v925_v26, %v874_v33 }
 0x10f   : > { %v3681_v41 = vunpack.c.l.bf16 %v5268_v40  ;;  %v3190_v57 = vunpack.c.h.bf16 %v5281_v54  ;;  %v3222_v47 = vunpack.c.h.bf16 %v5284_v27  ;;  %v3254_v15 = vunpack.c.h.bf16 %v5287_v24  ;;  %v1688_v43 = vpop.permute.xlu1 %1687  ;;  %v1648_v50 = vpop.permute.xlu0 %1647 }
 0x110   : > { %vm5299_vm3 = vcmp.gt.f32.partialorder %v6276_v0, 0.5  ;;  %v1750_v32 = vadd.f32 %v1734_v18, %v4871_v5  ;;  %v1742_v21 = vadd.f32 %v1726_v46, %v4889_v29  ;;  %v1008_v34 = vadd.f32 %v992_v10, %v941_v35  ;;  %v5316_v0 = vld [vmem:[%s4512_s24 + $0xf0] sm:$0xff]  }
 0x111   : > { %v5310_v42 = vmul.f32 %v3557_v2, %v4772_v48  ;;  %v1411_v6 = vadd.f32 %v1395_v31, %v1344_v62  ;;  %v3694_v26 = vunpack.c.h.bf16 %v5151_v55  ;;  %v615_v33 = vmul.f32 %v3190_v57, %v4602_v30  ;;  %v6279_v55 = vld [vmem:[#allocation26_spill] sm:$0xff] }
 0x112   : > { %v666_v14 = vmul.f32 %v3222_v47, %v4616_v37  ;;  %v1735_v63 = vadd.f32 %v5260_v36, %v1688_v43  ;;  %v1727_v5 = vadd.f32 %v5260_v36, %v1648_v50  ;;  %vm1758_vm4 = vcmp.gt.f32.partialorder %v1742_v21, 0.0 }
 0x113   : > { %v1774_v29 = vmul.f32 0.01, %v1742_v21  ;;  %vm1766_vm5 = vcmp.gt.f32.partialorder %v1750_v32, 0.0  ;;  %v1782_v10 = vmul.f32 0.01, %v1750_v32  ;;  %v1075_v2 = vadd.f32 %v1059_v61, %v1008_v34  ;;  %v1658_v57 = vpop.permute.xlu1 %1657  ;;  %v1653_v47 = vpop.permute.xlu0 %1652 }
 0x114   : > { %v733_v18 = vmul.f32 %v3254_v15, %v4618_v38  ;;  %v1751_v31 = vadd.f32 %v1735_v63, %v4969_v51  ;;  %v1743_v46 = vadd.f32 %v1727_v5, %v6279_v55  ;;  %v3286_v35 = vunpack.c.h.bf16 %v5316_v0  ;;  %v5342_v5 = vld [vmem:[%s4512_s24 + $0x130] sm:$0xff]  }
 0x115   : > { %v1790_v62 = vsel %vm1758_vm4, %v1742_v21, %v1774_v29  ;;  %v1798_v50 = vsel %vm1766_vm5, %v1750_v32, %v1782_v10  ;;  %v1142_v56 = vadd.f32 %v1126_v3, %v1075_v2  ;;  %v682_v40 = vadd.f32 %v666_v14, %v615_v33  ;;  %v6284_v3 = vld [vmem:[#allocation28_spill] sm:$0xff] }
 0x116   : > { %v5326_v43 = vsel %vm5253_vm1, %v1790_v62, -1e+30  ;;  %v1728_v61 = vadd.f32 %v5260_v36, %v1653_v47  ;;  %vm1759_vm6 = vcmp.gt.f32.partialorder %v1743_v46, 0.0  ;;  %v1775_v51 = vmul.f32 0.01, %v1743_v46  ;;  %v5358_v29 = vld [vmem:[%s4512_s24 + $0x170] sm:$0xff]  }
 0x117   : > { %6280 = vst [vmem:[#allocation31_spill] sm:$0xff] %v5326_v43  ;;  %1886 = vmax.xlane.f32.xlu0 %v5326_v43  ;;  %v1478_v63 = vadd.f32 %v5242_v19, %v1411_v6  ;;  %v5333_v15 = vsel %vm5272_vm2, %v1798_v50, -1e+30  ;;  %v1209_v21 = vadd.f32 %v1193_v39, %v1142_v56  ;;  %v1461_v13 = vmul.f32 %v3589_v23, %v4775_v49  ;;  %v1698_v19 = vpop.permute.xlu1 %1697  ;;  %v5364_v55 = vld [vmem:[%s4512_s24 + $0x1b0] sm:$0xff]  }
 0x118   : > { %6281 = vst [vmem:[#allocation32_spill] sm:$0xff] %v5333_v15  ;;  %vm5336_vm7 = vcmp.gt.f32.partialorder %v3694_v26, 0.5  ;;  %v1744_v34 = vadd.f32 %v1728_v61, %v6284_v3  ;;  %v1791_v33 = vsel %vm1759_vm6, %v1743_v46, %v1775_v51  ;;  %vm1767_vm8 = vcmp.gt.f32.partialorder %v1751_v31, 0.0  ;;  %v5378_v47 = vld [vmem:[%s4512_s24 + $0x230] sm:$0xff]  }
 0x119   : > { %v1783_v14 = vmul.f32 0.01, %v1751_v31  ;;  %v5346_v8 = vsel %vm5299_vm3, %v1791_v33, -1e+30  ;;  %v1276_v39 = vadd.f32 %v5277_v16, %v1209_v21  ;;  %v749_v23 = vadd.f32 %v733_v18, %v682_v40  ;;  %v1693_v16 = vpop.permute.xlu0 %1692  ;;  %v5388_v51 = vld [vmem:[%s4512_s24 + $0x270] sm:$0xff]  }
 0x11a   : > { %6285 = vst [vmem:[#allocation33_spill] sm:$0xff] %v5346_v8  ;;  %v800_v56 = vmul.f32 %v3286_v35, %v4630_v44  ;;  %1888 = vmax.xlane.f32.xlu1 %v5346_v8  ;;  %v1545_v6 = vadd.f32 %v5245_v25, %v1478_v63  ;;  %vm1760_vm9 = vcmp.gt.f32.partialorder %v1744_v34, 0.0  ;;  %v1776_v26 = vmul.f32 0.01, %v1744_v34  ;;  %v5367_v25 = vld [vmem:[%s4512_s24 + $0x1f0] sm:$0xff]  }
 0x11b   : > { %1902 = vmax.xlane.f32.xlu0 %v5333_v15  ;;  %vm5353_vm10 = vcmp.gt.f32.partialorder %v3681_v41, 0.5  ;;  %v1343_v40 = vadd.f32 %v5290_v4, %v1276_v39  ;;  %v1799_v10 = vsel %vm1767_vm8, %v1751_v31, %v1783_v14  ;;  %v3318_v18 = vunpack.c.h.bf16 %v5342_v5  ;;  %v1668_v31 = vpop.permute.xlu1 %1667  ;;  %v5399_v39 = vld [vmem:[%s4512_s24 + $0x2b0] sm:$0xff]   ;;  %v5576_v15 = vld [vmem:[%s4512_s24 + $0x358] sm:$0xff]  }
 0x11c   : > { %v816_v2 = vadd.f32 %v800_v56, %v749_v23  ;;  %v1729_v41 = vadd.f32 %v5260_v36, %v1658_v57  ;;  %v6288_v46 = vunpack.c.l.bf16 %v5210_v11  ;;  %v1792_v35 = vsel %vm1760_vm9, %v1744_v34, %v1776_v26 }
 0x11d   : > { %v5375_v4 = vsel %vm5336_vm7, %v1799_v10, -1e+30  ;;  %v1410_v50 = vadd.f32 %v5310_v42, %v1343_v40  ;;  %v5383_v61 = vsel %vm5353_vm10, %v1792_v35, -1e+30  ;;  %v867_v57 = vmul.f32 %v3318_v18, %v4647_v52  ;;  %v6292_v18 = vld [vmem:[#allocation27_spill] sm:$0xff]  ;;  %v5417_v35 = vld [vmem:[%s4512_s24 + $0x330] sm:$0xff]  }
 0x11e   : > { %v1528_v62 = vmul.f32 %v6288_v46, %v4782_v9  ;;  %6289 = vst [vmem:[#allocation26_spill] sm:$0xff] %v5375_v4  ;;  %6290 = vst [vmem:[#allocation28_spill] sm:$0xff] %v5383_v61  ;;  %v3350_v11 = vunpack.c.h.bf16 %v5358_v29  ;;  %v1737_v63 = vadd.f32 %v5260_v36, %v1698_v19  ;;  %v1612_v21 = vadd.f32 %v5248_v17, %v1545_v6  ;;  %v5406_v6 = vld [vmem:[%s4512_s24 + $0x2f0] sm:$0xff]  }
 0x11f   : > { %1890 = vmax.xlane.f32.xlu1 %v5383_v61  ;;  %1904 = vmax.xlane.f32.xlu0 %v5375_v4  ;;  %v3382_v42 = vunpack.c.h.bf16 %v5364_v55  ;;  %v3414_v32 = vunpack.c.h.bf16 %v5367_v25  ;;  %v1477_v3 = vadd.f32 %v1461_v13, %v1410_v50  ;;  %v883_v34 = vadd.f32 %v867_v57, %v816_v2  ;;  %v1663_v13 = vpop.permute.xlu0 %1662  ;;  %v6293_v50 = vld [vmem:[#allocation29_spill] sm:$0xff] }
 0x120   : > { %v934_v33 = vmul.f32 %v3350_v11, %v4660_v58  ;;  %v3446_v14 = vunpack.c.h.bf16 %v5378_v47  ;;  %v1736_v17 = vadd.f32 %v5260_v36, %v1693_v16  ;;  %v1731_v19 = vadd.f32 %v5260_v36, %v1668_v31  ;;  %v5420_v31 = vld [vmem:[%s4512_s24 + $0x370] sm:$0xff]  }
 0x121   : > { %v1001_v23 = vmul.f32 %v3382_v42, %v4684_v7  ;;  %v3478_v56 = vunpack.c.h.bf16 %v5388_v51  ;;  %v1544_v26 = vadd.f32 %v1528_v62, %v1477_v3  ;;  %v6291_v1 = vunpack.c.l.bf16 %v5213_v60 }
 0x122   : > { %v950_v10 = vadd.f32 %v934_v33, %v883_v34  ;;  %v1068_v2 = vmul.f32 %v3414_v32, %v4695_v12  ;;  %v5413_v16 = vadd.f32 %v1729_v41, %v6292_v18  ;;  %v3510_v46 = vunpack.c.h.bf16 %v5399_v39  ;;  %v5435_v34 = vld [vmem:[%s4512_s24 + $0x3b0] sm:$0xff]  }
 0x123   : > { %v1595_v40 = vmul.f32 %v6291_v1, %v4797_v53  ;;  %v5423_v62 = vadd.f32 %v1737_v63, %v6293_v50  ;;  %v1135_v60 = vmul.f32 %v3446_v14, %v4716_v22  ;;  %v3542_v11 = vunpack.c.h.bf16 %v5406_v6 }
 0x124   : > { %v1017_v57 = vadd.f32 %v1001_v23, %v950_v10  ;;  %v5428_v42 = vadd.f32 %v1736_v17, %v5262_v28  ;;  %v5430_v41 = vadd.f32 %v1731_v19, %v1612_v21  ;;  %v1730_v32 = vadd.f32 %v5260_v36, %v1663_v13  ;;  %v5441_v10 = vld [vmem:[%s4512_s24 + $0x3f0] sm:$0xff]  }
 0x125   : > { %v1202_v3 = vmul.f32 %v3478_v56, %v4735_v45  ;;  %v1611_v33 = vadd.f32 %v1595_v40, %v1544_v26  ;;  %v3574_v63 = vunpack.c.h.bf16 %v5417_v35  ;;  %v3606_v23 = vunpack.c.h.bf16 %v5420_v31 }
 0x126   : > { %v1084_v1 = vadd.f32 %v1068_v2, %v1017_v57  ;;  %v1269_v14 = vmul.f32 %v3510_v46, %v4746_v59  ;;  %v3189_v28 = vunpack.c.l.bf16 %v5281_v54  ;;  %v3221_v21 = vunpack.c.l.bf16 %v5284_v27  ;;  %v1708_v57 = vpop.permute.xlu1 %1707 }
 0x127   : > { %v3253_v17 = vunpack.c.l.bf16 %v5287_v24  ;;  %v1336_v56 = vmul.f32 %v3542_v11, %v4761_v20  ;;  %v3638_v13 = vunpack.c.h.bf16 %v5435_v34  ;;  %v3285_v26 = vunpack.c.l.bf16 %v5316_v0 }
 0x128   : > { %v1151_v19 = vadd.f32 %v1135_v60, %v1084_v1  ;;  %v614_v40 = vmul.f32 %v3189_v28, %v4602_v30  ;;  %v665_v2 = vmul.f32 %v3221_v21, %v4616_v37  ;;  %v3317_v46 = vunpack.c.l.bf16 %v5342_v5 }
 0x129   : > { %v732_v18 = vmul.f32 %v3253_v17, %v4618_v38  ;;  %v1403_v27 = vmul.f32 %v3574_v63, %v4772_v48  ;;  %v1470_v24 = vmul.f32 %v3606_v23, %v4775_v49  ;;  %v3670_v50 = vunpack.c.h.bf16 %v5441_v10 }
 0x12a   : > { %v1218_v54 = vadd.f32 %v1202_v3, %v1151_v19  ;;  %v681_v60 = vadd.f32 %v665_v2, %v614_v40  ;;  %v799_v11 = vmul.f32 %v3285_v26, %v4630_v44  ;;  %v3349_v0 = vunpack.c.l.bf16 %v5358_v29 }
 0x12b   : > { %v3381_v1 = vunpack.c.l.bf16 %v5364_v55  ;;  %v5459_v28 = vadd.f32 %v1730_v32, %v1611_v33  ;;  %v3413_v5 = vunpack.c.l.bf16 %v5367_v25  ;;  %v3445_v3 = vunpack.c.l.bf16 %v5378_v47 }
 0x12c   : > { %v1285_v21 = vadd.f32 %v1269_v14, %v1218_v54  ;;  %v1537_v63 = vmul.f32 %v3638_v13, %v4782_v9  ;;  %v748_v23 = vadd.f32 %v732_v18, %v681_v60  ;;  %v866_v17 = vmul.f32 %v3317_v46, %v4647_v52  ;;  %v5475_v13 = vld [vmem:[%s4518_s19 + $0x28] sm:$0xff]   ;;  %v5484_v54 = vld [vmem:[%s4512_s24 + $0x18] sm:$0xff]  }
 0x12d   : > { %v3477_v19 = vunpack.c.l.bf16 %v5388_v51  ;;  %v1604_v29 = vmul.f32 %v3670_v50, %v4797_v53  ;;  %v5468_v55 = vadd.f32 %v5260_v36, %v1708_v57  ;;  %v3509_v32 = vunpack.c.l.bf16 %v5399_v39 }
 0x12e   : > { %v1352_v26 = vadd.f32 %v1336_v56, %v1285_v21  ;;  %v815_v25 = vadd.f32 %v799_v11, %v748_v23  ;;  %v933_v47 = vmul.f32 %v3349_v0, %v4660_v58  ;;  %v1000_v33 = vmul.f32 %v3381_v1, %v4684_v7  ;;  %v6294_v0 = vld [vmem:[#allocation30_spill] sm:$0xff]  ;;  %v5502_v23 = vld [vmem:[%s4512_s24 + $0xd8] sm:$0xff]  }
 0x12f   : > { %v3541_v14 = vunpack.c.l.bf16 %v5406_v6  ;;  %v1067_v56 = vmul.f32 %v3413_v5, %v4695_v12  ;;  %v1134_v40 = vmul.f32 %v3445_v3, %v4716_v22  ;;  %vm1768_vm11 = vcmp.gt.f32.partialorder %v5428_v42, 0.0  ;;  %v5487_v6 = vld [vmem:[%s4512_s24 + $0x58] sm:$0xff]  }
 0x130   : > { %v1419_v51 = vadd.f32 %v1403_v27, %v1352_v26  ;;  %v882_v2 = vadd.f32 %v866_v17, %v815_v25  ;;  %v1201_v18 = vmul.f32 %v3477_v19, %v4735_v45  ;;  %v3573_v39 = vunpack.c.l.bf16 %v5417_v35  ;;  %v5499_v3 = vld [vmem:[%s4512_s24 + $0x98] sm:$0xff]  }
 0x131   : > { %v1784_v46 = vmul.f32 0.01, %v5428_v42  ;;  %v1268_v50 = vmul.f32 %v3509_v32, %v4746_v59  ;;  %v3697_v57 = vunpack.c.l.bf16 %v5475_v13  ;;  %vm1761_vm12 = vcmp.gt.f32.partialorder %v5413_v16, 0.0  ;;  %v5505_v17 = vld [vmem:[%s4512_s24 + $0x118] sm:$0xff]  }
 0x132   : > { %v1486_v27 = vadd.f32 %v1470_v24, %v1419_v51  ;;  %v949_v60 = vadd.f32 %v933_v47, %v882_v2  ;;  %v1777_v35 = vmul.f32 0.01, %v5413_v16  ;;  %v3682_v1 = vunpack.c.h.bf16 %v6294_v0  ;;  %v5516_v51 = vld [vmem:[%s4512_s24 + $0x158] sm:$0xff]   ;;  %v1703_v0 = vpop.permute.xlu0 %1702 }
 0x133   : > { %v1800_v11 = vsel %vm1768_vm11, %v5428_v42, %v1784_v46  ;;  %v1335_v21 = vmul.f32 %v3541_v14, %v4761_v20  ;;  %vm1848_vm13 = vcmp.gt.f32.partialorder %v3697_v57, 0.5  ;;  %v3178_v5 = vunpack.c.h.bf16 %v5484_v54  ;;  %v5523_v46 = vld [vmem:[%s4512_s24 + $0x198] sm:$0xff]  }
 0x134   : > { %v3210_v24 = vunpack.c.h.bf16 %v5487_v6  ;;  %v1016_v42 = vadd.f32 %v1000_v33, %v949_v60  ;;  %v5507_v19 = vsel %vm1848_vm13, %v1800_v11, -1e+30  ;;  %v1793_v26 = vsel %vm1761_vm12, %v5413_v16, %v1777_v35  ;;  %v5532_v35 = vld [vmem:[%s4512_s24 + $0x218] sm:$0xff]  }
 0x135   : > { %6295 = vst [vmem:[#allocation27_spill] sm:$0xff] %v5507_v19  ;;  %vm1841_vm14 = vcmp.gt.f32.partialorder %v3682_v1, 0.5  ;;  %v1553_v32 = vadd.f32 %v1537_v63, %v1486_v27  ;;  %1906 = vmax.xlane.f32.xlu1 %v5507_v19  ;;  %v609_v47 = vmul.f32 %v3178_v5, %v4602_v30  ;;  %v3242_v33 = vunpack.c.h.bf16 %v5499_v3  ;;  %v5526_v27 = vld [vmem:[%s4512_s24 + $0x1d8] sm:$0xff]  }
 0x136   : > { %v5511_v25 = vsel %vm1841_vm14, %v1793_v26, -1e+30  ;;  %v660_v14 = vmul.f32 %v3210_v24, %v4616_v37  ;;  %v1083_v2 = vadd.f32 %v1067_v56, %v1016_v42  ;;  %v3274_v16 = vunpack.c.h.bf16 %v5502_v23  ;;  %v5538_v26 = vld [vmem:[%s4512_s24 + $0x258] sm:$0xff]  }
 0x137   : > { %6296 = vst [vmem:[#allocation29_spill] sm:$0xff] %v5511_v25  ;;  %1892 = vmax.xlane.f32.xlu0 %v5511_v25  ;;  %v3306_v63 = vunpack.c.h.bf16 %v5505_v17  ;;  %v1402_v57 = vmul.f32 %v3573_v39, %v4772_v48  ;;  %v3605_v60 = vunpack.c.l.bf16 %v5420_v31  ;;  %v3637_v56 = vunpack.c.l.bf16 %v5435_v34 }
 0x138   : > { %v676_v11 = vadd.f32 %v660_v14, %v609_v47  ;;  %v1150_v1 = vadd.f32 %v1134_v40, %v1083_v2  ;;  %v727_v5 = vmul.f32 %v3242_v33, %v4618_v38  ;;  %v794_v24 = vmul.f32 %v3274_v16, %v4630_v44  ;;  %v5544_v47 = vld [vmem:[%s4512_s24 + $0x298] sm:$0xff]  }
 0x139   : > { %v3338_v42 = vunpack.c.h.bf16 %v5516_v51  ;;  %v1620_v19 = vadd.f32 %v1604_v29, %v1553_v32  ;;  %v3669_v39 = vunpack.c.l.bf16 %v5441_v10  ;;  %v3370_v31 = vunpack.c.h.bf16 %v5523_v46  ;;  %v5555_v32 = vld [vmem:[%s4512_s24 + $0x2d8] sm:$0xff]  }
 0x13a   : > { %v3402_v34 = vunpack.c.h.bf16 %v5526_v27  ;;  %v1217_v40 = vadd.f32 %v1201_v18, %v1150_v1  ;;  %v743_v14 = vadd.f32 %v727_v5, %v676_v11  ;;  %v861_v2 = vmul.f32 %v3306_v63, %v4647_v52  ;;  %v5560_v63 = vld [vmem:[%s4512_s24 + $0x318] sm:$0xff]  }
 0x13b   : > { %v3434_v33 = vunpack.c.h.bf16 %v5532_v35  ;;  %v1469_v16 = vmul.f32 %v3605_v60, %v4775_v49  ;;  %v1536_v25 = vmul.f32 %v3637_v56, %v4782_v9  ;;  %v5551_v29 = vadd.f32 %v5260_v36, %v1703_v0 }
 0x13c   : > { %v3466_v10 = vunpack.c.h.bf16 %v5538_v26  ;;  %v1284_v61 = vadd.f32 %v1268_v50, %v1217_v40  ;;  %v810_v4 = vadd.f32 %v794_v24, %v743_v14  ;;  %v928_v18 = vmul.f32 %v3338_v42, %v4660_v58 }
 0x13d   : > { %v3498_v11 = vunpack.c.h.bf16 %v5544_v47  ;;  %v5563_v60 = vadd.f32 %v5468_v55, %v1620_v19  ;;  %v1603_v56 = vmul.f32 %v3669_v39, %v4797_v53  ;;  %v995_v0 = vmul.f32 %v3370_v31, %v4684_v7 }
 0x13e   : > { %v1062_v1 = vmul.f32 %v3402_v34, %v4695_v12  ;;  %v1351_v50 = vadd.f32 %v1335_v21, %v1284_v61  ;;  %v877_v5 = vadd.f32 %v861_v2, %v810_v4  ;;  %v1129_v24 = vmul.f32 %v3434_v33, %v4716_v22  ;;  %v5580_v61 = vld [vmem:[%s4512_s24 + $0x398] sm:$0xff]  }
 0x13f   : > { %v3530_v42 = vunpack.c.h.bf16 %v5555_v32  ;;  %v1196_v40 = vmul.f32 %v3466_v10, %v4735_v45  ;;  %v3562_v14 = vunpack.c.h.bf16 %v5560_v63  ;;  %v3177_v55 = vunpack.c.l.bf16 %v5484_v54  ;;  %v5583_v21 = vld [vmem:[%s4512_s24 + $0x3d8] sm:$0xff]  }
 0x140   : > { %v3209_v19 = vunpack.c.l.bf16 %v5487_v6  ;;  %v1418_v39 = vadd.f32 %v1402_v57, %v1351_v50  ;;  %v944_v8 = vadd.f32 %v928_v18, %v877_v5  ;;  %v1263_v31 = vmul.f32 %v3498_v11, %v4746_v59 }
 0x141   : > { %v3241_v4 = vunpack.c.l.bf16 %v5499_v3  ;;  %v608_v34 = vmul.f32 %v3177_v55, %v4602_v30  ;;  %v3273_v54 = vunpack.c.l.bf16 %v5502_v23  ;;  %v3305_v6 = vunpack.c.l.bf16 %v5505_v17  ;;  %v1678_v17 = vpop.permute.xlu1 %1677 }
 0x142   : > { %v659_v2 = vmul.f32 %v3209_v19, %v4616_v37  ;;  %v1485_v57 = vadd.f32 %v1469_v16, %v1418_v39  ;;  %v1011_v33 = vadd.f32 %v995_v0, %v944_v8  ;;  %v1330_v10 = vmul.f32 %v3530_v42, %v4761_v20 }
 0x143   : > { %v726_v18 = vmul.f32 %v3241_v4, %v4618_v38  ;;  %v3594_v3 = vunpack.c.h.bf16 %v5576_v15  ;;  %v793_v50 = vmul.f32 %v3273_v54, %v4630_v44  ;;  %v3337_v5 = vunpack.c.l.bf16 %v5516_v51 }
 0x144   : > { %v675_v11 = vadd.f32 %v659_v2, %v608_v34  ;;  %v1552_v55 = vadd.f32 %v1536_v25, %v1485_v57  ;;  %v1078_v43 = vadd.f32 %v1062_v1, %v1011_v33  ;;  %v3626_v19 = vunpack.c.h.bf16 %v5580_v61 }
 0x145   : > { %v3658_v23 = vunpack.c.h.bf16 %v5583_v21  ;;  %v860_v8 = vmul.f32 %v3305_v6, %v4647_v52  ;;  %v3369_v0 = vunpack.c.l.bf16 %v5523_v46  ;;  %v3401_v42 = vunpack.c.l.bf16 %v5526_v27 }
 0x146   : > { %v742_v16 = vadd.f32 %v726_v18, %v675_v11  ;;  %v1145_v39 = vadd.f32 %v1129_v24, %v1078_v43  ;;  %v1397_v4 = vmul.f32 %v3562_v14, %v4772_v48  ;;  %v3433_v51 = vunpack.c.l.bf16 %v5532_v35  ;;  %v5615_v24 = vld [vmem:[%s4518_s19 + $0x10] sm:$0xff]  }
 0x147   : > { %v3465_v25 = vunpack.c.l.bf16 %v5538_v26  ;;  %v1619_v1 = vadd.f32 %v1603_v56, %v1552_v55  ;;  %v927_v2 = vmul.f32 %v3337_v5, %v4660_v58  ;;  %v3497_v54 = vunpack.c.l.bf16 %v5544_v47 }
 0x148   : > { %v809_v34 = vadd.f32 %v793_v50, %v742_v16  ;;  %v1212_v57 = vadd.f32 %v1196_v40, %v1145_v39  ;;  %v1464_v6 = vmul.f32 %v3594_v3, %v4775_v49  ;;  %v1531_v46 = vmul.f32 %v3626_v19, %v4782_v9  ;;  %v5626_v50 = vld [vmem:[%s4512_s24 + $0x38] sm:$0xff]  }
 0x149   : > { %v5607_v43 = vadd.f32 %v5260_v36, %v1678_v17  ;;  %v5610_v27 = vmul.f32 %v3658_v23, %v4797_v53  ;;  %v994_v26 = vmul.f32 %v3369_v0, %v4684_v7  ;;  %v1061_v56 = vmul.f32 %v3401_v42, %v4695_v12  ;;  %v5635_v17 = vld [vmem:[%s4512_s24 + $0x78] sm:$0xff]  }
 0x14a   : > { %v876_v35 = vadd.f32 %v860_v8, %v809_v34  ;;  %v1279_v47 = vadd.f32 %v1263_v31, %v1212_v57  ;;  %v1128_v40 = vmul.f32 %v3433_v51, %v4716_v22  ;;  %v1195_v14 = vmul.f32 %v3465_v25, %v4735_v45  ;;  %v5643_v0 = vld [vmem:[%s4512_s24 + $0xf8] sm:$0xff]  }
 0x14b   : > { %v3529_v33 = vunpack.c.l.bf16 %v5555_v32  ;;  %v5621_v18 = vadd.f32 %v5551_v29, %v1619_v1  ;;  %v1262_v11 = vmul.f32 %v3497_v54, %v4746_v59  ;;  %vm1762_vm15 = vcmp.gt.f32.partialorder %v5459_v28, 0.0  ;;  %v5661_v57 = vld [vmem:[%s4512_s24 + $0x178] sm:$0xff]  }
 0x14c   : > { %v943_v3 = vadd.f32 %v927_v2, %v876_v35  ;;  %v1346_v31 = vadd.f32 %v1330_v10, %v1279_v47  ;;  %v3561_v5 = vunpack.c.l.bf16 %v5560_v63  ;;  %v1778_v55 = vmul.f32 0.01, %v5459_v28  ;;  %v5640_v10 = vld [vmem:[%s4512_s24 + $0xb8] sm:$0xff]   ;;  %v1673_v35 = vpop.permute.xlu0 %1672 }
 0x14d   : > { %v3685_v19 = vunpack.c.l.bf16 %v5615_v24  ;;  %vm1769_vm0 = vcmp.gt.f32.partialorder %v5423_v62, 0.0  ;;  %v1785_v29 = vmul.f32 0.01, %v5423_v62  ;;  %v3698_v23 = vunpack.c.h.bf16 %v5475_v13  ;;  %v5649_v13 = vld [vmem:[%s4512_s24 + $0x138] sm:$0xff]  }
 0x14e   : > { %v1010_v32 = vadd.f32 %v994_v26, %v943_v3  ;;  %v1413_v16 = vadd.f32 %v1397_v4, %v1346_v31  ;;  %v1794_v8 = vsel %vm1762_vm15, %v5459_v28, %v1778_v55  ;;  %v3194_v63 = vunpack.c.h.bf16 %v5626_v50 }
 0x14f   : > { %vm1842_vm1 = vcmp.gt.f32.partialorder %v3685_v19, 0.5  ;;  %v1801_v51 = vsel %vm1769_vm0, %v5423_v62, %v1785_v29  ;;  %vm1849_vm2 = vcmp.gt.f32.partialorder %v3698_v23, 0.5  ;;  %v3226_v1 = vunpack.c.h.bf16 %v5635_v17  ;;  %v5673_v19 = vld [vmem:[%s4512_s24 + $0x1f8] sm:$0xff]  }
 0x150   : > { %v1077_v42 = vadd.f32 %v1061_v56, %v1010_v32  ;;  %v5645_v39 = vsel %vm1842_vm1, %v1794_v8, -1e+30  ;;  %v1480_v25 = vadd.f32 %v1464_v6, %v1413_v16  ;;  %v5652_v28 = vsel %vm1849_vm2, %v1801_v51, -1e+30  ;;  %v5682_v16 = vld [vmem:[%s4512_s24 + $0x278] sm:$0xff]  }
 0x151   : > { %1894 = vmax.xlane.f32.xlu1 %v5645_v39  ;;  %v617_v4 = vmul.f32 %v3194_v63, %v4602_v30  ;;  %v1329_v2 = vmul.f32 %v3529_v33, %v4761_v20  ;;  %1908 = vmax.xlane.f32.xlu0 %v5652_v28  ;;  %v3258_v62 = vunpack.c.h.bf16 %v5640_v10  ;;  %v3290_v54 = vunpack.c.h.bf16 %v5643_v0 }
 0x152   : > { %v1144_v34 = vadd.f32 %v1128_v40, %v1077_v42  ;;  %v1547_v6 = vadd.f32 %v1531_v46, %v1480_v25  ;;  %v3593_v26 = vunpack.c.l.bf16 %v5576_v15  ;;  %v668_v56 = vmul.f32 %v3226_v1, %v4616_v37  ;;  %v5667_v40 = vld [vmem:[%s4512_s24 + $0x1b8] sm:$0xff]  }
 0x153   : > { %v3322_v47 = vunpack.c.h.bf16 %v5649_v13  ;;  %v1396_v3 = vmul.f32 %v3561_v5, %v4772_v48  ;;  %v3625_v31 = vunpack.c.l.bf16 %v5580_v61  ;;  %v735_v55 = vmul.f32 %v3258_v62, %v4618_v38  ;;  %v5676_v46 = vld [vmem:[%s4512_s24 + $0x238] sm:$0xff]  }
 0x154   : > { %v1211_v33 = vadd.f32 %v1195_v14, %v1144_v34  ;;  %v3657_v15 = vunpack.c.l.bf16 %v5583_v21  ;;  %v684_v32 = vadd.f32 %v668_v56, %v617_v4  ;;  %v802_v29 = vmul.f32 %v3290_v54, %v4630_v44  ;;  %v5685_v14 = vld [vmem:[%s4512_s24 + $0x2b8] sm:$0xff]  }
 0x155   : > { %v3354_v23 = vunpack.c.h.bf16 %v5661_v57  ;;  %v1614_v61 = vadd.f32 %v5610_v27, %v1547_v6  ;;  %v5689_v8 = vadd.f32 %v5260_v36, %v1673_v35  ;;  %v3386_v63 = vunpack.c.h.bf16 %v5667_v40  ;;  %v5696_v4 = vld [vmem:[%s4512_s24 + $0x2f8] sm:$0xff]  }
 0x156   : > { %v1278_v5 = vadd.f32 %v1262_v11, %v1211_v33  ;;  %v751_v42 = vadd.f32 %v735_v55, %v684_v32  ;;  %v869_v21 = vmul.f32 %v3322_v47, %v4647_v52  ;;  %v3418_v51 = vunpack.c.h.bf16 %v5673_v19  ;;  %v5705_v56 = vld [vmem:[%s4512_s24 + $0x338] sm:$0xff]  }
 0x157   : > { %v3450_v25 = vunpack.c.h.bf16 %v5676_v46  ;;  %v1463_v27 = vmul.f32 %v3593_v26, %v4775_v49  ;;  %v3482_v11 = vunpack.c.h.bf16 %v5682_v16  ;;  %v3514_v34 = vunpack.c.h.bf16 %v5685_v14  ;;  %v5715_v32 = vld [vmem:[%s4512_s24 + $0x378] sm:$0xff]  }
 0x158   : > { %v1345_v1 = vadd.f32 %v1329_v2, %v1278_v5  ;;  %v1530_v62 = vmul.f32 %v3625_v31, %v4782_v9  ;;  %v1597_v54 = vmul.f32 %v3657_v15, %v4797_v53  ;;  %v818_v6 = vadd.f32 %v802_v29, %v751_v42  ;;  %v5725_v42 = vld [vmem:[%s4512_s24 + $0x3f8] sm:$0xff]  }
 0x159   : > { %v936_v35 = vmul.f32 %v3354_v23, %v4660_v58  ;;  %v5708_v2 = vadd.f32 %v5607_v43, %v1614_v61  ;;  %v1003_v26 = vmul.f32 %v3386_v63, %v4684_v7  ;;  %v3546_v33 = vunpack.c.h.bf16 %v5696_v4  ;;  %v5722_v63 = vld [vmem:[%s4512_s24 + $0x3b8] sm:$0xff]  }
 0x15a   : > { %v1412_v47 = vadd.f32 %v1396_v3, %v1345_v1  ;;  %v885_v55 = vadd.f32 %v869_v21, %v818_v6  ;;  %v1070_v31 = vmul.f32 %v3418_v51, %v4695_v12  ;;  %v1137_v15 = vmul.f32 %v3450_v25, %v4716_v22 }
 0x15b   : > { %v3193_v29 = vunpack.c.l.bf16 %v5626_v50  ;;  %v1204_v5 = vmul.f32 %v3482_v11, %v4735_v45  ;;  %v1271_v43 = vmul.f32 %v3514_v34, %v4746_v59  ;;  %v3578_v3 = vunpack.c.h.bf16 %v5705_v56  ;;  %v1718_v34 = vpop.permute.xlu1 %1717 }
 0x15c   : > { %v1479_v23 = vadd.f32 %v1463_v27, %v1412_v47  ;;  %v952_v61 = vadd.f32 %v936_v35, %v885_v55  ;;  %v3225_v51 = vunpack.c.l.bf16 %v5635_v17  ;;  %v3257_v25 = vunpack.c.l.bf16 %v5640_v10 }
 0x15d   : > { %v616_v21 = vmul.f32 %v3193_v29, %v4602_v30  ;;  %v1338_v50 = vmul.f32 %v3546_v33, %v4761_v20  ;;  %v3610_v27 = vunpack.c.h.bf16 %v5715_v32  ;;  %v3289_v11 = vunpack.c.l.bf16 %v5643_v0 }
 0x15e   : > { %v1546_v1 = vadd.f32 %v1530_v62, %v1479_v23  ;;  %v1019_v6 = vadd.f32 %v1003_v26, %v952_v61  ;;  %v667_v35 = vmul.f32 %v3225_v51, %v4616_v37  ;;  %v734_v47 = vmul.f32 %v3257_v25, %v4618_v38 }
 0x15f   : > { %v3321_v55 = vunpack.c.l.bf16 %v5649_v13  ;;  %v1405_v30 = vmul.f32 %v3578_v3, %v4772_v48  ;;  %v3642_v17 = vunpack.c.h.bf16 %v5722_v63  ;;  %v3674_v10 = vunpack.c.h.bf16 %v5725_v42 }
 0x160   : > { %v3353_v62 = vunpack.c.l.bf16 %v5661_v57  ;;  %v1086_v33 = vadd.f32 %v1070_v31, %v1019_v6  ;;  %v683_v29 = vadd.f32 %v667_v35, %v616_v21  ;;  %v801_v0 = vmul.f32 %v3289_v11, %v4630_v44 }
 0x161   : > { %v3385_v26 = vunpack.c.l.bf16 %v5667_v40  ;;  %v1613_v23 = vadd.f32 %v1597_v54, %v1546_v1  ;;  %v5743_v37 = vadd.f32 %v5260_v36, %v1718_v34  ;;  %v3417_v38 = vunpack.c.l.bf16 %v5673_v19 }
 0x162   : > { %v3449_v13 = vunpack.c.l.bf16 %v5676_v46  ;;  %v1153_v3 = vadd.f32 %v1137_v15, %v1086_v33  ;;  %v750_v61 = vadd.f32 %v734_v47, %v683_v29  ;;  %v868_v51 = vmul.f32 %v3321_v55, %v4647_v52  ;;  %v3839_v15 = vld [vmem:[%s4518_s19 + $0x30] sm:$0xff]  }
 0x163   : > { %v3481_v57 = vunpack.c.l.bf16 %v5682_v16  ;;  %v1472_v31 = vmul.f32 %v3610_v27, %v4775_v49  ;;  %v1539_v44 = vmul.f32 %v3642_v17, %v4782_v9  ;;  %v1606_v40 = vmul.f32 %v3674_v10, %v4797_v53 }
 0x164   : > { %v3513_v54 = vunpack.c.l.bf16 %v5685_v14  ;;  %v1220_v36 = vadd.f32 %v1204_v5, %v1153_v3  ;;  %v817_v21 = vadd.f32 %v801_v0, %v750_v61  ;;  %v935_v19 = vmul.f32 %v3353_v62, %v4660_v58 }
 0x165   : > { %v1002_v46 = vmul.f32 %v3385_v26, %v4684_v7  ;;  %v1748_v25 = vadd.f32 %v5689_v8, %v1613_v23  ;;  %v1069_v52 = vmul.f32 %v3417_v38, %v4695_v12  ;;  %v1136_v16 = vmul.f32 %v3449_v13, %v4716_v22  ;;  %v3836_v22 = vld [vmem:[%s4518_s19 + $0x18] sm:$0xff]  }
 0x166   : > { %v3545_v1 = vunpack.c.l.bf16 %v5696_v4  ;;  %v1287_v27 = vadd.f32 %v1271_v43, %v1220_v36  ;;  %v884_v11 = vadd.f32 %v868_v51, %v817_v21  ;;  %v1203_v14 = vmul.f32 %v3481_v57, %v4735_v45  ;;  %v3840_v26 = vld [vmem:[%s4518_s19 + $0x38] sm:$0xff]  }
 0x167   : > { %vm1770_vm3 = vcmp.gt.f32.partialorder %v5621_v18, 0.0  ;;  %v1270_v58 = vmul.f32 %v3513_v54, %v4746_v59  ;;  %v3577_v7 = vunpack.c.l.bf16 %v5705_v56  ;;  %v1786_v5 = vmul.f32 0.01, %v5621_v18 }
 0x168   : > { %v3701_v8 = vunpack.c.l.bf16 %v3839_v15  ;;  %v1354_v34 = vadd.f32 %v1338_v50, %v1287_v27  ;;  %v951_v6 = vadd.f32 %v935_v19, %v884_v11  ;;  %vm1763_vm4 = vcmp.gt.f32.partialorder %v5430_v41, 0.0 }
 0x169   : > { %v1779_v12 = vmul.f32 0.01, %v5430_v41  ;;  %v1802_v4 = vsel %vm1770_vm3, %v5621_v18, %v1786_v5  ;;  %v3686_v45 = vunpack.c.h.bf16 %v5615_v24  ;;  %vm1764_vm6 = vcmp.gt.f32.partialorder %v1748_v25, 0.0  ;;  %v5815_v5 = vld [vmem:[#allocation2 + $0x8] sm:$0xff] }
 0x16a   : > { %vm1850_vm5 = vcmp.gt.f32.partialorder %v3701_v8, 0.5  ;;  %v1421_v43 = vadd.f32 %v1405_v30, %v1354_v34  ;;  %v1018_v59 = vadd.f32 %v1002_v46, %v951_v6  ;;  %v1780_v50 = vmul.f32 0.01, %v1748_v25  ;;  %v1713_v46 = vpop.permute.xlu0 %1712  ;;  %v5817_v8 = vld [vmem:[#allocation2 + $0x40] sm:$0xff] }
 0x16b   : > { %v5770_v35 = vsel %vm1850_vm5, %v1802_v4, -1e+30  ;;  %v1795_v56 = vsel %vm1763_vm4, %v5430_v41, %v1779_v12  ;;  %vm1843_vm7 = vcmp.gt.f32.partialorder %v3686_v45, 0.5  ;;  %v3689_v47 = vunpack.c.l.bf16 %v3836_v22  ;;  %v5830_v45 = vld [vmem:[#allocation2 + $0x10] sm:$0xff] }
 0x16c   : > { %1910 = vmax.xlane.f32.xlu1 %v5770_v35  ;;  %vm1771_vm8 = vcmp.gt.f32.partialorder %v5563_v60, 0.0  ;;  %v1488_v55 = vadd.f32 %v1472_v31, %v1421_v43  ;;  %v1085_v18 = vadd.f32 %v1069_v52, %v1018_v59  ;;  %v5775_v17 = vsel %vm1843_vm7, %v1795_v56, -1e+30  ;;  %v5832_v43 = vld [vmem:[#allocation2 + $0x48] sm:$0xff] }
 0x16d   : > { %v1787_v24 = vmul.f32 0.01, %v5563_v60  ;;  %v1337_v30 = vmul.f32 %v3545_v1, %v4761_v20  ;;  %1896 = vmax.xlane.f32.xlu0 %v5775_v17  ;;  %v1796_v41 = vsel %vm1764_vm6, %v1748_v25, %v1780_v50  ;;  %vm1844_vm9 = vcmp.gt.f32.partialorder %v3689_v47, 0.5  ;;  %v4107_v25 = vld [vmem:[%s4535_s10] ss:$0 sm:$0xff] }
 0x16e   : > { %v3702_v10 = vunpack.c.h.bf16 %v3839_v15  ;;  %v1555_v62 = vadd.f32 %v1539_v44, %v1488_v55  ;;  %v1152_v33 = vadd.f32 %v1136_v16, %v1085_v18  ;;  %v5781_v29 = vsel %vm1844_vm9, %v1796_v41, -1e+30 }
 0x16f   : > { %v1803_v0 = vsel %vm1771_vm8, %v5563_v60, %v1787_v24  ;;  %v3609_v23 = vunpack.c.l.bf16 %v5715_v32  ;;  %vm1765_vm11 = vcmp.gt.f32.partialorder %v5708_v2, 0.0  ;;  %v1781_v20 = vmul.f32 0.01, %v5708_v2  ;;  %v4035_v24 = vld [vmem:[%s4540_s14 + $0x38] sm:$0xff]  }
 0x170   : > { %1898 = vmax.xlane.f32.xlu1 %v5781_v29  ;;  %vm1851_vm10 = vcmp.gt.f32.partialorder %v3702_v10, 0.5  ;;  %v1622_v38 = vadd.f32 %v1606_v40, %v1555_v62  ;;  %v1219_v13 = vadd.f32 %v1203_v14, %v1152_v33  ;;  %v3690_v61 = vunpack.c.h.bf16 %v3836_v22  ;;  %3857 = vmatprep.subr.bf16.mxu0 %v4035_v24  ;;  %v4037_v62 = vld [vmem:[%s4540_s14 + $0x28] sm:$0xff]   ;;  %v5863_v33 = vld [vmem:[#allocation2 + $0x50] sm:$0xff] }
 0x171   : > { %v5789_v3 = vsel %vm1851_vm10, %v1803_v0, -1e+30  ;;  %v1404_v51 = vmul.f32 %v3577_v7, %v4772_v48  ;;  %v1797_v60 = vsel %vm1765_vm11, %v5708_v2, %v1781_v20  ;;  %v3706_v57 = vunpack.c.h.bf16 %v3840_v26  ;;  %3889 = vmatprep.subr.bf16.mxu1 %v4035_v24  ;;  %3858 = vmatpush3.bf16.msra.mxu0 %v4035_v24  ;;  %v5865_v0 = vld [vmem:[#allocation2 + $0x18] sm:$0xff] }
 0x172   : > { %1912 = vmax.xlane.f32.xlu0 %v5789_v3  ;;  %v1757_v32 = vadd.f32 %v5743_v37, %v1622_v38  ;;  %v1286_v31 = vadd.f32 %v1270_v58, %v1219_v13  ;;  %v3641_v44 = vunpack.c.l.bf16 %v5722_v63  ;;  %vm1845_vm12 = vcmp.gt.f32.partialorder %v3690_v61, 0.5  ;;  %v5810_v58 = vld [vmem:[#allocation2] sm:$0xff]  ;;  %3897 = vmatpush3.bf16.msra.mxu1 %v4035_v24 }
 0x173   : > { %v1471_v54 = vmul.f32 %v3609_v23, %v4775_v49  ;;  %v3673_v40 = vunpack.c.l.bf16 %v5725_v42  ;;  %v5798_v21 = vsel %vm1845_vm12, %v1797_v60, -1e+30  ;;  %vm1853_vm14 = vcmp.gt.f32.partialorder %v3706_v57, 0.5  ;;  %v4038_v61 = vld [vmem:[%s4540_s14 + $0x20] sm:$0xff]   ;;  %v5880_v60 = vld [vmem:[#allocation2 + $0x58] sm:$0xff] }
 0x174   : > { %v1353_v36 = vadd.f32 %v1337_v30, %v1286_v31  ;;  %vm1773_vm13 = vcmp.gt.f32.partialorder %v1757_v32, 0.0  ;;  %v1789_v48 = vmul.f32 0.01, %v1757_v32  ;;  %v1538_v37 = vmul.f32 %v3641_v44, %v4782_v9  ;;  %v4036_v30 = vld [vmem:[%s4540_s14 + $0x30] sm:$0xff]  }
 0x175   : > { %v1605_v15 = vmul.f32 %v3673_v40, %v4797_v53  ;;  %v1740_v52 = vadd.f32 %v4107_v25, %v1713_v46  ;;  %v3705_v1 = vunpack.c.l.bf16 %v3840_v26  ;;  %vm2190_vm1 = vcmask 7168   ;;  %3859 = vmatprep.subr.bf16.mxu0 %v4036_v30  ;;  %3890 = vmatprep.subr.bf16.mxu1 %v4036_v30  ;;  %v5895_v40 = vld [vmem:[#allocation2 + $0x60] sm:$0xff] }
 0x176   : > { %1900 = vmax.xlane.f32.xlu0 %v5798_v21  ;;  %v1420_v2 = vadd.f32 %v1404_v51, %v1353_v36  ;;  %v1805_v19 = vsel %vm1773_vm13, %v1757_v32, %v1789_v48  ;;  %3860 = vmatpush3.bf16.msra.mxu0 %v4036_v30  ;;  %v5878_v51 = vld [vmem:[#allocation2 + $0x20] sm:$0xff]  ;;  %v1875_v48 = vld [vmem:[#allocation2 + $0x28] sm:$0xff] }
 0x177   : > { %v5803_v49 = vsel %vm1853_vm14, %v1805_v19, -1e+30  ;;  %vm1852_vm0 = vcmp.gt.f32.partialorder %v3705_v1, 0.5  ;;  %3898 = vmatpush3.bf16.msra.mxu1 %v4036_v30  ;;  %3861 = vmatprep.subr.bf16.mxu0 %v4037_v62  ;;  %v1876_v19 = vld [vmem:[#allocation2 + $0x30] sm:$0xff] }
 0x178   : > { %v1487_v63 = vadd.f32 %v1471_v54, %v1420_v2  ;;  %3891 = vmatprep.subr.bf16.mxu1 %v4037_v62  ;;  %v4039_v54 = vld [vmem:[%s4540_s14 + $0x18] sm:$0xff]  }
 0x17a   : > { %1916 = vmax.xlane.f32.xlu0 %v5803_v49  ;;  %v1554_v42 = vadd.f32 %v1538_v37, %v1487_v63  ;;  %3862 = vmatpush3.bf16.msra.mxu0 %v4037_v62 }
 0x17b   : > { %3899 = vmatpush3.bf16.msra.mxu1 %v4037_v62  ;;  %3863 = vmatprep.subr.bf16.mxu0 %v4038_v61 }
 0x17c   : > { %v1621_v16 = vadd.f32 %v1605_v15, %v1554_v42  ;;  %3892 = vmatprep.subr.bf16.mxu1 %v4038_v61  ;;  %v5906_v42 = vld [vmem:[#allocation2 + $0x68] sm:$0xff] }
 0x17e   : > { %v1756_v27 = vadd.f32 %v1740_v52, %v1621_v16  ;;  %3864 = vmatpush3.bf16.msra.mxu0 %v4038_v61  ;;  %v4040_v52 = vld [vmem:[%s4540_s14 + $0x10] sm:$0xff]  }
 0x17f   : > { %3900 = vmatpush3.bf16.msra.mxu1 %v4038_v61  ;;  %3865 = vmatprep.subr.bf16.mxu0 %v4039_v54  ;;  %v5947_v61 = vld [vmem:[#allocation2 + $0x70] sm:$0xff] }
 0x180   : > { %vm1772_vm15 = vcmp.gt.f32.partialorder %v1756_v27, 0.0  ;;  %v1788_v11 = vmul.f32 0.01, %v1756_v27  ;;  %3893 = vmatprep.subr.bf16.mxu1 %v4039_v54 }
 0x182   : > { %v1804_v14 = vsel %vm1772_vm15, %v1756_v27, %v1788_v11  ;;  %3866 = vmatpush3.bf16.msra.mxu0 %v4039_v54 }
 0x183   : > { %v5807_v9 = vsel %vm1852_vm0, %v1804_v14, -1e+30  ;;  %3901 = vmatpush3.bf16.msra.mxu1 %v4039_v54  ;;  %3867 = vmatprep.subr.bf16.mxu0 %v4040_v52  ;;  %v1877_v14 = vld [vmem:[#allocation2 + $0x38] sm:$0xff] }
 0x184   : > { %1914 = vmax.xlane.f32.xlu1 %v5807_v9  ;;  %3894 = vmatprep.subr.bf16.mxu1 %v4040_v52 }
 0x186   : > { %3868 = vmatpush3.bf16.msra.mxu0 %v4040_v52 }
 0x187   : > { %3902 = vmatpush3.bf16.msra.mxu1 %v4040_v52 }
 0x1a0   : > { %v1887_v53 = vpop.xlane.xlu0 %1886 }
 0x1a1   : > { %v5813_v7 = vmax.f32 %v5810_v58, %v1887_v53 }
 0x1a3   : > { %v1934_v34 = vsub.f32 %v5810_v58, %v5813_v7  ;;  %2520 = vst.msk [vmem:[#allocation2] sm:$0xff] %vm2190_vm1, %v5813_v7  ;;  %1984 = vperm.xlu1 %4034, %v5813_v7   ;;  %v1889_v6 = vpop.xlane.xlu1 %1888  ;;  %v4041_v58 = vld [vmem:[%s4540_s14 + $0x8] sm:$0xff]  }
 0x1a4   : > { %v1903_v12 = vpop.xlane.xlu0 %1902  ;;  %v5825_v22 = vmax.f32 %v5815_v5, %v1889_v6  ;;  %3869 = vmatprep.subr.bf16.mxu0 %v4041_v58  ;;  %3895 = vmatprep.subr.bf16.mxu1 %v4041_v58 }
 0x1a5   : > { %v5828_v4 = vmax.f32 %v5817_v8, %v1903_v12  ;;  %v1950_v46 = vmul.f32 1.442695, %v1934_v34  ;;  %v5922_v12 = vld [vmem:[#allocation2 + $0x78] sm:$0xff]  ;;  %3870 = vmatpush3.bf16.msra.mxu0 %v4041_v58  ;;  %3903 = vmatpush3.bf16.msra.mxu1 %v4041_v58 }
 0x1a6   : > { %v1935_v59 = vsub.f32 %v5815_v5, %v5825_v22  ;;  %2521 = vst.msk [vmem:[#allocation2 + $0x8] sm:$0xff] %vm2190_vm1, %v5825_v22  ;;  %1989 = vperm.xlu0 %4033, %v5825_v22  }
 0x1a7   : > { %v1942_v56 = vsub.f32 %v5817_v8, %v5828_v4  ;;  %2528 = vst.msk [vmem:[#allocation2 + $0x40] sm:$0xff] %vm2190_vm1, %v5828_v4  ;;  %2024 = vperm.xlu1 %4034, %v5828_v4   ;;  %4043 = vpow2.f32 %v1950_v46 }
 0x1a8   : > { %v1891_v50 = vpop.xlane.xlu1 %1890  ;;  %v1905_v47 = vpop.xlane.xlu0 %1904 }
 0x1a9   : > { %v5845_v55 = vmax.f32 %v5830_v45, %v1891_v50  ;;  %v5848_v18 = vmax.f32 %v5832_v43, %v1905_v47 }
 0x1ab   : > { %v1936_v41 = vsub.f32 %v5830_v45, %v5845_v55  ;;  %2522 = vst.msk [vmem:[#allocation2 + $0x10] sm:$0xff] %vm2190_vm1, %v5845_v55  ;;  %v1943_v10 = vsub.f32 %v5832_v43, %v5848_v18  ;;  %2529 = vst.msk [vmem:[#allocation2 + $0x48] sm:$0xff] %vm2190_vm1, %v5848_v18  ;;  %1994 = vperm.xlu0 %4033, %v5845_v55   ;;  %2029 = vperm.xlu1 %4034, %v5848_v18   ;;  %v1952_v45 = vmul.f32 1.442695, %v1935_v59 }
 0x1ac   : > { %v1966_v43 = vmul.f32 1.442695, %v1942_v56 }
 0x1ad   : > { %v1954_v1 = vmul.f32 1.442695, %v1936_v41 }
 0x1af   : > { %4045 = vpow2.f32 %v1954_v1 }
 0x1b4   : > { %v5938_v59 = vpop.eup %4043 }
 0x1be   : > { %v1907_v26 = vpop.xlane.xlu1 %1906 }
 0x1bf   : > { %v5868_v23 = vmax.f32 %v5863_v33, %v1907_v26  ;;  %v4042_v26 = vld [vmem:[%s4540_s14] sm:$0xff]  }
 0x1c0   : > { %v1893_v20 = vpop.xlane.xlu0 %1892  ;;  %3871 = vmatprep.subr.bf16.mxu0 %v4042_v26  ;;  %3896 = vmatprep.subr.bf16.mxu1 %v4042_v26 }
 0x1c1   : > { %v1921_v38 = vmax.f32 %v5865_v0, %v1893_v20  ;;  %v1944_v13 = vsub.f32 %v5863_v33, %v5868_v23  ;;  %2530 = vst.msk [vmem:[#allocation2 + $0x50] sm:$0xff] %vm2190_vm1, %v5868_v23  ;;  %2034 = vperm.xlu0 %4033, %v5868_v23   ;;  %v1968_v20 = vmul.f32 1.442695, %v1943_v10  ;;  %3872 = vmatpush3.bf16.msra.mxu0 %v4042_v26 }
 0x1c2   : > { %3904 = vmatpush3.bf16.msra.mxu1 %v4042_v26 }
 0x1c3   : > { %2523 = vst.msk [vmem:[#allocation2 + $0x18] sm:$0xff] %vm2190_vm1, %v1921_v38  ;;  %1999 = vperm.xlu1 %4034, %v1921_v38   ;;  %v1937_v27 = vsub.f32 %v5865_v0, %v1921_v38  ;;  %v1970_v8 = vmul.f32 1.442695, %v1944_v13 }
 0x1c5   : > { %v1956_v7 = vmul.f32 1.442695, %v1937_v27 }
 0x1c7   : > { %4047 = vpow2.f32 %v1956_v7  ;;  %v6300_v7 = vld [vmem:[#allocation26_spill] sm:$0xff] }
 0x1c8   : > { %4049 = vpow2.f32 %v1952_v45 }
 0x1da   : > { %v1895_v57 = vpop.xlane.xlu1 %1894  ;;  %v1909_v31 = vpop.xlane.xlu0 %1908 }
 0x1db   : > { %v5883_v32 = vmax.f32 %v5878_v51, %v1895_v57  ;;  %v5886_v44 = vmax.f32 %v5880_v60, %v1909_v31 }
 0x1dd   : > { %2524 = vst.msk [vmem:[#allocation2 + $0x20] sm:$0xff] %vm2190_vm1, %v5883_v32  ;;  %2004 = vperm.xlu0 %4033, %v5883_v32   ;;  %2531 = vst.msk [vmem:[#allocation2 + $0x58] sm:$0xff] %vm2190_vm1, %v5886_v44  ;;  %2039 = vperm.xlu1 %4034, %v5886_v44   ;;  %v1938_v50 = vsub.f32 %v5878_v51, %v5883_v32  ;;  %v1945_v38 = vsub.f32 %v5880_v60, %v5886_v44  ;;  %v5949_v51 = vpop.eup %4045 }
 0x1de   : > { %v5960_v32 = vpop.eup %4047 }
 0x1df   : > { %v1958_v5 = vmul.f32 1.442695, %v1938_v50  ;;  %v1972_v10 = vmul.f32 1.442695, %v1945_v38  ;;  %v5973_v56 = vpop.eup %4049 }
 0x1f5   : > { %v1911_v36 = vpop.xlane.xlu1 %1910 }
 0x1f6   : > { %v5898_v2 = vmax.f32 %v5895_v40, %v1911_v36  ;;  %v1897_v37 = vpop.xlane.xlu0 %1896 }
 0x1f7   : > { %v1923_v63 = vmax.f32 %v1875_v48, %v1897_v37 }
 0x1f8   : > { %2532 = vst.msk [vmem:[#allocation2 + $0x60] sm:$0xff] %vm2190_vm1, %v5898_v2  ;;  %2044 = vperm.xlu0 %4033, %v5898_v2   ;;  %v1946_v4 = vsub.f32 %v5895_v40, %v5898_v2  ;;  %v6297_v2 = vld [vmem:[#allocation31_spill] sm:$0xff] }
 0x1f9   : > { %v1899_v15 = vpop.xlane.xlu1 %1898  ;;  %2525 = vst.msk [vmem:[#allocation2 + $0x28] sm:$0xff] %vm2190_vm1, %v1923_v63  ;;  %2009 = vperm.xlu1 %4034, %v1923_v63   ;;  %v1939_v34 = vsub.f32 %v1875_v48, %v1923_v63 }
 0x1fa   : > { %v1924_v25 = vmax.f32 %v1876_v19, %v1899_v15  ;;  %v1974_v36 = vmul.f32 1.442695, %v1946_v4 }
 0x1fb   : > { %v1913_v16 = vpop.xlane.xlu0 %1912  ;;  %v1960_v55 = vmul.f32 1.442695, %v1939_v34 }
 0x1fc   : > { %2526 = vst.msk [vmem:[#allocation2 + $0x30] sm:$0xff] %vm2190_vm1, %v1924_v25  ;;  %v5916_v11 = vmax.f32 %v5906_v42, %v1913_v16  ;;  %2014 = vperm.xlu0 %4033, %v1924_v25   ;;  %v1940_v41 = vsub.f32 %v1876_v19, %v1924_v25  ;;  %v6298_v25 = vld [vmem:[#allocation32_spill] sm:$0xff]  ;;  %v6299_v16 = vld [vmem:[#allocation33_spill] sm:$0xff] }
 0x1fd   : > { %4051 = vpow2.f32 %v1960_v55  ;;  %v6301_v55 = vld [vmem:[#allocation28_spill] sm:$0xff] }
 0x1fe   : > { %2533 = vst.msk [vmem:[#allocation2 + $0x68] sm:$0xff] %vm2190_vm1, %v5916_v11  ;;  %2049 = vperm.xlu1 %4034, %v5916_v11   ;;  %v1962_v0 = vmul.f32 1.442695, %v1940_v41  ;;  %4053 = vpow2.f32 %v1958_v5  ;;  %v1947_v60 = vsub.f32 %v5906_v42, %v5916_v11 }
 0x1ff   : > { %v1901_v53 = vpop.xlane.xlu0 %1900 }
 0x200   : > { %v1925_v6 = vmax.f32 %v1877_v14, %v1901_v53  ;;  %v1976_v44 = vmul.f32 1.442695, %v1947_v60 }
 0x202   : > { %2527 = vst.msk [vmem:[#allocation2 + $0x38] sm:$0xff] %vm2190_vm1, %v1925_v6  ;;  %2019 = vperm.xlu1 %4034, %v1925_v6   ;;  %v1941_v24 = vsub.f32 %v1877_v14, %v1925_v6 }
 0x203   : > { %v1917_v47 = vpop.xlane.xlu0 %1916 }
 0x204   : > { %v5931_v30 = vmax.f32 %v5922_v12, %v1917_v47  ;;  %v1964_v22 = vmul.f32 1.442695, %v1941_v24 }
 0x206   : > { %v1949_v62 = vsub.f32 %v5922_v12, %v5931_v30  ;;  %2535 = vst.msk [vmem:[#allocation2 + $0x78] sm:$0xff] %vm2190_vm1, %v5931_v30  ;;  %2059 = vperm.xlu1 %4034, %v5931_v30   ;;  %4055 = vpow2.f32 %v1964_v22 }
 0x207   : > { %4057 = vpow2.f32 %v1962_v0 }
 0x208   : > { %4059 = vpow2.f32 %v1968_v20 }
 0x209   : > { %4061 = vpow2.f32 %v1966_v43 }
 0x20a   : > { %2225 = vperm.xlu1 %4034, %v5938_v59   ;;  %4063 = vpow2.f32 %v1972_v10  ;;  %v5975_v54 = vpop.eup %4051 }
 0x20b   : > { %4065 = vpow2.f32 %v1970_v8  ;;  %v5979_v48 = vpop.eup %4053 }
 0x20c   : > { %4067 = vpow2.f32 %v1976_v44 }
 0x20d   : > { %v1915_v57 = vpop.xlane.xlu1 %1914  ;;  %4069 = vpow2.f32 %v1974_v36  ;;  %v6303_v36 = vld [vmem:[#allocation27_spill] sm:$0xff] }
 0x20e   : > { %2235 = vperm.xlu1 %4034, %v5949_v51   ;;  %v5956_v18 = vmax.f32 %v5947_v61, %v1915_v57  ;;  %v6302_v57 = vld [vmem:[#allocation29_spill] sm:$0xff] }
 0x210   : > { %v1948_v31 = vsub.f32 %v5947_v61, %v5956_v18  ;;  %2534 = vst.msk [vmem:[#allocation2 + $0x70] sm:$0xff] %vm2190_vm1, %v5956_v18  ;;  %2054 = vperm.xlu0 %4033, %v5956_v18  }
 0x212   : > { %2240 = vperm.xlu1 %4034, %v5960_v32  }
 0x213   : > { %v5981_v33 = vpop.eup %4055 }
 0x214   : > { %2230 = vperm.xlu0 %4033, %v5973_v56   ;;  %v5984_v23 = vpop.eup %4057 }
 0x215   : > { %v5987_v13 = vpop.eup %4059 }
 0x216   : > { %2250 = vperm.xlu1 %4034, %v5975_v54   ;;  %v5992_v19 = vpop.eup %4061 }
 0x217   : > { %v5994_v46 = vpop.eup %4063 }
 0x218   : > { %2245 = vperm.xlu0 %4033, %v5979_v48   ;;  %v6000_v27 = vpop.eup %4065 }
 0x219   : > { %v6002_v11 = vpop.eup %4067 }
 0x21a   : > { %2260 = vperm.xlu1 %4034, %v5981_v33   ;;  %v6007_v6 = vpop.eup %4069 }
 0x21c   : > { %2255 = vperm.xlu0 %4033, %v5984_v23  }
 0x21e   : > { %2270 = vperm.xlu1 %4034, %v5987_v13   ;;  %v1985_v40 = vpop.permute.xlu1 %1984 }
 0x21f   : > { %v2062_v37 = vsub.f32 %v6297_v2, %v1985_v40 }
 0x220   : > { %2265 = vperm.xlu0 %4033, %v5992_v19  }
 0x221   : > { %v1990_v15 = vpop.permute.xlu0 %1989  ;;  %v2078_v42 = vmul.f32 1.442695, %v2062_v37 }
 0x222   : > { %2280 = vperm.xlu1 %4034, %v5994_v46   ;;  %v2025_v63 = vpop.permute.xlu1 %2024  ;;  %v2063_v1 = vsub.f32 %v6299_v16, %v1990_v15 }
 0x223   : > { %v2070_v52 = vsub.f32 %v6298_v25, %v2025_v63  ;;  %4071 = vpow2.f32 %v2078_v42 }
 0x224   : > { %2275 = vperm.xlu0 %4033, %v6000_v27   ;;  %v2080_v14 = vmul.f32 1.442695, %v2063_v1 }
 0x225   : > { %v2094_v58 = vmul.f32 1.442695, %v2070_v52 }
 0x226   : > { %2290 = vperm.xlu1 %4034, %v6002_v11   ;;  %v2030_v53 = vpop.permute.xlu1 %2029  ;;  %4073 = vpow2.f32 %v2080_v14  ;;  %v1995_v50 = vpop.permute.xlu0 %1994 }
 0x227   : > { %v2071_v34 = vsub.f32 %v6300_v7, %v2030_v53  ;;  %4075 = vpow2.f32 %v2094_v58  ;;  %v2064_v24 = vsub.f32 %v6301_v55, %v1995_v50 }
 0x228   : > { %2285 = vperm.xlu0 %4033, %v6007_v6  }
 0x229   : > { %v2096_v45 = vmul.f32 1.442695, %v2071_v34  ;;  %v2082_v26 = vmul.f32 1.442695, %v2064_v24 }
 0x22b   : > { %4077 = vpow2.f32 %v2096_v45 }
 0x22c   : > { %4079 = vpow2.f32 %v2082_v26 }
 0x230   : > { %v4072_v47 = vpop.eup %4071 }
 0x233   : > { %v4074_v41 = vpop.eup %4073 }
 0x234   : > { %v2319_v5 = vpack.c.bf16 %v4074_v41, %v4072_v47  ;;  %v6011_v22 = vpop.eup %4075 }
 0x236   : > { %3873 = vmatprep.mubr.bf16.mxu0 %v2319_v5 }
 0x238   : > { %v6013_v0 = vpop.eup %4077 }
 0x239   : > { %v2323_v20 = vpack.c.bf16 %v6013_v0, %v6011_v22  ;;  %v4080_v60 = vpop.eup %4079 }
 0x23b   : > { %3881 = vmatprep.mubr.bf16.mxu1 %v2323_v20 }
 0x23c   : > { %v2035_v4 = vpop.permute.xlu0 %2034 }
 0x23d   : > { %v2072_v40 = vsub.f32 %v6303_v36, %v2035_v4 }
 0x23e   : > { %v2000_v38 = vpop.permute.xlu1 %1999 }
 0x23f   : > { %v2065_v43 = vsub.f32 %v6302_v57, %v2000_v38  ;;  %v2098_v2 = vmul.f32 1.442695, %v2072_v40 }
 0x241   : > { %v2084_v10 = vmul.f32 1.442695, %v2065_v43 }
 0x243   : > { %4081 = vpow2.f32 %v2084_v10 }
 0x244   : > { %4083 = vpow2.f32 %v2098_v2 }
 0x247   : > { %2142 = vadd.xlane.f32.xlu0 %v4072_v47 }
 0x24a   : > { %2144 = vadd.xlane.f32.xlu1 %v4074_v41 }
 0x24b   : > { %2146 = vadd.xlane.f32.xlu0 %v4080_v60 }
 0x250   : > { %v4082_v8 = vpop.eup %4081 }
 0x251   : > { %2148 = vadd.xlane.f32.xlu0 %v4082_v8  ;;  %v2320_v44 = vpack.c.bf16 %v4082_v8, %v4080_v60  ;;  %v4084_v16 = vpop.eup %4083 }
 0x253   : > { %3874 = vmatmul.mubr.bf16.vlgmr.msra.gmra.mxu0 %v2320_v44 }
 0x258   : > { %v2005_v37 = vpop.permute.xlu0 %2004  ;;  %v2040_v63 = vpop.permute.xlu1 %2039 }
 0x259   : > { %v2066_v15 = vsub.f32 %v5645_v39, %v2005_v37  ;;  %v2073_v42 = vsub.f32 %v5652_v28, %v2040_v63  ;;  %v1978_v37 = vmul.f32 1.442695, %v1948_v31 }
 0x25b   : > { %v2086_v25 = vmul.f32 1.442695, %v2066_v15  ;;  %v2100_v52 = vmul.f32 1.442695, %v2073_v42 }
 0x25d   : > { %4085 = vpow2.f32 %v2086_v25 }
 0x25e   : > { %4087 = vpow2.f32 %v2100_v52 }
 0x26a   : > { %v4086_v1 = vpop.eup %4085 }
 0x26b   : > { %v4088_v14 = vpop.eup %4087  ;;  %2150 = vadd.xlane.f32.xlu1 %v4086_v1 }
 0x26c   : > { %v2324_v58 = vpack.c.bf16 %v4088_v14, %v4084_v16 }
 0x26e   : > { %3882 = vmatmul.mubr.bf16.vlgmr.msra.gmra.mxu1 %v2324_v58  ;;  %v2110_v58 = vld [vmem:[#allocation3] sm:$0xff] }
 0x273   : > { %v2045_v53 = vpop.permute.xlu0 %2044 }
 0x274   : > { %v2010_v7 = vpop.permute.xlu1 %2009  ;;  %v2074_v34 = vsub.f32 %v5770_v35, %v2045_v53 }
 0x275   : > { %v2067_v45 = vsub.f32 %v5775_v17, %v2010_v7  ;;  %v2111_v7 = vld [vmem:[#allocation3 + $0x8] sm:$0xff] }
 0x276   : > { %v2102_v47 = vmul.f32 1.442695, %v2074_v34  ;;  %v2126_v34 = vmul.f32 %v5938_v59, %v2110_v58 }
 0x277   : > { %v2015_v39 = vpop.permute.xlu0 %2014  ;;  %v2088_v50 = vmul.f32 1.442695, %v2067_v45 }
 0x278   : > { %v2068_v28 = vsub.f32 %v5781_v29, %v2015_v39  ;;  %v2112_v39 = vld [vmem:[#allocation3 + $0x10] sm:$0xff] }
 0x279   : > { %v2050_v55 = vpop.permute.xlu1 %2049  ;;  %4089 = vpow2.f32 %v2088_v50 }
 0x27a   : > { %v2075_v24 = vsub.f32 %v5789_v3, %v2050_v55  ;;  %v2090_v41 = vmul.f32 1.442695, %v2068_v28  ;;  %v2127_v28 = vmul.f32 %v5973_v56, %v2111_v7  ;;  %v2114_v56 = vld [vmem:[#allocation3 + $0x20] sm:$0xff]  ;;  %v2120_v7 = vld [vmem:[#allocation3 + $0x50] sm:$0xff] }
 0x27c   : > { %v2104_v5 = vmul.f32 1.442695, %v2075_v24  ;;  %4091 = vpow2.f32 %v2090_v41  ;;  %v2128_v24 = vmul.f32 %v5949_v51, %v2112_v39  ;;  %v2115_v51 = vld [vmem:[#allocation3 + $0x28] sm:$0xff] }
 0x27d   : > { %4093 = vpow2.f32 %v2102_v47  ;;  %v2020_v26 = vpop.permute.xlu1 %2019 }
 0x27e   : > { %4095 = vpow2.f32 %v2104_v5  ;;  %v2069_v20 = vsub.f32 %v5798_v21, %v2020_v26  ;;  %v2113_v26 = vld [vmem:[#allocation3 + $0x18] sm:$0xff] }
 0x27f   : > { %v2129_v59 = vmul.f32 %v5960_v32, %v2113_v26 }
 0x280   : > { %v2092_v35 = vmul.f32 1.442695, %v2069_v20 }
 0x281   : > { %v2060_v17 = vpop.permute.xlu1 %2059 }
 0x282   : > { %4097 = vpow2.f32 %v2092_v35  ;;  %v2077_v57 = vsub.f32 %v5803_v49, %v2060_v17  ;;  %v2130_v17 = vmul.f32 %v5979_v48, %v2114_v56 }
 0x284   : > { %v2108_v60 = vmul.f32 1.442695, %v2077_v57 }
 0x285   : > { %v2226_v63 = vpop.permute.xlu1 %2225 }
 0x286   : > { %v4090_v38 = vpop.eup %4089  ;;  %4099 = vpow2.f32 %v2108_v60 }
 0x287   : > { %2152 = vadd.xlane.f32.xlu0 %v4090_v38  ;;  %v2321_v29 = vpack.c.bf16 %v4090_v38, %v4086_v1 }
 0x289   : > { %v4092_v43 = vpop.eup %4091  ;;  %3877 = vmatprep.mubr.bf16.mxu0 %v2321_v29  ;;  %v2209_v29 = vld [vmem:[#allocation4 + $0x58] sm:$0xff] }
 0x28a   : > { %v4094_v10 = vpop.eup %4093  ;;  %2154 = vadd.xlane.f32.xlu1 %v4092_v43 }
 0x28b   : > { %v4096_v3 = vpop.eup %4095  ;;  %v2055_v8 = vpop.permute.xlu0 %2054 }
 0x28c   : > { %v2325_v4 = vpack.c.bf16 %v4096_v3, %v4094_v10  ;;  %v2076_v44 = vsub.f32 %v5807_v9, %v2055_v8  ;;  %v1980_v9 = vmul.f32 1.442695, %v1949_v62 }
 0x28e   : > { %3885 = vmatprep.mubr.bf16.mxu1 %v2325_v4  ;;  %2158 = vadd.xlane.f32.xlu1 %v6011_v22  ;;  %v2106_v36 = vmul.f32 1.442695, %v2076_v44  ;;  %v2210_v44 = vld [vmem:[#allocation4 + $0x18] sm:$0xff] }
 0x28f   : > { %v4098_v21 = vpop.eup %4097  ;;  %v6039_v42 = vpop.permute.xlu0 %2230 }
 0x290   : > { %2156 = vadd.xlane.f32.xlu0 %v4098_v21  ;;  %v2322_v49 = vpack.c.bf16 %v4098_v21, %v4092_v43  ;;  %4101 = vpow2.f32 %v2106_v36  ;;  %v2116_v43 = vld [vmem:[#allocation3 + $0x30] sm:$0xff]  ;;  %v2118_v36 = vld [vmem:[#allocation3 + $0x40] sm:$0xff] }
 0x291   : > { %4103 = vpow2.f32 %v1980_v9  ;;  %v2132_v4 = vmul.f32 %v5984_v23, %v2116_v43  ;;  %v2208_v9 = vld [vmem:[#allocation4] sm:$0xff] }
 0x292   : > { %3878 = vmatmul.mubr.bf16.gmra.mxu0 %v2322_v49  ;;  %2162 = vadd.xlane.f32.xlu1 %v4084_v16  ;;  %4105 = vpow2.f32 %v1978_v37 }
 0x293   : > { %v4100_v40 = vpop.eup %4099  ;;  %v6044_v62 = vpop.permute.xlu0 %2245 }
 0x294   : > { %2160 = vadd.xlane.f32.xlu0 %v6013_v0  ;;  %v2236_v0 = vpop.permute.xlu1 %2235 }
 0x295   : > { %v2305_v8 = vmul.f32 %v2236_v0, %v2209_v29 }
 0x296   : > { %2166 = vadd.xlane.f32.xlu1 %v4094_v10  ;;  %v2131_v10 = vmul.f32 %v5975_v54, %v2115_v51  ;;  %v2134_v54 = vmul.f32 %v5992_v19, %v2118_v36  ;;  %v2136_v19 = vmul.f32 %v6000_v27, %v2120_v7  ;;  %v2218_v36 = vld [vmem:[#allocation4 + $0x38] sm:$0xff]  ;;  %v2214_v7 = vld [vmem:[#allocation4 + $0x48] sm:$0xff] }
 0x297   : > { %v6048_v61 = vpop.permute.xlu0 %2255 }
 0x298   : > { %2164 = vadd.xlane.f32.xlu0 %v4088_v14  ;;  %v2241_v12 = vpop.permute.xlu1 %2240 }
 0x299   : > { %v2306_v58 = vmul.f32 %v2241_v12, %v2210_v44 }
 0x29b   : > { %v6052_v31 = vpop.permute.xlu0 %2265 }
 0x29c   : > { %2168 = vadd.xlane.f32.xlu0 %v4096_v3  ;;  %v6046_v25 = vpop.permute.xlu1 %2250  ;;  %v2207_v3 = vld [vmem:[#allocation4 + $0x30] sm:$0xff] }
 0x29d   : > { %v4102_v2 = vpop.eup %4101  ;;  %v2303_v48 = vmul.f32 %v2226_v63, %v2207_v3 }
 0x29e   : > { %v2326_v22 = vpack.c.bf16 %v4100_v40, %v4102_v2  ;;  %2170 = vadd.xlane.f32.xlu1 %v4102_v2  ;;  %v6036_v15 = vpop.eup %4103 }
 0x29f   : > { %v6041_v30 = vpop.eup %4105  ;;  %v6056_v16 = vpop.permute.xlu0 %2275 }
 0x2a0   : > { %2172 = vadd.xlane.f32.xlu0 %v4100_v40  ;;  %3886 = vmatmul.mubr.bf16.gmra.mxu1 %v2326_v22  ;;  %v6050_v18 = vpop.permute.xlu1 %2260  ;;  %v2117_v22 = vld [vmem:[#allocation3 + $0x38] sm:$0xff] }
 0x2a1   : > { %v2133_v39 = vmul.f32 %v5981_v33, %v2117_v22 }
 0x2a3   : > { %v6060_v14 = vpop.permute.xlu0 %2285 }
 0x2a4   : > { %v6054_v52 = vpop.permute.xlu1 %2270 }
 0x2a8   : > { %v6058_v1 = vpop.permute.xlu1 %2280 }
 0x2ac   : > { %v6062_v53 = vpop.permute.xlu1 %2290 }
 0x2af   : > { %2300 = vperm.xlu1 %4034, %v6036_v15  }
 0x2b6   : > { %2295 = vperm.xlu0 %4033, %v6041_v30  }
 0x2d0   : > { %v2143_v45 = vpop.xlane.xlu0 %2142 }
 0x2d1   : > { %v2174_v50 = vadd.f32 %v2143_v45, %v2126_v34  ;;  %v2304_v45 = vmul.f32 %v6039_v42, %v2208_v9 }
 0x2d3   : > { %v2145_v47 = vpop.xlane.xlu1 %2144  ;;  %2191 = vst.msk [vmem:[#allocation3] sm:$0xff] %vm2190_vm1, %v2174_v50 }
 0x2d4   : > { %v2175_v55 = vadd.f32 %v2145_v47, %v2127_v28  ;;  %v2147_v41 = vpop.xlane.xlu0 %2146  ;;  %v2119_v47 = vld [vmem:[#allocation3 + $0x48] sm:$0xff] }
 0x2d5   : > { %v2176_v5 = vadd.f32 %v2147_v41, %v2128_v24  ;;  %v2135_v26 = vmul.f32 %v5987_v13, %v2119_v47  ;;  %v2124_v13 = vld [vmem:[#allocation3 + $0x70] sm:$0xff] }
 0x2d6   : > { %2192 = vst.msk [vmem:[#allocation3 + $0x8] sm:$0xff] %vm2190_vm1, %v2175_v55 }
 0x2d7   : > { %2193 = vst.msk [vmem:[#allocation3 + $0x10] sm:$0xff] %vm2190_vm1, %v2176_v5  ;;  %v2122_v5 = vld [vmem:[#allocation3 + $0x60] sm:$0xff] }
 0x2da   : > { %v2149_v20 = vpop.xlane.xlu0 %2148 }
 0x2db   : > { %v2177_v35 = vadd.f32 %v2149_v20, %v2129_v59  ;;  %v2121_v59 = vld [vmem:[#allocation3 + $0x58] sm:$0xff] }
 0x2dd   : > { %2194 = vst.msk [vmem:[#allocation3 + $0x18] sm:$0xff] %vm2190_vm1, %v2177_v35  ;;  %v2138_v35 = vmul.f32 %v6007_v6, %v2122_v5  ;;  %v2140_v6 = vmul.f32 %v6041_v30, %v2124_v13  ;;  %v2222_v5 = vld [vmem:[#allocation4 + $0x28] sm:$0xff] }
 0x2f4   : > { %v2151_v38 = vpop.xlane.xlu1 %2150 }
 0x2f5   : > { %v2178_v57 = vadd.f32 %v2151_v38, %v2130_v17  ;;  %v2137_v17 = vmul.f32 %v5994_v46, %v2121_v59  ;;  %v2220_v59 = vld [vmem:[#allocation4 + $0x70] sm:$0xff] }
 0x2f7   : > { %2195 = vst.msk [vmem:[#allocation3 + $0x20] sm:$0xff] %vm2190_vm1, %v2178_v57  ;;  %v2123_v57 = vld [vmem:[#allocation3 + $0x68] sm:$0xff] }
 0x2f8   : > { %v2139_v29 = vmul.f32 %v6002_v11, %v2123_v57 }
 0x310   : > { %v2153_v60 = vpop.xlane.xlu0 %2152 }
 0x311   : > { %v2179_v32 = vadd.f32 %v2153_v60, %v2131_v10  ;;  %v2125_v10 = vld [vmem:[#allocation3 + $0x78] sm:$0xff] }
 0x312   : > { %v2141_v46 = vmul.f32 %v6036_v15, %v2125_v10  ;;  %v2314_v15 = vmul.f32 %v6058_v1, %v2218_v36 }
 0x313   : > { %v2155_v21 = vpop.xlane.xlu1 %2154  ;;  %v3875_v49 = vpop.f32.mrf.mxu0  ;;  %2196 = vst.msk [vmem:[#allocation3 + $0x28] sm:$0xff] %vm2190_vm1, %v2179_v32 }
 0x314   : > { %v2180_v40 = vadd.f32 %v2155_v21, %v2132_v4  ;;  %v2490_v2 = vadd.f32 %v3875_v49, %v2305_v8  ;;  %v2217_v4 = vld [vmem:[#allocation4 + $0x10] sm:$0xff]  ;;  %v2215_v21 = vld [vmem:[#allocation4 + $0x40] sm:$0xff] }
 0x315   : > { %v2425_v37 = vpop.f32.mrf.mxu0  ;;  %v2313_v11 = vmul.f32 %v6056_v16, %v2217_v4  ;;  %v2311_v30 = vmul.f32 %v6052_v31, %v2215_v21  ;;  %v2213_v16 = vld [vmem:[#allocation4 + $0x8] sm:$0xff] }
 0x316   : > { %2197 = vst.msk [vmem:[#allocation3 + $0x30] sm:$0xff] %vm2190_vm1, %v2180_v40  ;;  %2506 = vst [vmem:[#allocation4 + $0x58] sm:$0xff] %v2490_v2  ;;  %v2488_v0 = vadd.f32 %v2425_v37, %v2303_v48  ;;  %v2216_v40 = vld [vmem:[#allocation4 + $0x20] sm:$0xff]  ;;  %v2309_v31 = vmul.f32 %v6048_v61, %v2213_v16  ;;  %v2221_v61 = vld [vmem:[#allocation4 + $0x78] sm:$0xff] }
 0x317   : > { %v2159_v23 = vpop.xlane.xlu1 %2158  ;;  %v3876_v34 = vpop.f32.mrf.mxu0  ;;  %v2312_v37 = vmul.f32 %v6054_v52, %v2216_v40 }
 0x318   : > { %v2182_v63 = vadd.f32 %v2159_v23, %v2134_v54  ;;  %2504 = vst [vmem:[#allocation4 + $0x30] sm:$0xff] %v2488_v0  ;;  %v2491_v50 = vadd.f32 %v3876_v34, %v2306_v58  ;;  %v2211_v23 = vld [vmem:[#allocation4 + $0x50] sm:$0xff] }
 0x319   : > { %v2157_v28 = vpop.xlane.xlu0 %2156  ;;  %v2428_v55 = vpop.f32.mrf.mxu0 }
 0x31a   : > { %2199 = vst.msk [vmem:[#allocation3 + $0x40] sm:$0xff] %vm2190_vm1, %v2182_v63  ;;  %v2181_v12 = vadd.f32 %v2157_v28, %v2133_v39  ;;  %2507 = vst [vmem:[#allocation4 + $0x18] sm:$0xff] %v2491_v50  ;;  %v2489_v24 = vadd.f32 %v2428_v55, %v2304_v45  ;;  %v2307_v45 = vmul.f32 %v6044_v62, %v2211_v23  ;;  %v2212_v63 = vld [vmem:[#allocation4 + $0x68] sm:$0xff] }
 0x31b   : > { %v2163_v41 = vpop.xlane.xlu1 %2162  ;;  %v2310_v50 = vmul.f32 %v6050_v18, %v2214_v7  ;;  %v2308_v47 = vmul.f32 %v6046_v25, %v2212_v63 }
 0x31c   : > { %2198 = vst.msk [vmem:[#allocation3 + $0x38] sm:$0xff] %vm2190_vm1, %v2181_v12  ;;  %v2184_v42 = vadd.f32 %v2163_v41, %v2136_v19  ;;  %2505 = vst [vmem:[#allocation4] sm:$0xff] %v2489_v24  ;;  %v2219_v41 = vld [vmem:[#allocation4 + $0x60] sm:$0xff] }
 0x31d   : > { %v2161_v33 = vpop.xlane.xlu0 %2160  ;;  %v2315_v18 = vmul.f32 %v6060_v14, %v2219_v41 }
 0x31e   : > { %2201 = vst.msk [vmem:[#allocation3 + $0x50] sm:$0xff] %vm2190_vm1, %v2184_v42  ;;  %v2183_v20 = vadd.f32 %v2161_v33, %v2135_v26 }
 0x31f   : > { %v2167_v56 = vpop.xlane.xlu1 %2166 }
 0x320   : > { %2200 = vst.msk [vmem:[#allocation3 + $0x48] sm:$0xff] %vm2190_vm1, %v2183_v20  ;;  %v2186_v27 = vadd.f32 %v2167_v56, %v2138_v35 }
 0x321   : > { %v2165_v38 = vpop.xlane.xlu0 %2164 }
 0x322   : > { %2203 = vst.msk [vmem:[#allocation3 + $0x60] sm:$0xff] %vm2190_vm1, %v2186_v27  ;;  %v2185_v51 = vadd.f32 %v2165_v38, %v2137_v17  ;;  %v2316_v27 = vmul.f32 %v6062_v53, %v2220_v59 }
 0x324   : > { %2202 = vst.msk [vmem:[#allocation3 + $0x58] sm:$0xff] %vm2190_vm1, %v2185_v51 }
 0x325   : > { %v2169_v43 = vpop.xlane.xlu0 %2168 }
 0x326   : > { %v2187_v3 = vadd.f32 %v2169_v43, %v2139_v29 }
 0x327   : > { %v2171_v60 = vpop.xlane.xlu1 %2170 }
 0x328   : > { %2204 = vst.msk [vmem:[#allocation3 + $0x68] sm:$0xff] %vm2190_vm1, %v2187_v3  ;;  %v2188_v8 = vadd.f32 %v2171_v60, %v2140_v6 }
 0x329   : > { %v2173_v32 = vpop.xlane.xlu0 %2172 }
 0x32a   : > { %v2189_v44 = vadd.f32 %v2173_v32, %v2141_v46  ;;  %2205 = vst.msk [vmem:[#allocation3 + $0x70] sm:$0xff] %vm2190_vm1, %v2188_v8 }
 0x32b   : > { %v2301_v42 = vpop.permute.xlu1 %2300 }
 0x32c   : > { %2206 = vst.msk [vmem:[#allocation3 + $0x78] sm:$0xff] %vm2190_vm1, %v2189_v44  ;;  %v2318_v35 = vmul.f32 %v2301_v42, %v2222_v5 }
 0x32e   : > { %v3883_v49 = vpop.f32.mrf.mxu1 }
 0x32f   : > { %v2498_v48 = vadd.f32 %v3883_v49, %v2313_v11 }
 0x330   : > { %v2457_v2 = vpop.f32.mrf.mxu1 }
 0x331   : > { %2514 = vst [vmem:[#allocation4 + $0x10] sm:$0xff] %v2498_v48  ;;  %v2496_v9 = vadd.f32 %v2457_v2, %v2311_v30  ;;  %v2296_v24 = vpop.permute.xlu0 %2295 }
 0x332   : > { %v3884_v22 = vpop.f32.mrf.mxu1  ;;  %v2317_v62 = vmul.f32 %v2296_v24, %v2221_v61 }
 0x333   : > { %2512 = vst [vmem:[#allocation4 + $0x40] sm:$0xff] %v2496_v9  ;;  %v2499_v58 = vadd.f32 %v3884_v22, %v2314_v15 }
 0x334   : > { %v2460_v54 = vpop.f32.mrf.mxu1 }
 0x335   : > { %2515 = vst [vmem:[#allocation4 + $0x38] sm:$0xff] %v2499_v58  ;;  %v2497_v0 = vadd.f32 %v2460_v54, %v2312_v37 }
 0x337   : > { %2513 = vst [vmem:[#allocation4 + $0x20] sm:$0xff] %v2497_v0 }
 0x352   : > { %v3879_v34 = vpop.f32.mrf.mxu0 }
 0x353   : > { %v2494_v1 = vadd.f32 %v3879_v34, %v2309_v31 }
 0x354   : > { %v2441_v39 = vpop.f32.mrf.mxu0 }
 0x355   : > { %2510 = vst [vmem:[#allocation4 + $0x8] sm:$0xff] %v2494_v1  ;;  %v2492_v52 = vadd.f32 %v2441_v39, %v2307_v45 }
 0x356   : > { %v3880_v28 = vpop.f32.mrf.mxu0 }
 0x357   : > { %2508 = vst [vmem:[#allocation4 + $0x50] sm:$0xff] %v2492_v52  ;;  %v2495_v55 = vadd.f32 %v3880_v28, %v2310_v50 }
 0x358   : > { %v2444_v12 = vpop.f32.mrf.mxu0 }
 0x359   : > { %2511 = vst [vmem:[#allocation4 + $0x48] sm:$0xff] %v2495_v55  ;;  %v2493_v19 = vadd.f32 %v2444_v12, %v2308_v47 }
 0x35b   : > { %2509 = vst [vmem:[#allocation4 + $0x68] sm:$0xff] %v2493_v19 }
 0x360   : > { %v3887_v26 = vpop.f32.mrf.mxu1 }
 0x361   : > { %v2502_v33 = vadd.f32 %v3887_v26, %v2317_v62 }
 0x362   : > { %v2473_v20 = vpop.f32.mrf.mxu1 }
 0x363   : > { %2518 = vst [vmem:[#allocation4 + $0x78] sm:$0xff] %v2502_v33  ;;  %v2500_v25 = vadd.f32 %v2473_v20, %v2315_v18 }
 0x364   : > { %v3888_v56 = vpop.f32.mrf.mxu1 }
 0x365   : > { %2516 = vst [vmem:[#allocation4 + $0x60] sm:$0xff] %v2500_v25  ;;  %v2503_v17 = vadd.f32 %v3888_v56, %v2318_v35  ;;  %2539 = sbr.rel (%p3154_p5) target bundleno = 1045 (0x415), region = 101 }
 0x366   : > { %v2476_v38 = vpop.f32.mrf.mxu1 }
 0x367   : > { %2519 = vst [vmem:[#allocation4 + $0x28] sm:$0xff] %v2503_v17  ;;  %v2501_v57 = vadd.f32 %v2476_v38, %v2316_v27 }
 0x369   : > { %2517 = vst [vmem:[#allocation4 + $0x70] sm:$0xff] %v2501_v57 }
 0x36a   : > { %v2558_v51 = vld [vmem:[#allocation3 + $0x10] sm:$0xff]  ;;  %v2556_v14 = vld [vmem:[#allocation3] sm:$0xff]  ;;  %v2559_v13 = vld [vmem:[#allocation3 + $0x18] sm:$0xff]  ;;  %v4294_v29 = vmov 0  }
 0x36b   : > { %4109 = vset.pattern.permute.xlu1 %v4294_v29  ;;  %4108 = vset.pattern.permute.xlu0 %v4294_v29  ;;  %4110 = vrcp.f32 %v2558_v51  ;;  %v2557_v43 = vld [vmem:[#allocation3 + $0x8] sm:$0xff]  ;;  %v2560_v10 = vld [vmem:[#allocation3 + $0x20] sm:$0xff]  ;;  %v2563_v3 = vld [vmem:[#allocation3 + $0x38] sm:$0xff] }
 0x36c   : > { %4112 = vrcp.f32 %v2556_v14  ;;  %v2561_v53 = vld [vmem:[#allocation3 + $0x28] sm:$0xff]  ;;  %v2562_v6 = vld [vmem:[#allocation3 + $0x30] sm:$0xff]  ;;  %v2564_v46 = vld [vmem:[#allocation3 + $0x40] sm:$0xff] }
 0x36d   : > { %4114 = vrcp.f32 %v2559_v13  ;;  %v2565_v60 = vld [vmem:[#allocation3 + $0x48] sm:$0xff]  ;;  %v2567_v44 = vld [vmem:[#allocation3 + $0x58] sm:$0xff]  ;;  %v2566_v11 = vld [vmem:[#allocation3 + $0x50] sm:$0xff] }
 0x36e   : > { %4116 = vrcp.f32 %v2557_v43  ;;  %v2569_v49 = vld [vmem:[#allocation3 + $0x68] sm:$0xff]  ;;  %v2568_v48 = vld [vmem:[#allocation3 + $0x60] sm:$0xff]  ;;  %v2571_v2 = vld [vmem:[#allocation3 + $0x78] sm:$0xff] }
 0x36f   : > { %4118 = vrcp.f32 %v2561_v53  ;;  %v2570_v9 = vld [vmem:[#allocation3 + $0x70] sm:$0xff]  ;;  %v2542_v7 = vld [vmem:[#allocation4 + $0x58] sm:$0xff]  ;;  %v2541_v52 = vld [vmem:[#allocation4] sm:$0xff] }
 0x370   : > { %4120 = vrcp.f32 %v2560_v10  ;;  %v2540_v34 = vld [vmem:[#allocation4 + $0x30] sm:$0xff]  ;;  %v2543_v50 = vld [vmem:[#allocation4 + $0x18] sm:$0xff]  ;;  %v2545_v19 = vld [vmem:[#allocation4 + $0x68] sm:$0xff] }
 0x371   : > { %4122 = vrcp.f32 %v2563_v3  ;;  %v2544_v61 = vld [vmem:[#allocation4 + $0x50] sm:$0xff]  ;;  %v2547_v42 = vld [vmem:[#allocation4 + $0x48] sm:$0xff]  ;;  %v2549_v35 = vld [vmem:[#allocation4 + $0x20] sm:$0xff] }
 0x372   : > { %4124 = vrcp.f32 %v2562_v6  ;;  %v2546_v26 = vld [vmem:[#allocation4 + $0x8] sm:$0xff]  ;;  %v2548_v25 = vld [vmem:[#allocation4 + $0x40] sm:$0xff]  ;;  %v2551_v57 = vld [vmem:[#allocation4 + $0x38] sm:$0xff] }
 0x373   : > { %4126 = vrcp.f32 %v2565_v60  ;;  %v2550_v51 = vld [vmem:[#allocation4 + $0x10] sm:$0xff]  ;;  %v2552_v10 = vld [vmem:[#allocation4 + $0x60] sm:$0xff] }
 0x374   : > { %4128 = vrcp.f32 %v2564_v46  ;;  %v2553_v53 = vld [vmem:[#allocation4 + $0x70] sm:$0xff] }
 0x375   : > { %4130 = vrcp.f32 %v2567_v44 }
 0x376   : > { %4132 = vrcp.f32 %v2566_v11 }
 0x377   : > { %4134 = vrcp.f32 %v2569_v49 }
 0x378   : > { %v4111_v8 = vpop.eup %4110  ;;  %4136 = vrcp.f32 %v2568_v48 }
 0x379   : > { %v4113_v32 = vpop.eup %4112  ;;  %2600 = vperm.xlu1 %4109, %v4111_v8   ;;  %4138 = vrcp.f32 %v2571_v2  ;;  %v2555_v8 = vld [vmem:[#allocation4 + $0x28] sm:$0xff] }
 0x37a   : > { %v4115_v4 = vpop.eup %4114  ;;  %2590 = vperm.xlu0 %4108, %v4113_v32   ;;  %4140 = vrcp.f32 %v2570_v9  ;;  %v2554_v32 = vld [vmem:[#allocation4 + $0x78] sm:$0xff] }
 0x37b   : > { %v4117_v21 = vpop.eup %4116 }
 0x37c   : > { %v4119_v36 = vpop.eup %4118 }
 0x37d   : > { %2605 = vperm.xlu1 %4109, %v4115_v4   ;;  %v4121_v30 = vpop.eup %4120 }
 0x37e   : > { %2595 = vperm.xlu0 %4108, %v4117_v21   ;;  %v4123_v40 = vpop.eup %4122 }
 0x37f   : > { %v4125_v15 = vpop.eup %4124 }
 0x380   : > { %v4127_v22 = vpop.eup %4126 }
 0x381   : > { %2615 = vperm.xlu1 %4109, %v4119_v36   ;;  %v4129_v37 = vpop.eup %4128 }
 0x382   : > { %2610 = vperm.xlu0 %4108, %v4121_v30   ;;  %v4131_v58 = vpop.eup %4130 }
 0x383   : > { %v4133_v54 = vpop.eup %4132 }
 0x384   : > { %v4135_v0 = vpop.eup %4134 }
 0x385   : > { %2625 = vperm.xlu1 %4109, %v4123_v40   ;;  %v4137_v16 = vpop.eup %4136 }
 0x386   : > { %2620 = vperm.xlu0 %4108, %v4125_v15   ;;  %v4139_v23 = vpop.eup %4138 }
 0x387   : > { %v4141_v31 = vpop.eup %4140 }
 0x389   : > { %2635 = vperm.xlu1 %4109, %v4127_v22  }
 0x38a   : > { %2630 = vperm.xlu0 %4108, %v4129_v37  }
 0x38d   : > { %2645 = vperm.xlu1 %4109, %v4131_v58  }
 0x38e   : > { %2640 = vperm.xlu0 %4108, %v4133_v54  }
 0x391   : > { %2655 = vperm.xlu1 %4109, %v4135_v0  }
 0x392   : > { %2650 = vperm.xlu0 %4108, %v4137_v16  }
 0x395   : > { %2665 = vperm.xlu1 %4109, %v4139_v23  }
 0x396   : > { %2660 = vperm.xlu0 %4108, %v4141_v31  }
 0x3f4   : > { %v2601_v45 = vpop.permute.xlu1 %2600 }
 0x3f5   : > { %v2670_v1 = vmul.f32 %v2601_v45, %v2542_v7  ;;  %v2591_v63 = vpop.permute.xlu0 %2590 }
 0x3f6   : > { %v2668_v39 = vmul.f32 %v2591_v63, %v2540_v34 }
 0x3f7   : > { %2686 = vst [vmem:[%s4542_s8 + $0x10] sm:$0xff] %v2670_v1 }
 0x3f8   : > { %2684 = vst [vmem:[%s4542_s8] sm:$0xff] %v2668_v39  ;;  %v2606_v28 = vpop.permute.xlu1 %2605 }
 0x3f9   : > { %v2671_v47 = vmul.f32 %v2606_v28, %v2543_v50  ;;  %v2596_v55 = vpop.permute.xlu0 %2595 }
 0x3fa   : > { %v2669_v12 = vmul.f32 %v2596_v55, %v2541_v52 }
 0x3fb   : > { %2687 = vst [vmem:[%s4542_s8 + $0x18] sm:$0xff] %v2671_v47 }
 0x3fc   : > { %2685 = vst [vmem:[%s4542_s8 + $0x8] sm:$0xff] %v2669_v12  ;;  %v2616_v24 = vpop.permute.xlu1 %2615 }
 0x3fd   : > { %v2673_v41 = vmul.f32 %v2616_v24, %v2545_v19  ;;  %v2611_v62 = vpop.permute.xlu0 %2610 }
 0x3fe   : > { %v2672_v5 = vmul.f32 %v2611_v62, %v2544_v61 }
 0x3ff   : > { %2689 = vst [vmem:[%s4542_s8 + $0x28] sm:$0xff] %v2673_v41 }
 0x400   : > { %2688 = vst [vmem:[%s4542_s8 + $0x20] sm:$0xff] %v2672_v5  ;;  %v2626_v18 = vpop.permute.xlu1 %2625 }
 0x401   : > { %v2675_v33 = vmul.f32 %v2626_v18, %v2547_v42  ;;  %v2621_v59 = vpop.permute.xlu0 %2620 }
 0x402   : > { %v2674_v20 = vmul.f32 %v2621_v59, %v2546_v26 }
 0x403   : > { %2691 = vst [vmem:[%s4542_s8 + $0x38] sm:$0xff] %v2675_v33 }
 0x404   : > { %2690 = vst [vmem:[%s4542_s8 + $0x30] sm:$0xff] %v2674_v20  ;;  %v2636_v56 = vpop.permute.xlu1 %2635 }
 0x405   : > { %v2677_v27 = vmul.f32 %v2636_v56, %v2549_v35  ;;  %v2631_v17 = vpop.permute.xlu0 %2630 }
 0x406   : > { %v2676_v38 = vmul.f32 %v2631_v17, %v2548_v25 }
 0x407   : > { %2693 = vst [vmem:[%s4542_s8 + $0x48] sm:$0xff] %v2677_v27 }
 0x408   : > { %2692 = vst [vmem:[%s4542_s8 + $0x40] sm:$0xff] %v2676_v38  ;;  %v2646_v14 = vpop.permute.xlu1 %2645 }
 0x409   : > { %v2679_v13 = vmul.f32 %v2646_v14, %v2551_v57  ;;  %v2641_v29 = vpop.permute.xlu0 %2640 }
 0x40a   : > { %v2678_v43 = vmul.f32 %v2641_v29, %v2550_v51 }
 0x40b   : > { %2695 = vst [vmem:[%s4542_s8 + $0x58] sm:$0xff] %v2679_v13 }
 0x40c   : > { %2694 = vst [vmem:[%s4542_s8 + $0x50] sm:$0xff] %v2678_v43  ;;  %v2656_v3 = vpop.permute.xlu1 %2655 }
 0x40d   : > { %v2681_v6 = vmul.f32 %v2656_v3, %v2553_v53  ;;  %v2651_v60 = vpop.permute.xlu0 %2650 }
 0x40e   : > { %v2680_v46 = vmul.f32 %v2651_v60, %v2552_v10 }
 0x40f   : > { %2697 = vst [vmem:[%s4542_s8 + $0x68] sm:$0xff] %v2681_v6 }
 0x410   : > { %2696 = vst [vmem:[%s4542_s8 + $0x60] sm:$0xff] %v2680_v46  ;;  %v2666_v4 = vpop.permute.xlu1 %2665 }
 0x411   : > { %v2683_v44 = vmul.f32 %v2666_v4, %v2555_v8  ;;  %v2661_v21 = vpop.permute.xlu0 %2660 }
 0x412   : > { %v2682_v11 = vmul.f32 %v2661_v21, %v2554_v32 }
 0x413   : > { %2699 = vst [vmem:[%s4542_s8 + $0x78] sm:$0xff] %v2683_v44 }
 0x414   : > { %2698 = vst [vmem:[%s4542_s8 + $0x70] sm:$0xff] %v2682_v11 }
 0x415 PF: > { %s3162_s27 = sshll.u32 %s4269_s28, 11  ;;  %s6304_s30 = sld [smem:[#allocation36_spill]] }
 0x416   : > { %s2714_s16 = sshll.u32 %s4542_s8, 4  ;;  %s6135_s6 = scalar_lea.sflag [#allocation7], %s493_s15  ;;  %s6131_s16 = int_to_ptr.vmem [resolvable:$true] %s2714_s16 }
 0x417   : > { %s4157_s12 = scalar_lea.vmem %s6131_s16, 2048  ;;  %p6306_p9 = scmp.ne.s32.totalorder %s6238_s20, 0 }
 0x418   : > { %p4158_p8 = scmp.ne.s32.totalorder %s6131_s16, %s4157_s12  ;;  %s4295_s28 = smov [#allocation11]  }
 0x419   : > { %s4161_s13 = sshll.u32 %s4295_s28, 4  ;;  %s4162_s13 = int_to_ptr.vmem [resolvable:$false] %s4161_s13 }
 0x41a   : > { %p4159_p10 = pnand %p4158_p8, %p6306_p9  ;;  %s4163_s0 = scalar_lea.vmem %s4162_s13, 4096 }
 0x41b   : > { %s6305_s10 = smov %s6304_s30  ;;  %s6128_s14 = scalar_lea.hbm %s6304_s30, %s3162_s27 }
 0x41c   : > { %p4160_p11 = pneg %p4159_p10  ;;  %p4164_p13 = scmp.lt.s32.totalorder %s6131_s16, %s4162_s13 }
 0x41d   : > { %p4165_p0 = scmp.lt.s32.totalorder %s4163_s0, %s4157_s12 }
 0x41f   : > { %p4166_p1 = por %p4165_p0, %p4164_p13 }
 0x421   : > { %p4167_p2 = pnand %p4166_p1, %p4160_p11 }
 0x423   : > { %4170 = shalt.err (!%p4167_p2)
}
 0x424   : > { %s4171_s15 = scalar_lea.hbm %s6128_s14, 2048  ;;  %s4175_s3 = scalar_lea.hbm %s6305_s10, 4096 }
 0x425   : > { %p4172_p3 = scmp.ne.s32.totalorder %s6128_s14, %s4171_s15  ;;  %p4176_p12 = scmp.lt.s32.totalorder %s6128_s14, %s6305_s10 }
 0x426   : > { %p4177_p4 = scmp.lt.s32.totalorder %s4175_s3, %s4171_s15 }
 0x427   : > { %p4173_p6 = pnand %p4172_p3, %p6306_p9 }
 0x428   : > { %p4178_p5 = por %p4177_p4, %p4176_p12 }
 0x429   : > { %p4174_p7 = pneg %p4173_p6 }
 0x42b   : > { %p4179_p8 = pnand %p4178_p5, %p4174_p7 }
 0x42d   : > { %4182 = shalt.err (!%p4179_p8)
}
 0x42e   : > { %s4296_s18 = smov 128   ;;  %s4297_s23 = smov 8  }
 0x42f   : > { %3918 = dma.vmem_to_hbm [thread:$0]  (%p6306_p9), %s6131_s16, 2048, %s6128_s14, %s6135_s6, %s4296_s18, %s4296_s18, %s4297_s23  }
 0x430 PF: > { %s6307_s17 = sld [smem:[#allocation25_spill]]  ;;  %p3930_p10 = scmp.ge.s32.totalorder %s4281_s7, 2 }
 0x431   : > { %s2729_s27 = sand.u32 1, %s4241_s21  }
 0x432   : > { %s2730_s24 = scalar_lea.sflag [#allocation7], %s2729_s27 }
 0x436   : > { %p6308_p11 = scmp.ne.s32.totalorder %s6307_s17, 0 }
 0x438   : > { %p3925_p13 = pnand %p3930_p10, %p6308_p11 }
 0x43a   : > { %p3926_p0 = pneg %p3925_p13 }
 0x43c   : > { %4236 = dma.done.wait (%p3926_p0), %s2730_s24, 2048  }
 0x43d   : > { %4238 = vsyncadd (%p3926_p0), %s2730_s24, 4294965248  ;;  %s23_s7 = sadd.s32 1, %s4281_s7   ;;  %s6309_s19 = sld [smem:[#allocation18_spill]] }
 0x43e   : > { %p20_p1 = scmp.ge.s32.totalorder %s23_s7, 6   ;;  %s6310_s23 = sld [smem:[#allocation23_spill]] }
 0x43f   : > { %s6311_s20 = sld [smem:[#allocation19_spill]]  ;;  %s6316_s21 = smov %s4245_s22 }
 0x440   : > { %s6312_s26 = sld [smem:[#allocation24_spill]]  ;;  %s6318_s24 = smov %s4257_s25 }
 0x441   : > { %s6313_s28 = sld [smem:[#allocation20_spill]]  ;;  %s6320_s27 = smov %s4273_s29 }
 0x442   : > { %s6314_s30 = sld [smem:[#allocation21_spill]] }
 0x443   : > { %s6315_s14 = sld [smem:[#allocation22_spill]]  ;;  %s6317_s22 = smov %s6309_s19 }
 0x445   : > { %s6319_s25 = smov %s6311_s20  ;;  %22 = sbr.rel (!%p20_p1) target bundleno = 14 (0xe), region = 180 }
 0x448   : > { %s6321_s29 = smov %s6314_s30 }
 0x449   : > { %s6322_s30 = smov %s6315_s14 }
 0x44a   :  { %2735 = vsyncpa [#allocation6], 1 }
 0x44b   :  { %2737 = vsyncpa [#allocation6 + $0x1], 1 }
 0x44c   :  { %2738 = vsyncpa [#allocation7], 1 }
 0x44d   :  { %2740 = vsyncpa [#allocation7 + $0x1], 1 }
 0x44e   :  { %2741 = vsyncpa [#allocation8], 1 }
 0x44f   :  { %2743 = vsyncpa [#allocation8 + $0x1], 1 }

</bundles_post_ra>
